<compile_context>
chip_gen: v5e
topology: v5e:2x2
jax: 0.10.0
libtpu: 0.0.40
codegen_flags: <defaults>
</compile_context>

<pallas_src>
import functools
import math

import jax
import jax.numpy as jnp
from jax.experimental import pallas as pl
from jax.experimental.pallas import tpu as pltpu

# ----------------------- model hyper-parameters (module defaults) -----------------
OBJECT_VOCAB = 11          # len(OBJECT_TO_IDX)
COLOR_VOCAB = 6            # len(COLOR_TO_IDX)
STATE_VOCAB = 2
EMBED_SIZE = 16
IMAGE_EMBED_SIZE = 128     # d_model
NUM_DECODER_LAYERS = 2
N_HEAD = 4
RECURRENCE = 8
DIM_FF = 2048              # nn.TransformerDecoderLayer default
N_ACTIONS = 7
LN_EPS = 1e-5


# ============================ conv tower (plain XLA, bf16 weights) ================
def _conv2d_relu(x, w, b):
    """2x2 valid conv, stride 1, NHWC: im2col + XLA matmul (bf16 weights, f32 accum)."""
    bsz, hin, win, cin = x.shape
    ho, wo = hin - 1, win - 1
    patches = jnp.concatenate(
        [x[:, dy:dy + ho, dx:dx + wo, :] for dy in (0, 1) for dx in (0, 1)], axis=-1)
    y = jnp.dot(patches.reshape(bsz * ho * wo, 4 * cin).astype(jnp.bfloat16), w,
                preferred_element_type=jnp.float32) + b
    return jnp.maximum(y, 0.0).reshape(bsz, ho, wo, -1)


def _maxpool2x2(x):
    bsz, h, w, c = x.shape
    return jnp.max(x.reshape(bsz, h // 2, 2, w // 2, 2, c), axis=(2, 4))


# ============================ fused transformer + heads kernel =====================
def _fused_transformer_kernel(
        # fixed inputs (resident across all grid steps)
        x3_ref, pos_ref, c3w_ref, c3b_ref, e_ref, et_ref,
        h1w_ref, h1b_ref, h2w_ref, h2b_ref,
        # per-layer inputs (blocked over the layer grid axis, leading dim 1)
        mem_ref,
        sa_wv_ref, sa_bv_ref, sa_wo_ref, sa_bo_ref,
        ca_wq_ref, ca_bq_ref, ca_wkv_ref, ca_bkv_ref, ca_wo_ref, ca_bo_ref,
        ln1_g_ref, ln1_b_ref, ln2_g_ref, ln2_b_ref, ln3_g_ref, ln3_b_ref,
        ff1_w_ref, ff1_b_ref, ff2_w_ref, ff2_b_ref,
        # outputs
        head_ref, memout_ref,
        # scratch
        x_scr,
        *, n_head, eps, n_actions):
    li = pl.program_id(0)
    bsz, d = x_scr.shape
    scale = 1.0 / math.sqrt(d // n_head)

    def mm(x, w, b):
        y = jnp.dot(x.astype(w.dtype), w, preferred_element_type=jnp.float32)
        return y + b

    def layer_norm(x, g, b):
        mean = jnp.mean(x, axis=-1, keepdims=True)
        c = x - mean
        var = jnp.mean(c * c, axis=-1, keepdims=True)
        return c * jax.lax.rsqrt(var + eps) * g + b

    # ---- layer-0 prologue: conv3 (2x2 kernel over 2x2 input == dense matmul) + pos ----
    @pl.when(li == 0)
    def _():
        x0 = jnp.maximum(mm(x3_ref[...], c3w_ref[...], c3b_ref[...]), 0.0)
        x_scr[...] = x0 + pos_ref[...]

    x = x_scr[...]
    memout_ref[0] = x                         # module stacks each layer's *input*

    # ---- self-attention with Sq=Sk=1: softmax == 1  =>  out_proj(v_proj(x)) ----
    sa = mm(mm(x, sa_wv_ref[0], sa_bv_ref[0]), sa_wo_ref[0], sa_bo_ref[0])
    x = layer_norm(x + sa, ln1_g_ref[0], ln1_b_ref[0])

    # ---- cross-attention over memory[:, :, li, :] (batched, reshape-free heads) ----
    mem = mem_ref[0]                                              # (B*M, D), b-major
    m_len = mem.shape[0] // bsz
    q = mm(x, ca_wq_ref[0], ca_bq_ref[0])                         # (B, D)
    kv = mm(mem, ca_wkv_ref[0], ca_bkv_ref[0])                    # (B*M, 2D)  fused K|V
    k_all = kv[:, :d]
    v_all = kv[:, d:]
    q_rep = jnp.broadcast_to(q[:, None, :], (bsz, m_len, d)).reshape(bsz * m_len, d)
    qk = q_rep * k_all * scale                                    # (B*M, D)
    s = jnp.dot(qk, e_ref[...], preferred_element_type=jnp.float32)      # (B*M, H)
    s3 = s.reshape(bsz, m_len, n_head)
    s_max = jnp.max(s3, axis=1, keepdims=True)
    p3 = jnp.exp(s3 - s_max)
    denom = jnp.sum(p3, axis=1, keepdims=True)
    p3 = p3 * pl.reciprocal(denom, approx=True)
    p_full = jnp.dot(p3.reshape(bsz * m_len, n_head), et_ref[...],
                     preferred_element_type=jnp.float32)                 # (B*M, D)
    ca = jnp.sum((p_full * v_all).reshape(bsz, m_len, d), axis=1)        # (B, D)
    ca = mm(ca, ca_wo_ref[0], ca_bo_ref[0])
    x = layer_norm(x + ca, ln2_g_ref[0], ln2_b_ref[0])

    # ---- feed-forward: 2048-wide intermediate stays in VMEM ----
    h = jnp.maximum(mm(x, ff1_w_ref[0], ff1_b_ref[0]), 0.0)
    h = mm(h, ff2_w_ref[0], ff2_b_ref[0])
    x = layer_norm(x + h, ln3_g_ref[0], ln3_b_ref[0])
    x_scr[...] = x

    # ---- last layer: fused actor/critic heads into one lane-dense (B, 128) slab ----
    @pl.when(li == pl.num_programs(0) - 1)
    def _():
        h1 = jnp.tanh(mm(x, h1w_ref[...], h1b_ref[...]))          # [actor1 | critic1]
        slab = mm(h1, h2w_ref[...], h2b_ref[...])                 # cols :7 logits, col 7 value
        col = jax.lax.broadcasted_iota(jnp.int32, slab.shape, 1)
        mask = col < n_actions
        z_max = jnp.max(jnp.where(mask, slab, -jnp.inf), axis=-1, keepdims=True)
        z_sum = jnp.sum(jnp.where(mask, jnp.exp(slab - z_max), 0.0), axis=-1, keepdims=True)
        lse = z_max + jnp.log(z_sum)
        head_ref[...] = jnp.where(mask, slab - lse, slab)


# ================================ BlockSpec helpers ===============================
def _fixed_spec(arr):
    """Whole-array block, resident (not re-fetched) across all grid steps."""
    zeros = (0,) * arr.ndim
    return pl.BlockSpec(arr.shape, lambda l, _z=zeros: _z)


def _layer_spec(arr):
    """Per-layer slab: leading axis blocked by the layer grid index (double-buffered)."""
    rest = (0,) * (arr.ndim - 1)
    return pl.BlockSpec((1,) + tuple(arr.shape[1:]), lambda l, _r=rest: (l,) + _r)


# ================================ forward pass ====================================
def _forward_impl(params, image, memory):
    """image:(B,7,7,3) int32, memory:(B,M,num_layers,D) f32
    returns (log_probs:(B,A), value:(B,), new_memory:(B,M+1,num_layers,D))"""
    b = image.shape[0]
    m_len = memory.shape[1]
    d = IMAGE_EMBED_SIZE

    # ---- embedding gather + conv1/pool/conv2 tower (XLA glue; tiny) ----
    obj = params["object_embed"][image[..., 0]]
    col = params["color_embed"][image[..., 1]]
    sta = params["state_embed"][image[..., 2]]
    im = jnp.concatenate([col, obj, sta], axis=-1)                   # (B,7,7,48) NHWC

    x = _conv2d_relu(im, params["conv1_w"], params["conv1_b"])       # (B,6,6,64)
    x = _maxpool2x2(x)                                               # (B,3,3,64)
    x = _conv2d_relu(x, params["conv2_w"], params["conv2_b"])        # (B,2,2,64)
    x3 = x.reshape(b, -1)                                            # (B,256) == conv3 im2col

    mem_stack = jnp.transpose(memory, (2, 0, 1, 3)).reshape(NUM_DECODER_LAYERS, b * m_len, d)

    fixed_inputs = [
        x3, params["pos_row"], params["conv3_w"], params["conv3_b"],
        params["e_mat"], params["et_mat"],
        params["head1_w"], params["head1_b"], params["head2_w"], params["head2_b"],
    ]
    layer_inputs = [
        mem_stack,
        params["sa_wv"], params["sa_bv"], params["sa_wo"], params["sa_bo"],
        params["ca_wq"], params["ca_bq"], params["ca_wkv"], params["ca_bkv"],
        params["ca_wo"], params["ca_bo"],
        params["ln1_g"], params["ln1_b"], params["ln2_g"], params["ln2_b"],
        params["ln3_g"], params["ln3_b"],
        params["ff1_w"], params["ff1_b"], params["ff2_w"], params["ff2_b"],
    ]

    out_shapes = (
        jax.ShapeDtypeStruct((b, d), jnp.float32),                       # head slab
        jax.ShapeDtypeStruct((NUM_DECODER_LAYERS, b, d), jnp.float32),   # per-layer inputs
    )
    out_specs = (
        pl.BlockSpec((b, d), lambda l: (0, 0)),
        pl.BlockSpec((1, b, d), lambda l: (l, 0, 0)),
    )

    # advisory cost estimate (matmul flops + transcendentals + operand bytes)
    flops = int(
        2 * b * (4 * (d // 2)) * d
        + NUM_DECODER_LAYERS * (
            2 * b * d * d * 3
            + 2 * b * m_len * d * (2 * d)
            + 2 * b * m_len * d * N_HEAD * 2
            + 2 * b * d * d
            + 2 * b * d * DIM_FF * 2)
        + 2 * b * d * d * 2)
    transcendentals = int(b * (NUM_DECODER_LAYERS * (m_len * N_HEAD + 3) + 2 * d))
    bytes_accessed = int(
        sum(math.prod(a.shape) * jnp.dtype(a.dtype).itemsize for a in fixed_inputs + layer_inputs)
        + sum(math.prod(s.shape) * jnp.dtype(s.dtype).itemsize for s in out_shapes))

    head_out, mem_out = pl.pallas_call(
        functools.partial(_fused_transformer_kernel,
                          n_head=N_HEAD, eps=LN_EPS, n_actions=N_ACTIONS),
        out_shape=out_shapes,
        grid_spec=pltpu.PrefetchScalarGridSpec(
            num_scalar_prefetch=0,
            grid=(NUM_DECODER_LAYERS,),
            in_specs=[_fixed_spec(a) for a in fixed_inputs]
                     + [_layer_spec(a) for a in layer_inputs],
            out_specs=out_specs,
            scratch_shapes=[pltpu.VMEM((b, d), jnp.float32)]),
        compiler_params=pltpu.CompilerParams(
            dimension_semantics=("arbitrary",),
            vmem_limit_bytes=32 * 1024 * 1024),
        cost_estimate=pl.CostEstimate(flops=flops, transcendentals=transcendentals,
                                      bytes_accessed=bytes_accessed),
    )(*fixed_inputs, *layer_inputs)

    log_probs = head_out[:, :N_ACTIONS]                              # Categorical log-probs
    value = head_out[:, N_ACTIONS]
    cur_memory = jnp.transpose(mem_out, (1, 0, 2))[:, None, :, :]    # (B,1,L,D)
    new_memory = jnp.concatenate([memory, cur_memory], axis=1)
    return log_probs, value, new_memory


forward = jax.jit(_forward_impl)


# ================================ deterministic init ==============================
def _init_linear(key, in_dim, out_dim):
    # mimics init_params: N(0,1) rows normalized to unit L2, zero bias
    w = jax.random.normal(key, (out_dim, in_dim), jnp.float32)
    w = w / jnp.sqrt(jnp.sum(w * w, axis=1, keepdims=True))
    return w.T, jnp.zeros((out_dim,), jnp.float32)


def _init_matrix(key, in_dim, out_dim):
    return jax.random.normal(key, (in_dim, out_dim), jnp.float32) * (1.0 / in_dim) ** 0.5


def _row(v):
    return v.reshape(1, -1).astype(jnp.float32)


def make_params(key):
    keys = iter(jax.random.split(key, 64))
    d = IMAGE_EMBED_SIZE
    half = d // 2
    c_in = EMBED_SIZE * 3
    p = {}
    p["object_embed"] = jax.random.normal(next(keys), (OBJECT_VOCAB, EMBED_SIZE), jnp.float32)
    p["color_embed"] = jax.random.normal(next(keys), (COLOR_VOCAB, EMBED_SIZE), jnp.float32)
    p["state_embed"] = jax.random.normal(next(keys), (STATE_VOCAB, EMBED_SIZE), jnp.float32)
    pos = jax.random.normal(next(keys), (RECURRENCE, d), jnp.float32)
    p["pos_row"] = pos[:1]                                           # target seq len is 1

    # conv weights stored pre-reshaped for im2col matmuls, bf16 once (f32 accum at use)
    w1 = jax.random.normal(next(keys), (2, 2, c_in, half), jnp.float32) * (1.0 / (4 * c_in)) ** 0.5
    p["conv1_w"] = w1.reshape(4 * c_in, half).astype(jnp.bfloat16)
    p["conv1_b"] = jnp.zeros((half,), jnp.float32)
    w2 = jax.random.normal(next(keys), (2, 2, half, half), jnp.float32) * (1.0 / (4 * half)) ** 0.5
    p["conv2_w"] = w2.reshape(4 * half, half).astype(jnp.bfloat16)
    p["conv2_b"] = jnp.zeros((half,), jnp.float32)
    w3 = jax.random.normal(next(keys), (2, 2, half, d), jnp.float32) * (1.0 / (4 * half)) ** 0.5
    p["conv3_w"] = w3.reshape(4 * half, d).astype(jnp.bfloat16)
    p["conv3_b"] = jnp.zeros((1, d), jnp.float32)

    # head-indicator matrices for reshape-free multi-head cross-attention
    dh = d // N_HEAD
    e_mat = (jnp.arange(d)[:, None] // dh == jnp.arange(N_HEAD)[None, :]).astype(jnp.float32)
    p["e_mat"] = e_mat
    p["et_mat"] = e_mat.T

    # decoder layers: stacked over layers, matmul weights stored as bf16 once.
    # (sa_wq/sa_wk are unused: with a single query/key token softmax is identically 1.)
    sa_wv, sa_bv, sa_wo, sa_bo = [], [], [], []
    ca_wq, ca_bq, ca_wkv, ca_bkv, ca_wo, ca_bo = [], [], [], [], [], []
    ln_g = {1: [], 2: [], 3: []}
    ln_b = {1: [], 2: [], 3: []}
    ff1_w, ff1_b, ff2_w, ff2_b = [], [], [], []
    for _ in range(NUM_DECODER_LAYERS):
        sa_wv.append(_init_matrix(next(keys), d, d)); sa_bv.append(jnp.zeros((1, d), jnp.float32))
        wo, bo = _init_linear(next(keys), d, d); sa_wo.append(wo); sa_bo.append(_row(bo))
        ca_wq.append(_init_matrix(next(keys), d, d)); ca_bq.append(jnp.zeros((1, d), jnp.float32))
        wk = _init_matrix(next(keys), d, d)
        wv = _init_matrix(next(keys), d, d)
        ca_wkv.append(jnp.concatenate([wk, wv], axis=1))             # fused K|V (D, 2D)
        ca_bkv.append(jnp.zeros((1, 2 * d), jnp.float32))
        wo, bo = _init_linear(next(keys), d, d); ca_wo.append(wo); ca_bo.append(_row(bo))
        for i in (1, 2, 3):
            ln_g[i].append(jnp.ones((1, d), jnp.float32))
            ln_b[i].append(jnp.zeros((1, d), jnp.float32))
        w, bias = _init_linear(next(keys), d, DIM_FF); ff1_w.append(w); ff1_b.append(_row(bias))
        w, bias = _init_linear(next(keys), DIM_FF, d); ff2_w.append(w); ff2_b.append(_row(bias))

    def stack(xs, dtype):
        return jnp.stack(xs).astype(dtype)

    p["sa_wv"] = stack(sa_wv, jnp.bfloat16); p["sa_bv"] = stack(sa_bv, jnp.float32)
    p["sa_wo"] = stack(sa_wo, jnp.bfloat16); p["sa_bo"] = stack(sa_bo, jnp.float32)
    p["ca_wq"] = stack(ca_wq, jnp.bfloat16); p["ca_bq"] = stack(ca_bq, jnp.float32)
    p["ca_wkv"] = stack(ca_wkv, jnp.bfloat16); p["ca_bkv"] = stack(ca_bkv, jnp.float32)
    p["ca_wo"] = stack(ca_wo, jnp.bfloat16); p["ca_bo"] = stack(ca_bo, jnp.float32)
    for i in (1, 2, 3):
        p[f"ln{i}_g"] = stack(ln_g[i], jnp.float32)
        p[f"ln{i}_b"] = stack(ln_b[i], jnp.float32)
    p["ff1_w"] = stack(ff1_w, jnp.bfloat16); p["ff1_b"] = stack(ff1_b, jnp.float32)
    p["ff2_w"] = stack(ff2_w, jnp.bfloat16); p["ff2_b"] = stack(ff2_b, jnp.float32)

    # fused actor/critic heads (f32, tiny): head1 = [actor1 | critic1] -> (D, 128);
    # head2 = block-diag(actor2 (64,7), critic2 (64,1)) zero-padded to (128, 128)
    a1w, a1b = _init_linear(next(keys), d, 64)
    a2w, a2b = _init_linear(next(keys), 64, N_ACTIONS)
    c1w, c1b = _init_linear(next(keys), d, 64)
    c2w, c2b = _init_linear(next(keys), 64, 1)
    p["head1_w"] = jnp.concatenate([a1w, c1w], axis=1)
    p["head1_b"] = jnp.concatenate([a1b, c1b]).reshape(1, -1)
    h2 = jnp.zeros((d, d), jnp.float32)
    h2 = h2.at[:64, :N_ACTIONS].set(a2w)
    h2 = h2.at[64:128, N_ACTIONS:N_ACTIONS + 1].set(c2w)
    p["head2_w"] = h2
    h2b = jnp.zeros((1, d), jnp.float32)
    h2b = h2b.at[0, :N_ACTIONS].set(a2b)
    h2b = h2b.at[0, N_ACTIONS].set(c2b[0])
    p["head2_b"] = h2b
    return p


# ================================ demo ============================================
if __name__ == "__main__":
    key = jax.random.PRNGKey(0)
    pkey, k1, k2, k3, mkey = jax.random.split(key, 5)
    params = make_params(pkey)

    B, M = 2, 4  # batch, #past memory steps
    image = jnp.stack(
        [
            jax.random.randint(k1, (B, 7, 7), 0, OBJECT_VOCAB),
            jax.random.randint(k2, (B, 7, 7), 0, COLOR_VOCAB),
            jax.random.randint(k3, (B, 7, 7), 0, STATE_VOCAB),
        ],
        axis=-1,
    ).astype(jnp.int32)                                              # (B,7,7,3)
    memory = jax.random.normal(mkey, (B, M, NUM_DECODER_LAYERS, IMAGE_EMBED_SIZE), jnp.float32)

    log_probs, value, new_memory = forward(params, image, memory)
    jax.block_until_ready((log_probs, value, new_memory))

    assert log_probs.shape == (B, N_ACTIONS)
    assert value.shape == (B,)
    assert new_memory.shape == (B, M + 1, NUM_DECODER_LAYERS, IMAGE_EMBED_SIZE)
    assert bool(jnp.all(jnp.isfinite(log_probs))) and bool(jnp.all(jnp.isfinite(value)))
    print("KERNEL_OK")
</pallas_src>

<mosaic_0001>
module attributes {stable_mosaic.version = 11 : i64} {
  func.func @_fused_transformer_kernel(%arg0: i32, %arg1: memref<2x256xf32, #tpu.memory_space<vmem>>, %arg2: memref<1x128xf32, #tpu.memory_space<vmem>>, %arg3: memref<256x128xbf16, #tpu.memory_space<vmem>>, %arg4: memref<1x128xf32, #tpu.memory_space<vmem>>, %arg5: memref<128x4xf32, #tpu.memory_space<vmem>>, %arg6: memref<4x128xf32, #tpu.memory_space<vmem>>, %arg7: memref<128x128xf32, #tpu.memory_space<vmem>>, %arg8: memref<1x128xf32, #tpu.memory_space<vmem>>, %arg9: memref<128x128xf32, #tpu.memory_space<vmem>>, %arg10: memref<1x128xf32, #tpu.memory_space<vmem>>, %arg11: memref<1x8x128xf32, #tpu.memory_space<vmem>>, %arg12: memref<1x128x128xbf16, #tpu.memory_space<vmem>>, %arg13: memref<1x1x128xf32, #tpu.memory_space<vmem>>, %arg14: memref<1x128x128xbf16, #tpu.memory_space<vmem>>, %arg15: memref<1x1x128xf32, #tpu.memory_space<vmem>>, %arg16: memref<1x128x128xbf16, #tpu.memory_space<vmem>>, %arg17: memref<1x1x128xf32, #tpu.memory_space<vmem>>, %arg18: memref<1x128x256xbf16, #tpu.memory_space<vmem>>, %arg19: memref<1x1x256xf32, #tpu.memory_space<vmem>>, %arg20: memref<1x128x128xbf16, #tpu.memory_space<vmem>>, %arg21: memref<1x1x128xf32, #tpu.memory_space<vmem>>, %arg22: memref<1x1x128xf32, #tpu.memory_space<vmem>>, %arg23: memref<1x1x128xf32, #tpu.memory_space<vmem>>, %arg24: memref<1x1x128xf32, #tpu.memory_space<vmem>>, %arg25: memref<1x1x128xf32, #tpu.memory_space<vmem>>, %arg26: memref<1x1x128xf32, #tpu.memory_space<vmem>>, %arg27: memref<1x1x128xf32, #tpu.memory_space<vmem>>, %arg28: memref<1x128x2048xbf16, #tpu.memory_space<vmem>>, %arg29: memref<1x1x2048xf32, #tpu.memory_space<vmem>>, %arg30: memref<1x2048x128xbf16, #tpu.memory_space<vmem>>, %arg31: memref<1x1x128xf32, #tpu.memory_space<vmem>>, %arg32: memref<2x128xf32, #tpu.memory_space<vmem>>, %arg33: memref<1x2x128xf32, #tpu.memory_space<vmem>>, %arg34: memref<2x128xf32, #tpu.memory_space<vmem>>) attributes {dimension_semantics = [#tpu.dimension_semantics<arbitrary>], iteration_bounds = array<i64: 2>, scalar_prefetch = 0 : i64, scratch_operands = 1 : i64, tpu.core_type = #tpu.core_type<tc>, window_params = [{pipeline_mode = #tpu.pipeline_mode<synchronous>, transform_indices = @transform_0, window_bounds = array<i64: 2, 256>}, {pipeline_mode = #tpu.pipeline_mode<synchronous>, transform_indices = @transform_1, window_bounds = array<i64: 1, 128>}, {pipeline_mode = #tpu.pipeline_mode<synchronous>, transform_indices = @transform_2, window_bounds = array<i64: 256, 128>}, {pipeline_mode = #tpu.pipeline_mode<synchronous>, transform_indices = @transform_3, window_bounds = array<i64: 1, 128>}, {pipeline_mode = #tpu.pipeline_mode<synchronous>, transform_indices = @transform_4, window_bounds = array<i64: 128, 4>}, {pipeline_mode = #tpu.pipeline_mode<synchronous>, transform_indices = @transform_5, window_bounds = array<i64: 4, 128>}, {pipeline_mode = #tpu.pipeline_mode<synchronous>, transform_indices = @transform_6, window_bounds = array<i64: 128, 128>}, {pipeline_mode = #tpu.pipeline_mode<synchronous>, transform_indices = @transform_7, window_bounds = array<i64: 1, 128>}, {pipeline_mode = #tpu.pipeline_mode<synchronous>, transform_indices = @transform_8, window_bounds = array<i64: 128, 128>}, {pipeline_mode = #tpu.pipeline_mode<synchronous>, transform_indices = @transform_9, window_bounds = array<i64: 1, 128>}, {transform_indices = @transform_10, window_bounds = array<i64: 1, 8, 128>}, {transform_indices = @transform_11, window_bounds = array<i64: 1, 128, 128>}, {transform_indices = @transform_12, window_bounds = array<i64: 1, 1, 128>}, {transform_indices = @transform_13, window_bounds = array<i64: 1, 128, 128>}, {transform_indices = @transform_14, window_bounds = array<i64: 1, 1, 128>}, {transform_indices = @transform_15, window_bounds = array<i64: 1, 128, 128>}, {transform_indices = @transform_16, window_bounds = array<i64: 1, 1, 128>}, {transform_indices = @transform_17, window_bounds = array<i64: 1, 128, 256>}, {transform_indices = @transform_18, window_bounds = array<i64: 1, 1, 256>}, {transform_indices = @transform_19, window_bounds = array<i64: 1, 128, 128>}, {transform_indices = @transform_20, window_bounds = array<i64: 1, 1, 128>}, {transform_indices = @transform_21, window_bounds = array<i64: 1, 1, 128>}, {transform_indices = @transform_22, window_bounds = array<i64: 1, 1, 128>}, {transform_indices = @transform_23, window_bounds = array<i64: 1, 1, 128>}, {transform_indices = @transform_24, window_bounds = array<i64: 1, 1, 128>}, {transform_indices = @transform_25, window_bounds = array<i64: 1, 1, 128>}, {transform_indices = @transform_26, window_bounds = array<i64: 1, 1, 128>}, {transform_indices = @transform_27, window_bounds = array<i64: 1, 128, 2048>}, {transform_indices = @transform_28, window_bounds = array<i64: 1, 1, 2048>}, {transform_indices = @transform_29, window_bounds = array<i64: 1, 2048, 128>}, {transform_indices = @transform_30, window_bounds = array<i64: 1, 1, 128>}, {pipeline_mode = #tpu.pipeline_mode<synchronous>, transform_indices = @transform_31, window_bounds = array<i64: 2, 128>}, {transform_indices = @transform_32, window_bounds = array<i64: 1, 2, 128>}]} {
    %c0_i32 = arith.constant 0 : i32
    %0 = arith.cmpi eq, %arg0, %c0_i32 : i32
    %1 = arith.extui %0 : i1 to i32
    %c0_i32_0 = arith.constant 0 : i32
    %2 = arith.cmpi ne, %1, %c0_i32_0 : i32
    scf.if %2 {
      %c0_103 = arith.constant 0 : index
      %c0_104 = arith.constant 0 : index
      %174 = vector.load %arg1[%c0_103, %c0_104] : memref<2x256xf32, #tpu.memory_space<vmem>>, vector<2x256xf32>
      %c0_105 = arith.constant 0 : index
      %c0_106 = arith.constant 0 : index
      %175 = vector.load %arg3[%c0_105, %c0_106] : memref<256x128xbf16, #tpu.memory_space<vmem>>, vector<256x128xbf16>
      %c0_107 = arith.constant 0 : index
      %c0_108 = arith.constant 0 : index
      %176 = vector.load %arg4[%c0_107, %c0_108] : memref<1x128xf32, #tpu.memory_space<vmem>>, vector<1x128xf32>
      %177 = arith.truncf %174 : vector<2x256xf32> to vector<2x256xbf16>
      %cst_109 = arith.constant dense<0.000000e+00> : vector<2x128xf32>
      %178 = tpu.matmul %177, %175, %cst_109 {dimension_numbers = #tpu.dot_dimension_numbers<[1], [0], [0], [1], [0, 0, 1, 1], [], []>} : vector<2x256xbf16>, vector<256x128xbf16>, vector<2x128xf32> -> vector<2x128xf32>
      %179 = vector.broadcast %176 : vector<1x128xf32> to vector<2x128xf32>
      %180 = arith.addf %178, %179 : vector<2x128xf32>
      %cst_110 = arith.constant 0.000000e+00 : f32
      %181 = vector.broadcast %cst_110 : f32 to vector<2x128xf32>
      %182 = arith.maximumf %180, %181 : vector<2x128xf32>
      %c0_111 = arith.constant 0 : index
      %c0_112 = arith.constant 0 : index
      %183 = vector.load %arg2[%c0_111, %c0_112] : memref<1x128xf32, #tpu.memory_space<vmem>>, vector<1x128xf32>
      %184 = vector.broadcast %183 : vector<1x128xf32> to vector<2x128xf32>
      %185 = arith.addf %182, %184 : vector<2x128xf32>
      %c0_113 = arith.constant 0 : index
      %c0_114 = arith.constant 0 : index
      %186 = vector.load %arg34[%c0_113, %c0_114] : memref<2x128xf32, #tpu.memory_space<vmem>>, vector<2x128xf32>
      tpu.vector_store %arg34[%c0_113, %c0_114], %185 {strides = array<i32>} : memref<2x128xf32, #tpu.memory_space<vmem>>, vector<2x128xf32>,
    } else {
    }
    %c0 = arith.constant 0 : index
    %c0_1 = arith.constant 0 : index
    %3 = vector.load %arg34[%c0, %c0_1] : memref<2x128xf32, #tpu.memory_space<vmem>>, vector<2x128xf32>
    %c0_2 = arith.constant 0 : index
    %c0_3 = arith.constant 0 : index
    %c0_4 = arith.constant 0 : index
    %4 = vector.load %arg33[%c0_2, %c0_3, %c0_4] : memref<1x2x128xf32, #tpu.memory_space<vmem>>, vector<1x2x128xf32>
    %5 = vector.shape_cast %4 : vector<1x2x128xf32> to vector<2x128xf32>
    %6 = vector.shape_cast %3 : vector<2x128xf32> to vector<1x2x128xf32>
    tpu.vector_store %arg33[%c0_2, %c0_3, %c0_4], %6 {strides = array<i32>} : memref<1x2x128xf32, #tpu.memory_space<vmem>>, vector<1x2x128xf32>,
    %c0_5 = arith.constant 0 : index
    %c0_6 = arith.constant 0 : index
    %c0_7 = arith.constant 0 : index
    %7 = vector.load %arg12[%c0_5, %c0_6, %c0_7] : memref<1x128x128xbf16, #tpu.memory_space<vmem>>, vector<1x128x128xbf16>
    %8 = vector.shape_cast %7 : vector<1x128x128xbf16> to vector<128x128xbf16>
    %c0_8 = arith.constant 0 : index
    %c0_9 = arith.constant 0 : index
    %c0_10 = arith.constant 0 : index
    %9 = vector.load %arg13[%c0_8, %c0_9, %c0_10] : memref<1x1x128xf32, #tpu.memory_space<vmem>>, vector<1x1x128xf32>
    %10 = vector.shape_cast %9 : vector<1x1x128xf32> to vector<1x128xf32>
    %11 = arith.truncf %3 : vector<2x128xf32> to vector<2x128xbf16>
    %cst = arith.constant dense<0.000000e+00> : vector<2x128xf32>
    %12 = tpu.matmul %11, %8, %cst {dimension_numbers = #tpu.dot_dimension_numbers<[1], [0], [0], [1], [0, 0, 1, 1], [], []>} : vector<2x128xbf16>, vector<128x128xbf16>, vector<2x128xf32> -> vector<2x128xf32>
    %13 = vector.broadcast %10 : vector<1x128xf32> to vector<2x128xf32>
    %14 = arith.addf %12, %13 : vector<2x128xf32>
    %c0_11 = arith.constant 0 : index
    %c0_12 = arith.constant 0 : index
    %c0_13 = arith.constant 0 : index
    %15 = vector.load %arg14[%c0_11, %c0_12, %c0_13] : memref<1x128x128xbf16, #tpu.memory_space<vmem>>, vector<1x128x128xbf16>
    %16 = vector.shape_cast %15 : vector<1x128x128xbf16> to vector<128x128xbf16>
    %c0_14 = arith.constant 0 : index
    %c0_15 = arith.constant 0 : index
    %c0_16 = arith.constant 0 : index
    %17 = vector.load %arg15[%c0_14, %c0_15, %c0_16] : memref<1x1x128xf32, #tpu.memory_space<vmem>>, vector<1x1x128xf32>
    %18 = vector.shape_cast %17 : vector<1x1x128xf32> to vector<1x128xf32>
    %19 = arith.truncf %14 : vector<2x128xf32> to vector<2x128xbf16>
    %cst_17 = arith.constant dense<0.000000e+00> : vector<2x128xf32>
    %20 = tpu.matmul %19, %16, %cst_17 {dimension_numbers = #tpu.dot_dimension_numbers<[1], [0], [0], [1], [0, 0, 1, 1], [], []>} : vector<2x128xbf16>, vector<128x128xbf16>, vector<2x128xf32> -> vector<2x128xf32>
    %21 = vector.broadcast %18 : vector<1x128xf32> to vector<2x128xf32>
    %22 = arith.addf %20, %21 : vector<2x128xf32>
    %23 = arith.addf %3, %22 : vector<2x128xf32>
    %c0_18 = arith.constant 0 : index
    %c0_19 = arith.constant 0 : index
    %c0_20 = arith.constant 0 : index
    %24 = vector.load %arg22[%c0_18, %c0_19, %c0_20] : memref<1x1x128xf32, #tpu.memory_space<vmem>>, vector<1x1x128xf32>
    %25 = vector.shape_cast %24 : vector<1x1x128xf32> to vector<1x128xf32>
    %c0_21 = arith.constant 0 : index
    %c0_22 = arith.constant 0 : index
    %c0_23 = arith.constant 0 : index
    %26 = vector.load %arg23[%c0_21, %c0_22, %c0_23] : memref<1x1x128xf32, #tpu.memory_space<vmem>>, vector<1x1x128xf32>
    %27 = vector.shape_cast %26 : vector<1x1x128xf32> to vector<1x128xf32>
    %cst_24 = arith.constant dense<0.000000e+00> : vector<2xf32>
    %28 = vector.multi_reduction <add>, %23, %cst_24 [1] : vector<2x128xf32> to vector<2xf32>
    %29 = vector.shape_cast %28 : vector<2xf32> to vector<2x1xf32>
    %cst_25 = arith.constant 1.280000e+02 : f32
    %30 = vector.broadcast %cst_25 : f32 to vector<2x1xf32>
    %31 = arith.divf %29, %30 : vector<2x1xf32>
    %32 = vector.broadcast %31 : vector<2x1xf32> to vector<2x128xf32>
    %33 = arith.subf %23, %32 : vector<2x128xf32>
    %34 = arith.mulf %33, %33 : vector<2x128xf32>
    %cst_26 = arith.constant dense<0.000000e+00> : vector<2xf32>
    %35 = vector.multi_reduction <add>, %34, %cst_26 [1] : vector<2x128xf32> to vector<2xf32>
    %36 = vector.shape_cast %35 : vector<2xf32> to vector<2x1xf32>
    %cst_27 = arith.constant 1.280000e+02 : f32
    %37 = vector.broadcast %cst_27 : f32 to vector<2x1xf32>
    %38 = arith.divf %36, %37 : vector<2x1xf32>
    %cst_28 = arith.constant 9.99999974E-6 : f32
    %39 = vector.broadcast %cst_28 : f32 to vector<2x1xf32>
    %40 = arith.addf %38, %39 : vector<2x1xf32>
    %41 = math.rsqrt %40 : vector<2x1xf32>
    %42 = vector.broadcast %41 : vector<2x1xf32> to vector<2x128xf32>
    %43 = arith.mulf %33, %42 : vector<2x128xf32>
    %44 = vector.broadcast %25 : vector<1x128xf32> to vector<2x128xf32>
    %45 = arith.mulf %43, %44 : vector<2x128xf32>
    %46 = vector.broadcast %27 : vector<1x128xf32> to vector<2x128xf32>
    %47 = arith.addf %45, %46 : vector<2x128xf32>
    %c0_29 = arith.constant 0 : index
    %c0_30 = arith.constant 0 : index
    %c0_31 = arith.constant 0 : index
    %48 = vector.load %arg11[%c0_29, %c0_30, %c0_31] : memref<1x8x128xf32, #tpu.memory_space<vmem>>, vector<1x8x128xf32>
    %49 = vector.shape_cast %48 : vector<1x8x128xf32> to vector<8x128xf32>
    %c0_32 = arith.constant 0 : index
    %c0_33 = arith.constant 0 : index
    %c0_34 = arith.constant 0 : index
    %50 = vector.load %arg16[%c0_32, %c0_33, %c0_34] : memref<1x128x128xbf16, #tpu.memory_space<vmem>>, vector<1x128x128xbf16>
    %51 = vector.shape_cast %50 : vector<1x128x128xbf16> to vector<128x128xbf16>
    %c0_35 = arith.constant 0 : index
    %c0_36 = arith.constant 0 : index
    %c0_37 = arith.constant 0 : index
    %52 = vector.load %arg17[%c0_35, %c0_36, %c0_37] : memref<1x1x128xf32, #tpu.memory_space<vmem>>, vector<1x1x128xf32>
    %53 = vector.shape_cast %52 : vector<1x1x128xf32> to vector<1x128xf32>
    %54 = arith.truncf %47 : vector<2x128xf32> to vector<2x128xbf16>
    %cst_38 = arith.constant dense<0.000000e+00> : vector<2x128xf32>
    %55 = tpu.matmul %54, %51, %cst_38 {dimension_numbers = #tpu.dot_dimension_numbers<[1], [0], [0], [1], [0, 0, 1, 1], [], []>} : vector<2x128xbf16>, vector<128x128xbf16>, vector<2x128xf32> -> vector<2x128xf32>
    %56 = vector.broadcast %53 : vector<1x128xf32> to vector<2x128xf32>
    %57 = arith.addf %55, %56 : vector<2x128xf32>
    %c0_39 = arith.constant 0 : index
    %c0_40 = arith.constant 0 : index
    %c0_41 = arith.constant 0 : index
    %58 = vector.load %arg18[%c0_39, %c0_40, %c0_41] : memref<1x128x256xbf16, #tpu.memory_space<vmem>>, vector<1x128x256xbf16>
    %59 = vector.shape_cast %58 : vector<1x128x256xbf16> to vector<128x256xbf16>
    %c0_42 = arith.constant 0 : index
    %c0_43 = arith.constant 0 : index
    %c0_44 = arith.constant 0 : index
    %60 = vector.load %arg19[%c0_42, %c0_43, %c0_44] : memref<1x1x256xf32, #tpu.memory_space<vmem>>, vector<1x1x256xf32>
    %61 = vector.shape_cast %60 : vector<1x1x256xf32> to vector<1x256xf32>
    %62 = arith.truncf %49 : vector<8x128xf32> to vector<8x128xbf16>
    %cst_45 = arith.constant dense<0.000000e+00> : vector<8x256xf32>
    %63 = tpu.matmul %62, %59, %cst_45 {dimension_numbers = #tpu.dot_dimension_numbers<[1], [0], [0], [1], [0, 0, 1, 1], [], []>} : vector<8x128xbf16>, vector<128x256xbf16>, vector<8x256xf32> -> vector<8x256xf32>
    %64 = vector.broadcast %61 : vector<1x256xf32> to vector<8x256xf32>
    %65 = arith.addf %63, %64 : vector<8x256xf32>
    %66 = vector.extract_strided_slice %65 {offsets = [0, 0], sizes = [8, 128], strides = [1, 1]} : vector<8x256xf32> to vector<8x128xf32>
    %67 = vector.extract_strided_slice %65 {offsets = [0, 128], sizes = [8, 128], strides = [1, 1]} : vector<8x256xf32> to vector<8x128xf32>
    %68 = vector.shape_cast %57 : vector<2x128xf32> to vector<2x1x128xf32>
    %69 = vector.shape_cast %68 : vector<2x1x128xf32> to vector<2x1x128xf32>
    %70 = vector.broadcast %69 : vector<2x1x128xf32> to vector<2x4x128xf32>
    %71 = vector.shape_cast %70 : vector<2x4x128xf32> to vector<8x128xf32>
    %72 = arith.mulf %71, %66 : vector<8x128xf32>
    %cst_46 = arith.constant 0.176776692 : f32
    %73 = vector.broadcast %cst_46 : f32 to vector<8x128xf32>
    %74 = arith.mulf %72, %73 : vector<8x128xf32>
    %c0_47 = arith.constant 0 : index
    %c0_48 = arith.constant 0 : index
    %75 = vector.load %arg5[%c0_47, %c0_48] : memref<128x4xf32, #tpu.memory_space<vmem>>, vector<128x4xf32>
    %cst_49 = arith.constant dense<0.000000e+00> : vector<8x4xf32>
    %76 = tpu.matmul %74, %75, %cst_49 {dimension_numbers = #tpu.dot_dimension_numbers<[1], [0], [0], [1], [0, 0, 1, 1], [], []>} : vector<8x128xf32>, vector<128x4xf32>, vector<8x4xf32> -> vector<8x4xf32>
    %77 = vector.shape_cast %76 : vector<8x4xf32> to vector<2x4x4xf32>
    %cst_50 = arith.constant dense<0xFF800000> : vector<2x4xf32>
    %78 = vector.multi_reduction <maximumf>, %77, %cst_50 [1] : vector<2x4x4xf32> to vector<2x4xf32>
    %79 = vector.shape_cast %78 : vector<2x4xf32> to vector<2x1x4xf32>
    %80 = vector.broadcast %79 : vector<2x1x4xf32> to vector<2x4x4xf32>
    %81 = arith.subf %77, %80 : vector<2x4x4xf32>
    %82 = math.exp %81 : vector<2x4x4xf32>
    %cst_51 = arith.constant dense<0.000000e+00> : vector<2x4xf32>
    %83 = vector.multi_reduction <add>, %82, %cst_51 [1] : vector<2x4x4xf32> to vector<2x4xf32>
    %84 = vector.shape_cast %83 : vector<2x4xf32> to vector<2x1x4xf32>
    %85 = tpu.reciprocal %84 {approx = true} : vector<2x1x4xf32> -> vector<2x1x4xf32>
    %86 = vector.broadcast %85 : vector<2x1x4xf32> to vector<2x4x4xf32>
    %87 = arith.mulf %82, %86 : vector<2x4x4xf32>
    %88 = vector.shape_cast %87 : vector<2x4x4xf32> to vector<8x4xf32>
    %c0_52 = arith.constant 0 : index
    %c0_53 = arith.constant 0 : index
    %89 = vector.load %arg6[%c0_52, %c0_53] : memref<4x128xf32, #tpu.memory_space<vmem>>, vector<4x128xf32>
    %cst_54 = arith.constant dense<0.000000e+00> : vector<8x128xf32>
    %90 = tpu.matmul %88, %89, %cst_54 {dimension_numbers = #tpu.dot_dimension_numbers<[1], [0], [0], [1], [0, 0, 1, 1], [], []>} : vector<8x4xf32>, vector<4x128xf32>, vector<8x128xf32> -> vector<8x128xf32>
    %91 = arith.mulf %90, %67 : vector<8x128xf32>
    %92 = vector.shape_cast %91 : vector<8x128xf32> to vector<2x4x128xf32>
    %cst_55 = arith.constant dense<0.000000e+00> : vector<2x128xf32>
    %93 = vector.multi_reduction <add>, %92, %cst_55 [1] : vector<2x4x128xf32> to vector<2x128xf32>
    %c0_56 = arith.constant 0 : index
    %c0_57 = arith.constant 0 : index
    %c0_58 = arith.constant 0 : index
    %94 = vector.load %arg20[%c0_56, %c0_57, %c0_58] : memref<1x128x128xbf16, #tpu.memory_space<vmem>>, vector<1x128x128xbf16>
    %95 = vector.shape_cast %94 : vector<1x128x128xbf16> to vector<128x128xbf16>
    %c0_59 = arith.constant 0 : index
    %c0_60 = arith.constant 0 : index
    %c0_61 = arith.constant 0 : index
    %96 = vector.load %arg21[%c0_59, %c0_60, %c0_61] : memref<1x1x128xf32, #tpu.memory_space<vmem>>, vector<1x1x128xf32>
    %97 = vector.shape_cast %96 : vector<1x1x128xf32> to vector<1x128xf32>
    %98 = arith.truncf %93 : vector<2x128xf32> to vector<2x128xbf16>
    %cst_62 = arith.constant dense<0.000000e+00> : vector<2x128xf32>
    %99 = tpu.matmul %98, %95, %cst_62 {dimension_numbers = #tpu.dot_dimension_numbers<[1], [0], [0], [1], [0, 0, 1, 1], [], []>} : vector<2x128xbf16>, vector<128x128xbf16>, vector<2x128xf32> -> vector<2x128xf32>
    %100 = vector.broadcast %97 : vector<1x128xf32> to vector<2x128xf32>
    %101 = arith.addf %99, %100 : vector<2x128xf32>
    %102 = arith.addf %47, %101 : vector<2x128xf32>
    %c0_63 = arith.constant 0 : index
    %c0_64 = arith.constant 0 : index
    %c0_65 = arith.constant 0 : index
    %103 = vector.load %arg24[%c0_63, %c0_64, %c0_65] : memref<1x1x128xf32, #tpu.memory_space<vmem>>, vector<1x1x128xf32>
    %104 = vector.shape_cast %103 : vector<1x1x128xf32> to vector<1x128xf32>
    %c0_66 = arith.constant 0 : index
    %c0_67 = arith.constant 0 : index
    %c0_68 = arith.constant 0 : index
    %105 = vector.load %arg25[%c0_66, %c0_67, %c0_68] : memref<1x1x128xf32, #tpu.memory_space<vmem>>, vector<1x1x128xf32>
    %106 = vector.shape_cast %105 : vector<1x1x128xf32> to vector<1x128xf32>
    %cst_69 = arith.constant dense<0.000000e+00> : vector<2xf32>
    %107 = vector.multi_reduction <add>, %102, %cst_69 [1] : vector<2x128xf32> to vector<2xf32>
    %108 = vector.shape_cast %107 : vector<2xf32> to vector<2x1xf32>
    %cst_70 = arith.constant 1.280000e+02 : f32
    %109 = vector.broadcast %cst_70 : f32 to vector<2x1xf32>
    %110 = arith.divf %108, %109 : vector<2x1xf32>
    %111 = vector.broadcast %110 : vector<2x1xf32> to vector<2x128xf32>
    %112 = arith.subf %102, %111 : vector<2x128xf32>
    %113 = arith.mulf %112, %112 : vector<2x128xf32>
    %cst_71 = arith.constant dense<0.000000e+00> : vector<2xf32>
    %114 = vector.multi_reduction <add>, %113, %cst_71 [1] : vector<2x128xf32> to vector<2xf32>
    %115 = vector.shape_cast %114 : vector<2xf32> to vector<2x1xf32>
    %cst_72 = arith.constant 1.280000e+02 : f32
    %116 = vector.broadcast %cst_72 : f32 to vector<2x1xf32>
    %117 = arith.divf %115, %116 : vector<2x1xf32>
    %cst_73 = arith.constant 9.99999974E-6 : f32
    %118 = vector.broadcast %cst_73 : f32 to vector<2x1xf32>
    %119 = arith.addf %117, %118 : vector<2x1xf32>
    %120 = math.rsqrt %119 : vector<2x1xf32>
    %121 = vector.broadcast %120 : vector<2x1xf32> to vector<2x128xf32>
    %122 = arith.mulf %112, %121 : vector<2x128xf32>
    %123 = vector.broadcast %104 : vector<1x128xf32> to vector<2x128xf32>
    %124 = arith.mulf %122, %123 : vector<2x128xf32>
    %125 = vector.broadcast %106 : vector<1x128xf32> to vector<2x128xf32>
    %126 = arith.addf %124, %125 : vector<2x128xf32>
    %c0_74 = arith.constant 0 : index
    %c0_75 = arith.constant 0 : index
    %c0_76 = arith.constant 0 : index
    %127 = vector.load %arg28[%c0_74, %c0_75, %c0_76] : memref<1x128x2048xbf16, #tpu.memory_space<vmem>>, vector<1x128x2048xbf16>
    %128 = vector.shape_cast %127 : vector<1x128x2048xbf16> to vector<128x2048xbf16>
    %c0_77 = arith.constant 0 : index
    %c0_78 = arith.constant 0 : index
    %c0_79 = arith.constant 0 : index
    %129 = vector.load %arg29[%c0_77, %c0_78, %c0_79] : memref<1x1x2048xf32, #tpu.memory_space<vmem>>, vector<1x1x2048xf32>
    %130 = vector.shape_cast %129 : vector<1x1x2048xf32> to vector<1x2048xf32>
    %131 = arith.truncf %126 : vector<2x128xf32> to vector<2x128xbf16>
    %cst_80 = arith.constant dense<0.000000e+00> : vector<2x2048xf32>
    %132 = tpu.matmul %131, %128, %cst_80 {dimension_numbers = #tpu.dot_dimension_numbers<[1], [0], [0], [1], [0, 0, 1, 1], [], []>} : vector<2x128xbf16>, vector<128x2048xbf16>, vector<2x2048xf32> -> vector<2x2048xf32>
    %133 = vector.broadcast %130 : vector<1x2048xf32> to vector<2x2048xf32>
    %134 = arith.addf %132, %133 : vector<2x2048xf32>
    %cst_81 = arith.constant 0.000000e+00 : f32
    %135 = vector.broadcast %cst_81 : f32 to vector<2x2048xf32>
    %136 = arith.maximumf %134, %135 : vector<2x2048xf32>
    %c0_82 = arith.constant 0 : index
    %c0_83 = arith.constant 0 : index
    %c0_84 = arith.constant 0 : index
    %137 = vector.load %arg30[%c0_82, %c0_83, %c0_84] : memref<1x2048x128xbf16, #tpu.memory_space<vmem>>, vector<1x2048x128xbf16>
    %138 = vector.shape_cast %137 : vector<1x2048x128xbf16> to vector<2048x128xbf16>
    %c0_85 = arith.constant 0 : index
    %c0_86 = arith.constant 0 : index
    %c0_87 = arith.constant 0 : index
    %139 = vector.load %arg31[%c0_85, %c0_86, %c0_87] : memref<1x1x128xf32, #tpu.memory_space<vmem>>, vector<1x1x128xf32>
    %140 = vector.shape_cast %139 : vector<1x1x128xf32> to vector<1x128xf32>
    %141 = arith.truncf %136 : vector<2x2048xf32> to vector<2x2048xbf16>
    %cst_88 = arith.constant dense<0.000000e+00> : vector<2x128xf32>
    %142 = tpu.matmul %141, %138, %cst_88 {dimension_numbers = #tpu.dot_dimension_numbers<[1], [0], [0], [1], [0, 0, 1, 1], [], []>} : vector<2x2048xbf16>, vector<2048x128xbf16>, vector<2x128xf32> -> vector<2x128xf32>
    %143 = vector.broadcast %140 : vector<1x128xf32> to vector<2x128xf32>
    %144 = arith.addf %142, %143 : vector<2x128xf32>
    %145 = arith.addf %126, %144 : vector<2x128xf32>
    %c0_89 = arith.constant 0 : index
    %c0_90 = arith.constant 0 : index
    %c0_91 = arith.constant 0 : index
    %146 = vector.load %arg26[%c0_89, %c0_90, %c0_91] : memref<1x1x128xf32, #tpu.memory_space<vmem>>, vector<1x1x128xf32>
    %147 = vector.shape_cast %146 : vector<1x1x128xf32> to vector<1x128xf32>
    %c0_92 = arith.constant 0 : index
    %c0_93 = arith.constant 0 : index
    %c0_94 = arith.constant 0 : index
    %148 = vector.load %arg27[%c0_92, %c0_93, %c0_94] : memref<1x1x128xf32, #tpu.memory_space<vmem>>, vector<1x1x128xf32>
    %149 = vector.shape_cast %148 : vector<1x1x128xf32> to vector<1x128xf32>
    %cst_95 = arith.constant dense<0.000000e+00> : vector<2xf32>
    %150 = vector.multi_reduction <add>, %145, %cst_95 [1] : vector<2x128xf32> to vector<2xf32>
    %151 = vector.shape_cast %150 : vector<2xf32> to vector<2x1xf32>
    %cst_96 = arith.constant 1.280000e+02 : f32
    %152 = vector.broadcast %cst_96 : f32 to vector<2x1xf32>
    %153 = arith.divf %151, %152 : vector<2x1xf32>
    %154 = vector.broadcast %153 : vector<2x1xf32> to vector<2x128xf32>
    %155 = arith.subf %145, %154 : vector<2x128xf32>
    %156 = arith.mulf %155, %155 : vector<2x128xf32>
    %cst_97 = arith.constant dense<0.000000e+00> : vector<2xf32>
    %157 = vector.multi_reduction <add>, %156, %cst_97 [1] : vector<2x128xf32> to vector<2xf32>
    %158 = vector.shape_cast %157 : vector<2xf32> to vector<2x1xf32>
    %cst_98 = arith.constant 1.280000e+02 : f32
    %159 = vector.broadcast %cst_98 : f32 to vector<2x1xf32>
    %160 = arith.divf %158, %159 : vector<2x1xf32>
    %cst_99 = arith.constant 9.99999974E-6 : f32
    %161 = vector.broadcast %cst_99 : f32 to vector<2x1xf32>
    %162 = arith.addf %160, %161 : vector<2x1xf32>
    %163 = math.rsqrt %162 : vector<2x1xf32>
    %164 = vector.broadcast %163 : vector<2x1xf32> to vector<2x128xf32>
    %165 = arith.mulf %155, %164 : vector<2x128xf32>
    %166 = vector.broadcast %147 : vector<1x128xf32> to vector<2x128xf32>
    %167 = arith.mulf %165, %166 : vector<2x128xf32>
    %168 = vector.broadcast %149 : vector<1x128xf32> to vector<2x128xf32>
    %169 = arith.addf %167, %168 : vector<2x128xf32>
    %c0_100 = arith.constant 0 : index
    %c0_101 = arith.constant 0 : index
    %170 = vector.load %arg34[%c0_100, %c0_101] : memref<2x128xf32, #tpu.memory_space<vmem>>, vector<2x128xf32>
    tpu.vector_store %arg34[%c0_100, %c0_101], %169 {strides = array<i32>} : memref<2x128xf32, #tpu.memory_space<vmem>>, vector<2x128xf32>,
    %c1_i32 = arith.constant 1 : i32
    %171 = arith.cmpi eq, %arg0, %c1_i32 : i32
    %172 = arith.extui %171 : i1 to i32
    %c0_i32_102 = arith.constant 0 : i32
    %173 = arith.cmpi ne, %172, %c0_i32_102 : i32
    scf.if %173 {
      %c0_103 = arith.constant 0 : index
      %c0_104 = arith.constant 0 : index
      %174 = vector.load %arg7[%c0_103, %c0_104] : memref<128x128xf32, #tpu.memory_space<vmem>>, vector<128x128xf32>
      %c0_105 = arith.constant 0 : index
      %c0_106 = arith.constant 0 : index
      %175 = vector.load %arg8[%c0_105, %c0_106] : memref<1x128xf32, #tpu.memory_space<vmem>>, vector<1x128xf32>
      %cst_107 = arith.constant dense<0.000000e+00> : vector<2x128xf32>
      %176 = tpu.matmul %169, %174, %cst_107 {dimension_numbers = #tpu.dot_dimension_numbers<[1], [0], [0], [1], [0, 0, 1, 1], [], []>} : vector<2x128xf32>, vector<128x128xf32>, vector<2x128xf32> -> vector<2x128xf32>
      %177 = vector.broadcast %175 : vector<1x128xf32> to vector<2x128xf32>
      %178 = arith.addf %176, %177 : vector<2x128xf32>
      %179 = math.tanh %178 : vector<2x128xf32>
      %c0_108 = arith.constant 0 : index
      %c0_109 = arith.constant 0 : index
      %180 = vector.load %arg9[%c0_108, %c0_109] : memref<128x128xf32, #tpu.memory_space<vmem>>, vector<128x128xf32>
      %c0_110 = arith.constant 0 : index
      %c0_111 = arith.constant 0 : index
      %181 = vector.load %arg10[%c0_110, %c0_111] : memref<1x128xf32, #tpu.memory_space<vmem>>, vector<1x128xf32>
      %cst_112 = arith.constant dense<0.000000e+00> : vector<2x128xf32>
      %182 = tpu.matmul %179, %180, %cst_112 {dimension_numbers = #tpu.dot_dimension_numbers<[1], [0], [0], [1], [0, 0, 1, 1], [], []>} : vector<2x128xf32>, vector<128x128xf32>, vector<2x128xf32> -> vector<2x128xf32>
      %183 = vector.broadcast %181 : vector<1x128xf32> to vector<2x128xf32>
      %184 = arith.addf %182, %183 : vector<2x128xf32>
      %185 = tpu.iota {dimensions = array<i32: 1>} : vector<2x128xi32>
      %c7_i32 = arith.constant 7 : i32
      %186 = vector.broadcast %c7_i32 : i32 to vector<2x128xi32>
      %187 = arith.cmpi slt, %185, %186 : vector<2x128xi32>
      %cst_113 = arith.constant 0xFF800000 : f32
      %188 = vector.broadcast %cst_113 : f32 to vector<2x128xf32>
      %189 = arith.select %187, %184, %188 : vector<2x128xi1>, vector<2x128xf32>
      %cst_114 = arith.constant dense<0xFF800000> : vector<2xf32>
      %190 = vector.multi_reduction <maximumf>, %189, %cst_114 [1] : vector<2x128xf32> to vector<2xf32>
      %191 = vector.shape_cast %190 : vector<2xf32> to vector<2x1xf32>
      %192 = vector.broadcast %191 : vector<2x1xf32> to vector<2x128xf32>
      %193 = arith.subf %184, %192 : vector<2x128xf32>
      %194 = math.exp %193 : vector<2x128xf32>
      %cst_115 = arith.constant 0.000000e+00 : f32
      %195 = vector.broadcast %cst_115 : f32 to vector<2x128xf32>
      %196 = arith.select %187, %194, %195 : vector<2x128xi1>, vector<2x128xf32>
      %cst_116 = arith.constant dense<0.000000e+00> : vector<2xf32>
      %197 = vector.multi_reduction <add>, %196, %cst_116 [1] : vector<2x128xf32> to vector<2xf32>
      %198 = vector.shape_cast %197 : vector<2xf32> to vector<2x1xf32>
      %199 = math.log %198 : vector<2x1xf32>
      %200 = arith.addf %191, %199 : vector<2x1xf32>
      %201 = vector.broadcast %200 : vector<2x1xf32> to vector<2x128xf32>
      %202 = arith.subf %184, %201 : vector<2x128xf32>
      %203 = arith.select %187, %202, %184 : vector<2x128xi1>, vector<2x128xf32>
      %c0_117 = arith.constant 0 : index
      %c0_118 = arith.constant 0 : index
      %204 = vector.load %arg32[%c0_117, %c0_118] : memref<2x128xf32, #tpu.memory_space<vmem>>, vector<2x128xf32>
      tpu.vector_store %arg32[%c0_117, %c0_118], %203 {strides = array<i32>} : memref<2x128xf32, #tpu.memory_space<vmem>>, vector<2x128xf32>,
    } else {
    }
    return
  }
  func.func @transform_0(%arg0: i32) -> (i32, i32) {
    %c0_i32 = arith.constant 0 : i32
    %c0_i32_0 = arith.constant 0 : i32
    %c0_i32_1 = arith.constant 0 : i32
    return %c0_i32, %c0_i32_0 : i32, i32
  }
  func.func @transform_1(%arg0: i32) -> (i32, i32) {
    %c0_i32 = arith.constant 0 : i32
    %c0_i32_0 = arith.constant 0 : i32
    %c0_i32_1 = arith.constant 0 : i32
    return %c0_i32, %c0_i32_0 : i32, i32
  }
  func.func @transform_2(%arg0: i32) -> (i32, i32) {
    %c0_i32 = arith.constant 0 : i32
    %c0_i32_0 = arith.constant 0 : i32
    %c0_i32_1 = arith.constant 0 : i32
    return %c0_i32, %c0_i32_0 : i32, i32
  }
  func.func @transform_3(%arg0: i32) -> (i32, i32) {
    %c0_i32 = arith.constant 0 : i32
    %c0_i32_0 = arith.constant 0 : i32
    %c0_i32_1 = arith.constant 0 : i32
    return %c0_i32, %c0_i32_0 : i32, i32
  }
  func.func @transform_4(%arg0: i32) -> (i32, i32) {
    %c0_i32 = arith.constant 0 : i32
    %c0_i32_0 = arith.constant 0 : i32
    %c0_i32_1 = arith.constant 0 : i32
    return %c0_i32, %c0_i32_0 : i32, i32
  }
  func.func @transform_5(%arg0: i32) -> (i32, i32) {
    %c0_i32 = arith.constant 0 : i32
    %c0_i32_0 = arith.constant 0 : i32
    %c0_i32_1 = arith.constant 0 : i32
    return %c0_i32, %c0_i32_0 : i32, i32
  }
  func.func @transform_6(%arg0: i32) -> (i32, i32) {
    %c0_i32 = arith.constant 0 : i32
    %c0_i32_0 = arith.constant 0 : i32
    %c0_i32_1 = arith.constant 0 : i32
    return %c0_i32, %c0_i32_0 : i32, i32
  }
  func.func @transform_7(%arg0: i32) -> (i32, i32) {
    %c0_i32 = arith.constant 0 : i32
    %c0_i32_0 = arith.constant 0 : i32
    %c0_i32_1 = arith.constant 0 : i32
    return %c0_i32, %c0_i32_0 : i32, i32
  }
  func.func @transform_8(%arg0: i32) -> (i32, i32) {
    %c0_i32 = arith.constant 0 : i32
    %c0_i32_0 = arith.constant 0 : i32
    %c0_i32_1 = arith.constant 0 : i32
    return %c0_i32, %c0_i32_0 : i32, i32
  }
  func.func @transform_9(%arg0: i32) -> (i32, i32) {
    %c0_i32 = arith.constant 0 : i32
    %c0_i32_0 = arith.constant 0 : i32
    %c0_i32_1 = arith.constant 0 : i32
    return %c0_i32, %c0_i32_0 : i32, i32
  }
  func.func @transform_10(%arg0: i32) -> (i32, i32, i32) {
    %c0_i32 = arith.constant 0 : i32
    %c0_i32_0 = arith.constant 0 : i32
    %c0_i32_1 = arith.constant 0 : i32
    return %arg0, %c0_i32, %c0_i32_0 : i32, i32, i32
  }
  func.func @transform_11(%arg0: i32) -> (i32, i32, i32) {
    %c0_i32 = arith.constant 0 : i32
    %c0_i32_0 = arith.constant 0 : i32
    %c0_i32_1 = arith.constant 0 : i32
    return %arg0, %c0_i32, %c0_i32_0 : i32, i32, i32
  }
  func.func @transform_12(%arg0: i32) -> (i32, i32, i32) {
    %c0_i32 = arith.constant 0 : i32
    %c0_i32_0 = arith.constant 0 : i32
    %c0_i32_1 = arith.constant 0 : i32
    return %arg0, %c0_i32, %c0_i32_0 : i32, i32, i32
  }
  func.func @transform_13(%arg0: i32) -> (i32, i32, i32) {
    %c0_i32 = arith.constant 0 : i32
    %c0_i32_0 = arith.constant 0 : i32
    %c0_i32_1 = arith.constant 0 : i32
    return %arg0, %c0_i32, %c0_i32_0 : i32, i32, i32
  }
  func.func @transform_14(%arg0: i32) -> (i32, i32, i32) {
    %c0_i32 = arith.constant 0 : i32
    %c0_i32_0 = arith.constant 0 : i32
    %c0_i32_1 = arith.constant 0 : i32
    return %arg0, %c0_i32, %c0_i32_0 : i32, i32, i32
  }
  func.func @transform_15(%arg0: i32) -> (i32, i32, i32) {
    %c0_i32 = arith.constant 0 : i32
    %c0_i32_0 = arith.constant 0 : i32
    %c0_i32_1 = arith.constant 0 : i32
    return %arg0, %c0_i32, %c0_i32_0 : i32, i32, i32
  }
  func.func @transform_16(%arg0: i32) -> (i32, i32, i32) {
    %c0_i32 = arith.constant 0 : i32
    %c0_i32_0 = arith.constant 0 : i32
    %c0_i32_1 = arith.constant 0 : i32
    return %arg0, %c0_i32, %c0_i32_0 : i32, i32, i32
  }
  func.func @transform_17(%arg0: i32) -> (i32, i32, i32) {
    %c0_i32 = arith.constant 0 : i32
    %c0_i32_0 = arith.constant 0 : i32
    %c0_i32_1 = arith.constant 0 : i32
    return %arg0, %c0_i32, %c0_i32_0 : i32, i32, i32
  }
  func.func @transform_18(%arg0: i32) -> (i32, i32, i32) {
    %c0_i32 = arith.constant 0 : i32
    %c0_i32_0 = arith.constant 0 : i32
    %c0_i32_1 = arith.constant 0 : i32
    return %arg0, %c0_i32, %c0_i32_0 : i32, i32, i32
  }
  func.func @transform_19(%arg0: i32) -> (i32, i32, i32) {
    %c0_i32 = arith.constant 0 : i32
    %c0_i32_0 = arith.constant 0 : i32
    %c0_i32_1 = arith.constant 0 : i32
    return %arg0, %c0_i32, %c0_i32_0 : i32, i32, i32
  }
  func.func @transform_20(%arg0: i32) -> (i32, i32, i32) {
    %c0_i32 = arith.constant 0 : i32
    %c0_i32_0 = arith.constant 0 : i32
    %c0_i32_1 = arith.constant 0 : i32
    return %arg0, %c0_i32, %c0_i32_0 : i32, i32, i32
  }
  func.func @transform_21(%arg0: i32) -> (i32, i32, i32) {
    %c0_i32 = arith.constant 0 : i32
    %c0_i32_0 = arith.constant 0 : i32
    %c0_i32_1 = arith.constant 0 : i32
    return %arg0, %c0_i32, %c0_i32_0 : i32, i32, i32
  }
  func.func @transform_22(%arg0: i32) -> (i32, i32, i32) {
    %c0_i32 = arith.constant 0 : i32
    %c0_i32_0 = arith.constant 0 : i32
    %c0_i32_1 = arith.constant 0 : i32
    return %arg0, %c0_i32, %c0_i32_0 : i32, i32, i32
  }
  func.func @transform_23(%arg0: i32) -> (i32, i32, i32) {
    %c0_i32 = arith.constant 0 : i32
    %c0_i32_0 = arith.constant 0 : i32
    %c0_i32_1 = arith.constant 0 : i32
    return %arg0, %c0_i32, %c0_i32_0 : i32, i32, i32
  }
  func.func @transform_24(%arg0: i32) -> (i32, i32, i32) {
    %c0_i32 = arith.constant 0 : i32
    %c0_i32_0 = arith.constant 0 : i32
    %c0_i32_1 = arith.constant 0 : i32
    return %arg0, %c0_i32, %c0_i32_0 : i32, i32, i32
  }
  func.func @transform_25(%arg0: i32) -> (i32, i32, i32) {
    %c0_i32 = arith.constant 0 : i32
    %c0_i32_0 = arith.constant 0 : i32
    %c0_i32_1 = arith.constant 0 : i32
    return %arg0, %c0_i32, %c0_i32_0 : i32, i32, i32
  }
  func.func @transform_26(%arg0: i32) -> (i32, i32, i32) {
    %c0_i32 = arith.constant 0 : i32
    %c0_i32_0 = arith.constant 0 : i32
    %c0_i32_1 = arith.constant 0 : i32
    return %arg0, %c0_i32, %c0_i32_0 : i32, i32, i32
  }
  func.func @transform_27(%arg0: i32) -> (i32, i32, i32) {
    %c0_i32 = arith.constant 0 : i32
    %c0_i32_0 = arith.constant 0 : i32
    %c0_i32_1 = arith.constant 0 : i32
    return %arg0, %c0_i32, %c0_i32_0 : i32, i32, i32
  }
  func.func @transform_28(%arg0: i32) -> (i32, i32, i32) {
    %c0_i32 = arith.constant 0 : i32
    %c0_i32_0 = arith.constant 0 : i32
    %c0_i32_1 = arith.constant 0 : i32
    return %arg0, %c0_i32, %c0_i32_0 : i32, i32, i32
  }
  func.func @transform_29(%arg0: i32) -> (i32, i32, i32) {
    %c0_i32 = arith.constant 0 : i32
    %c0_i32_0 = arith.constant 0 : i32
    %c0_i32_1 = arith.constant 0 : i32
    return %arg0, %c0_i32, %c0_i32_0 : i32, i32, i32
  }
  func.func @transform_30(%arg0: i32) -> (i32, i32, i32) {
    %c0_i32 = arith.constant 0 : i32
    %c0_i32_0 = arith.constant 0 : i32
    %c0_i32_1 = arith.constant 0 : i32
    return %arg0, %c0_i32, %c0_i32_0 : i32, i32, i32
  }
  func.func @transform_31(%arg0: i32) -> (i32, i32) {
    %c0_i32 = arith.constant 0 : i32
    %c0_i32_0 = arith.constant 0 : i32
    %c0_i32_1 = arith.constant 0 : i32
    return %c0_i32, %c0_i32_0 : i32, i32
  }
  func.func @transform_32(%arg0: i32) -> (i32, i32, i32) {
    %c0_i32 = arith.constant 0 : i32
    %c0_i32_0 = arith.constant 0 : i32
    %c0_i32_1 = arith.constant 0 : i32
    return %arg0, %c0_i32, %c0_i32_0 : i32, i32, i32
  }
}

</mosaic_0001>

<bundles_post_ra>
// kernel: _forward_impl.1
= control target key start
LH: loop header
LB: loop body
LE: loop exit
PB: predicated region body
PF: predicated region fallthrough
CT: control target
= control target key end

     0   :  { %s6745_s6 = smov 1   ;;  %s6746_s10 = smov 2   ;;  %s7750_s0 = inlined_call_operand.smem [shape: u32[33], index: -1, kind: input, shape index: {}] }
   0x1   :  { %s6788_s5 = sld [smem:[%s7750_s0]]   ;;  %s6747_s14 = smov 3  }
   0x2   :  { %s6793_s9 = sld [smem:[%s7750_s0 + %s6745_s6]]   ;;  %s6748_s18 = smov 4  }
   0x3   :  { %s6798_s13 = sld [smem:[%s7750_s0 + %s6746_s10]]   ;;  %s6749_s22 = smov 5  }
   0x4   :  { %s6803_s17 = sld [smem:[%s7750_s0 + %s6747_s14]]   ;;  %s6750_s26 = smov 6  }
   0x5   :  { %s6808_s21 = sld [smem:[%s7750_s0 + %s6748_s18]]   ;;  %s6751_s30 = smov 7  }
   0x6   :  { %s6813_s25 = sld [smem:[%s7750_s0 + %s6749_s22]]   ;;  %s6752_s4 = smov 8  }
   0x7   :  { %7766 = sst [smem:[#allocation6_spill]] %s6788_s5  ;;  %s6753_s10 = smov 9  }
   0x8   :  { %7767 = sst [smem:[#allocation7_spill]] %s6793_s9  ;;  %s6754_s15 = smov 10  }
   0x9   :  { %7768 = sst [smem:[#allocation8_spill]] %s6798_s13  ;;  %s6755_s20 = smov 11  }
   0xa   :  { %7769 = sst [smem:[#allocation9_spill]] %s6803_s17  ;;  %s6757_s1 = smov 13  }
   0xb   :  { %7770 = sst [smem:[#allocation10_spill]] %s6808_s21  ;;  %s6758_s7 = smov 14  }
   0xc   :  { %7771 = sst [smem:[#allocation11_spill]] %s6813_s25  ;;  %s6760_s22 = smov 16  }
   0xd   :  { %s6818_s29 = sld [smem:[%s7750_s0 + %s6750_s26]]   ;;  %s6756_s26 = smov 12  }
   0xe   :  { %s6823_s3 = sld [smem:[%s7750_s0 + %s6751_s30]]   ;;  %s6761_s28 = smov 17  }
   0xf   :  { %s6828_s8 = sld [smem:[%s7750_s0 + %s6752_s4]]  }
  0x10   :  { %s6833_s14 = sld [smem:[%s7750_s0 + %s6753_s10]]  }
  0x11   :  { %s6838_s19 = sld [smem:[%s7750_s0 + %s6754_s15]]   ;;  %s6759_s15 = smov 15  }
  0x12   :  { %s6843_s24 = sld [smem:[%s7750_s0 + %s6755_s20]]  }
  0x13   :  { %7772 = sst [smem:[#allocation12_spill]] %s6818_s29 }
  0x14   :  { %7773 = sst [smem:[#allocation13_spill]] %s6823_s3 }
  0x15   :  { %7774 = sst [smem:[#allocation14_spill]] %s6828_s8 }
  0x16   :  { %7775 = sst [smem:[#allocation15_spill]] %s6833_s14 }
  0x17   :  { %7776 = sst [smem:[#allocation16_spill]] %s6838_s19 }
  0x18   :  { %7777 = sst [smem:[#allocation17_spill]] %s6843_s24 }
  0x19   :  { %s6848_s30 = sld [smem:[%s7750_s0 + %s6756_s26]]  }
  0x1a   :  { %s6853_s6 = sld [smem:[%s7750_s0 + %s6757_s1]]  }
  0x1b   :  { %s6858_s12 = sld [smem:[%s7750_s0 + %s6758_s7]]   ;;  %s6762_s7 = smov 18  }
  0x1c   :  { %s6863_s20 = sld [smem:[%s7750_s0 + %s6759_s15]]   ;;  %s6763_s15 = smov 19  }
  0x1d   :  { %s6868_s27 = sld [smem:[%s7750_s0 + %s6760_s22]]   ;;  %s6764_s22 = smov 20  }
  0x1e   :  { %s6873_s4 = sld [smem:[%s7750_s0 + %s6761_s28]]   ;;  %s6765_s28 = smov 21  }
  0x1f   :  { %7778 = sst [smem:[#allocation18_spill]] %s6848_s30 }
  0x20   :  { %7779 = sst [smem:[#allocation19_spill]] %s6853_s6 }
  0x21   :  { %7780 = sst [smem:[#allocation20_spill]] %s6858_s12 }
  0x22   :  { %7781 = sst [smem:[#allocation21_spill]] %s6863_s20 }
  0x23   :  { %7782 = sst [smem:[#allocation22_spill]] %s6868_s27 }
  0x24   :  { %7783 = sst [smem:[#allocation23_spill]] %s6873_s4 }
  0x25   :  { %s6878_s14 = sld [smem:[%s7750_s0 + %s6762_s7]]   ;;  %s6766_s7 = smov 22  }
  0x26   :  { %s6883_s3 = sld [smem:[%s7750_s0 + %s6763_s15]]   ;;  %s6767_s15 = smov 23  }
  0x27   :  { %s6888_s8 = sld [smem:[%s7750_s0 + %s6764_s22]]   ;;  %s6768_s22 = smov 24  }
  0x28   :  { %s6893_s29 = sld [smem:[%s7750_s0 + %s6765_s28]]   ;;  %s6769_s28 = smov 25  }
  0x29   :  { %s6898_s25 = sld [smem:[%s7750_s0 + %s6766_s7]]   ;;  %s6770_s7 = smov 26  }
  0x2a   :  { %s6903_s21 = sld [smem:[%s7750_s0 + %s6767_s15]]   ;;  %s6771_s15 = smov 27  }
  0x2b   :  { %7784 = sst [smem:[#allocation24_spill]] %s6878_s14 }
  0x2c   :  { %7785 = sst [smem:[#allocation25_spill]] %s6883_s3 }
  0x2d   :  { %s6908_s9 = sld [smem:[%s7750_s0 + %s6768_s22]]   ;;  %s6772_s22 = smov 28  }
  0x2e   :  { %s6913_s17 = sld [smem:[%s7750_s0 + %s6769_s28]]   ;;  %s6773_s28 = smov 29  }
  0x2f   :  { %s6918_s5 = sld [smem:[%s7750_s0 + %s6770_s7]]   ;;  %s6774_s7 = smov 30  }
  0x30   :  { %s6923_s13 = sld [smem:[%s7750_s0 + %s6771_s15]]   ;;  %s6775_s15 = smov 31  }
  0x33   :  { %7786 = sst [smem:[#allocation26_spill]] %s6908_s9 }
  0x34   :  { %7787 = sst [smem:[#allocation27_spill]] %s6913_s17 }
  0x35   :  { %7788 = sst [smem:[#allocation28_spill]] %s6918_s5 }
  0x36   :  { %7789 = sst [smem:[#allocation29_spill]] %s6923_s13 }
  0x37   :  { %s6928_s9 = sld [smem:[%s7750_s0 + %s6772_s22]]   ;;  %s6776_s22 = smov 32  }
  0x38   :  { %s6933_s17 = sld [smem:[%s7750_s0 + %s6773_s28]]  }
  0x39   :  { %s6938_s5 = sld [smem:[%s7750_s0 + %s6774_s7]]  }
  0x3a   :  { %s6943_s13 = sld [smem:[%s7750_s0 + %s6775_s15]]  }
  0x3d   :  { %7790 = sst [smem:[#allocation30_spill]] %s6928_s9 }
  0x3e   :  { %7791 = sst [smem:[#allocation31_spill]] %s6933_s17 }
  0x3f   :  { %7792 = sst [smem:[#allocation32_spill]] %s6938_s5 }
  0x40   :  { %7793 = sst [smem:[#allocation33_spill]] %s6943_s13 }
  0x41   :  { %s6948_s9 = sld [smem:[%s7750_s0 + %s6776_s22]]  }
  0x47   :  { %7794 = sst [smem:[#allocation34_spill]] %s6948_s9 }
  0x48   :  { %71 = vsyncpa [#allocation4], 0 }
  0x49   :  { %73 = vsyncpa [#allocation4 + $0x1], 0  ;;  %s6950_s28 = smov 0   ;;  %s6952_s1 = smov 0  }
  0x4a   :  { %s6954_s2 = smov 0   ;;  %s6956_s7 = smov 0  }
  0x4b LB: > { %s7795_s17 = sld [smem:[#allocation31_spill]]  ;;  %s6969_s0 = sadd.s32 4294967295, %s6743_s7   ;;  %s6731_s28 = sphi %s6950_s28, %s7860_s28   ;;  %s6743_s7 = sphi %s6956_s7, %s7859_s7   ;;  %s6739_s2 = sphi %s6954_s2, %s7862_s2   ;;  %s6735_s1 = sphi %s6952_s1, %s7861_s1  }
  0x4c   : > { %7796 = sst [smem:[#allocation35_spill]] %s6735_s1  ;;  %s6972_s10 = sadd.s32 1, %s6743_s7  }
  0x4d   : > { %7797 = sst [smem:[#allocation36_spill]] %s6739_s2  ;;  %s787_s11 = ssub.s32 %s6743_s7, %s6972_s10 }
  0x4e   : > { %7798 = sst [smem:[#allocation37_spill]] %s6969_s0  ;;  %s790_s15 = sadd.s32 1, %s6739_s2 }
  0x4f   : > { %7799 = sst [smem:[#allocation38_spill]] %s6972_s10  ;;  %p788_p0 = scmp.eq.s32.totalorder %s787_s11, 0 }
  0x50   : > { %p797_p1 = scmp.ne.s32.totalorder %s6739_s2, %s6735_s1  ;;  %p798_p2 = scmp.eq.s32.totalorder %s6743_s7, 0 }
  0x51   : > { %p803_p3 = scmp.ne.s32.totalorder %s6735_s1, %s6731_s28  ;;  %p804_p5 = scmp.eq.s32.totalorder %s6969_s0, 0 }
  0x52   : > { %s6982_s16 = scalar_select %p788_p0, %s6739_s2, %s790_s15  }
  0x53   : > { %p6984_p4 = por %p798_p2, %p797_p1  ;;  %p6574_p6 = scmp.lt.s32.totalorder %s6743_s7, 2 }
  0x54   : > { %7800 = sst [smem:[#allocation39_spill]] %s6982_s16  ;;  %p6990_p7 = por %p804_p5, %p803_p3 }
  0x55   : > { %s1059_s23 = sand.u32 1, %s6739_s2   ;;  %s6241_s11 = sshll.u32 %s6743_s7, 10 }
  0x56   : > { %s4934_s26 = sshll.u32 %s1059_s23, 10  ;;  %s1068_s10 = scalar_lea.hbm %s7795_s17, %s6241_s11 }
  0x57   : > { %s1063_s28 = scalar_lea.vmem [#allocation3], %s4934_s26  ;;  %s1069_s16 = sshll.u32 %s1068_s10, 4  ;;  %s1070_s16 = int_to_ptr.hbm [resolvable:$true] %s1069_s16 }
  0x58   : > { %s1071_s15 = sshll.u32 %s1063_s28, 4  ;;  %p6999_p8 = pnand %p6574_p6, %p6984_p4  ;;  %s1072_s15 = int_to_ptr.vmem [resolvable:$true] %s1071_s15 }
  0x59   : > { %p4937_p9 = scmp.ge.s32.totalorder %s6743_s7, 1  ;;  %s1060_s9 = scalar_lea.sflag [#allocation4], %s1059_s23 }
  0x5a   : > { %s6679_s5 = sshra.s32 %s1070_s16, 4  ;;  %p6683_p11 = pneg %p6999_p8  ;;  %s6680_s5 = int_to_ptr.hbm [resolvable:$true] %s6679_s5 }
  0x5b   : > { %s6681_s2 = scalar_lea.hbm %s6680_s5, 1024  ;;  %s6686_s26 = scalar_lea.hbm %s7795_s17, 2048 }
  0x5c   : > { %p6682_p10 = scmp.ne.s32.totalorder %s6680_s5, %s6681_s2  ;;  %p6687_p0 = scmp.lt.s32.totalorder %s6680_s5, %s7795_s17 }
  0x5d   : > { %p6688_p1 = scmp.lt.s32.totalorder %s6686_s26, %s6681_s2 }
  0x5e   : > { %p6684_p12 = pnand %p6683_p11, %p6682_p10 }
  0x5f   : > { %p6689_p2 = por %p6688_p1, %p6687_p0 }
  0x60   : > { %p6685_p13 = pneg %p6684_p12 }
  0x62   : > { %p6690_p3 = pnand %p6689_p2, %p6685_p13 }
  0x64   : > { %6693 = shalt.err (!%p6690_p3)
}
  0x65   : > { %s6777_s10 = smov 64   ;;  %s6778_s18 = smov 4  }
  0x66   : > { %6573 = dma.hbm_to_vmem [thread:$0]  (!%p6999_p8), %s1070_s16, 16384, %s1072_s15, %s1060_s9, %s6777_s10, %s6777_s10, %s6778_s18  }
  0x67   : > { %p1085_p4 = scmp.lt.s32.totalorder %s6743_s7, 3 }
  0x69   : > { %p1086_p5 = pnand %p4937_p9, %p1085_p4 }
  0x6b   : > { %1089 = sbr.rel (%p1086_p5) target bundleno = 2955 (0xb8b), region = 144 }
  0x70   : > { %s1091_s23 = sand.u32 1, %s6735_s1  }
  0x71   : > { %s4938_s11 = sshll.u32 %s1091_s23, 10  ;;  %s1092_s5 = scalar_lea.sflag [#allocation4], %s1091_s23 }
  0x72   : > { %s7014_s2 = scalar_lea.vmem [#allocation3], %s4938_s11 }
  0x73   : > { %7804 = sst [smem:[#allocation40_spill]] %s7014_s2 }
  0x74   : > { %6726 = dma.done.wait (%p6990_p7), %s1092_s5, 16384  }
  0x75   : > { %6728 = vsyncadd (%p6990_p7), %s1092_s5, 4294950912  ;;  %s7805_s19 = sld [smem:[#allocation16_spill]]  ;;  %p1251_p6 = scmp.lt.s32.totalorder %s6969_s0, 1 }
  0x76   : > { %s7806_s24 = sld [smem:[#allocation17_spill]] }
  0x77   : > { %s7808_s6 = sld [smem:[#allocation19_spill]] }
  0x78   : > { %s7810_s20 = sld [smem:[#allocation21_spill]] }
  0x79   : > { %s7812_s4 = sld [smem:[#allocation23_spill]] }
  0x7a   : > { %s7813_s14 = sld [smem:[#allocation24_spill]] }
  0x7b   : > { %s7814_s3 = sld [smem:[#allocation25_spill]] }
  0x7c   : > { %s7022_s9 = scalar_select %p1251_p6, %s6969_s0, 1 }
  0x7d   : > { %s7816_s22 = sld [smem:[#allocation26_spill]] }
  0x7e   : > { %s4939_s13 = sshll.u32 %s7022_s9, 3  ;;  %s6242_s7 = sshll.u32 %s7022_s9, 6 }
  0x7f   : > { %s7027_s16 = scalar_lea.vmem %s7805_s19, %s4939_s13  ;;  %s7030_s28 = scalar_lea.vmem %s7806_s24, %s6242_s7 }
  0x80   : > { %7815 = sst [smem:[#allocation41_spill]] %s7027_s16  ;;  %s7035_s18 = scalar_lea.vmem %s7808_s6, %s6242_s7 }
  0x81   : > { %7817 = sst [smem:[#allocation42_spill]] %s7030_s28  ;;  %s7040_s5 = scalar_lea.vmem %s7810_s20, %s6242_s7 }
  0x82   : > { %s7818_s15 = sld [smem:[#allocation27_spill]]  ;;  %s6245_s19 = sshll.u32 %s7022_s9, 7 }
  0x83   : > { %s7819_s10 = sld [smem:[#allocation28_spill]]  ;;  %s7046_s24 = scalar_lea.vmem %s7812_s4, %s6245_s19 }
  0x84   : > { %7820 = sst [smem:[#allocation43_spill]] %s7035_s18  ;;  %s4948_s16 = sshll.u32 %s7022_s9, 1 }
  0x85   : > { %s7821_s11 = sld [smem:[#allocation29_spill]]  ;;  %s7050_s26 = scalar_lea.vmem %s7813_s14, %s4948_s16 }
  0x86   : > { %7822 = sst [smem:[#allocation44_spill]] %s7040_s5  ;;  %s7053_s30 = scalar_lea.vmem %s7814_s3, %s6242_s7 }
  0x87   : > { %s7823_s13 = sld [smem:[#allocation30_spill]]  ;;  %s1295_s6 = scalar_lea.vmem %s6888_s8, %s7022_s9 }
  0x88   : > { %s7824_s1 = sld [smem:[#allocation32_spill]]  ;;  %s1298_s18 = scalar_lea.vmem %s6893_s29, %s7022_s9 }
  0x89   : > { %7825 = sst [smem:[#allocation45_spill]] %s7046_s24  ;;  %s1301_s23 = scalar_lea.vmem %s6898_s25, %s7022_s9 }
  0x8a   : > { %s7826_s2 = sld [smem:[#allocation34_spill]]  ;;  %s1307_s20 = scalar_lea.vmem %s7816_s22, %s7022_s9 }
  0x8b   : > { %s1310_s5 = scalar_lea.vmem %s7818_s15, %s7022_s9  ;;  %s1313_s28 = scalar_lea.vmem %s7819_s10, %s7022_s9 }
  0x8c   : > { %s6247_s17 = sshll.u32 %s7022_s9, 10  ;;  %s4953_s0 = sshll.u32 %s7022_s9, 4 }
  0x8d   : > { %s7071_s27 = scalar_lea.vmem %s7821_s11, %s6247_s17  ;;  %s7075_s4 = scalar_lea.vmem %s7823_s13, %s4953_s0 }
  0x8e   : > { %s1325_s19 = scalar_lea.vmem %s7824_s1, %s7022_s9  ;;  %s7827_s14 = sld [smem:[#allocation37_spill]] }
  0x90   : > { %s7080_s24 = scalar_lea.vmem %s7826_s2, %s4948_s16 }
  0x94   : > { %p4955_p7 = scmp.ne.s32.totalorder %s7827_s14, 0 }
  0x95   : > { %s7828_s7 = sld [smem:[#allocation8_spill]] (!%p4955_p7) }
  0x96   : > { %1333 = sbr.rel (%p4955_p7) target bundleno = 322 (0x142), region = 152  ;;  %s7830_s12 = sld [smem:[#allocation6_spill]] (!%p4955_p7) }
  0x97   : > { %s7831_s17 = sld [smem:[#allocation9_spill]] (!%p4955_p7) }
  0x98   : > { %s7832_s14 = sld [smem:[#allocation7_spill]] (!%p4955_p7) }
  0x9b   : > { %s7829_s3 = smov %s7828_s7  ;;  %v6255_v0 = vld [vmem:[%s7828_s7 + $0x38] sm:$0xff] }
  0x9c   : > { %v6263_v1 = vld [vmem:[%s7829_s3 + $0x78] sm:$0xff]  ;;  %1475 = vmatpush.bf16.msra.mxu0 %v6255_v0  ;;  %v6254_v2 = vld [vmem:[%s7829_s3 + $0x30] sm:$0xff]  ;;  %v1334_v4 = vld [vmem:[%s7830_s12] sm:$0xf] }
  0x9d   : > { %1488 = vmatpush.bf16.msra.mxu1 %v6263_v1  ;;  %v6262_v3 = vld [vmem:[%s7829_s3 + $0x70] sm:$0xff]  ;;  %v6253_v5 = vld [vmem:[%s7829_s3 + $0x28] sm:$0xff]  ;;  %1369 = vst [vmem:[#allocation1] ss:$4 sm:$0xff] %v1334_v4  ;;  %v6252_v7 = vld [vmem:[%s7829_s3 + $0x20] sm:$0xff] }
  0x9e   : > { %v6261_v6 = vld [vmem:[%s7829_s3 + $0x68] sm:$0xff]  ;;  %v6260_v8 = vld [vmem:[%s7829_s3 + $0x60] sm:$0xff]  ;;  %v6251_v9 = vld [vmem:[%s7829_s3 + $0x18] sm:$0xff] }
  0x9f   : > { %v6259_v10 = vld [vmem:[%s7829_s3 + $0x58] sm:$0xff]  ;;  %v6250_v11 = vld [vmem:[%s7829_s3 + $0x10] sm:$0xff]  ;;  %v6249_v13 = vld [vmem:[%s7829_s3 + $0x8] sm:$0xff] }
  0xa0   : > { %1476 = vmatpush.bf16.msra.mxu0 %v6254_v2  ;;  %v6258_v12 = vld [vmem:[%s7829_s3 + $0x50] sm:$0xff]  ;;  %v6257_v14 = vld [vmem:[%s7829_s3 + $0x48] sm:$0xff]  ;;  %v6248_v15 = vld [vmem:[%s7829_s3] sm:$0xff] }
  0xa1   : > { %1489 = vmatpush.bf16.msra.mxu1 %v6262_v3  ;;  %v6256_v16 = vld [vmem:[%s7829_s3 + $0x40] sm:$0xff] }
  0xa2   : > { %v6642_v21 = vld [vmem:[%s7831_s17] ss:$0 sm:$0xff] }
  0xa3   : > { %v6643_v26 = vld [vmem:[%s7832_s14] ss:$0 sm:$0xff] }
  0xa4   : > { %1477 = vmatpush.bf16.msra.mxu0 %v6253_v5  ;;  %v1370_v17 = vld.sshfl [vmem:[#allocation1] sm:$0xff pattern:$0x73625140]  ;;  %v1371_v18 = vld.sshfl [vmem:[#allocation1 + $0x8] sm:$0xff pattern:$0x73625140] }
  0xa5   : > { %1490 = vmatpush.bf16.msra.mxu1 %v6261_v6  ;;  %v1374_v19 = vpack.c.bf16 %v1370_v17, %v1370_v17  ;;  %v1375_v20 = vpack.c.bf16 %v1371_v18, %v1371_v18 }
  0xa8   : > { %1478 = vmatpush.bf16.msra.mxu0 %v6252_v7 }
  0xa9   : > { %1491 = vmatpush.bf16.msra.mxu1 %v6260_v8 }
  0xac   : > { %1479 = vmatpush.bf16.msra.mxu0 %v6251_v9 }
  0xad   : > { %1492 = vmatpush.bf16.msra.mxu1 %v6259_v10 }
  0xb0   : > { %1480 = vmatpush.bf16.msra.mxu0 %v6250_v11 }
  0xb1   : > { %1493 = vmatpush.bf16.msra.mxu1 %v6258_v12 }
  0xb4   : > { %1481 = vmatpush.bf16.msra.mxu0 %v6249_v13 }
  0xb5   : > { %1494 = vmatpush.bf16.msra.mxu1 %v6257_v14 }
  0xb8   : > { %1482 = vmatpush.bf16.msra.mxu0 %v6248_v15 }
  0xb9   : > { %1495 = vmatpush.bf16.msra.mxu1 %v6256_v16 }
  0xbb   : > { %1483 = vmatmul.bf16.vlgmr.msra.gmra.mxu0 %v1374_v19 }
  0xbc   : > { %1496 = vmatmul.bf16.vlgmr.msra.gmra.mxu1 %v1375_v20 }
 0x138   : > { %v1484_v22 = vpop.f32.mrf.mxu0 }
 0x139   : > { %v1497_v23 = vpop.f32.mrf.mxu1  ;;  %v1485_v24 = vadd.f32 %v6642_v21, %v1484_v22 }
 0x13b   : > { %v1498_v25 = vadd.f32 %v1497_v23, %v1485_v24 }
 0x13d   : > { %v1501_v27 = vmax.f32 %v1498_v25, 0.0 }
 0x13f   : > { %v1506_v28 = vadd.f32 %v6643_v26, %v1501_v27 }
 0x140   : > { %v1486_v29 = vpop.f32.mrf.mxu0 }
 0x141   : > { %v1499_v30 = vpop.f32.mrf.mxu1  ;;  %1507 = vst [vmem:[#allocation2] sm:$0x3] %v1506_v28 }
 0x142 PF: > { %s7833_s12 = sld [smem:[#allocation42_spill]]  ;;  %vm1677_vm0 = vcmask 1041408   ;;  %v6779_v60 = vmov 128.0   ;;  %vm1986_vm5 = vcmask 27648   ;;  %vm2035_vm6 = vcmask 1043456  }
 0x143   : > { %s7834_s1 = sld [smem:[#allocation43_spill]]  ;;  %6655 = vrcp.f32 %v6779_v60  ;;  %vm2032_vm7 = vcmask 31744   ;;  %vm2103_vm8 = vcmask 1041409  }
 0x144   : > { %s7836_s0 = sld [smem:[#allocation20_spill]] }
 0x145   : > { %s7838_s16 = sld [smem:[#allocation45_spill]] }
 0x146   : > { %s7840_s15 = sld [smem:[#allocation44_spill]] }
 0x147   : > { %s7841_s10 = sld [smem:[#allocation41_spill]] }
 0x148   : > { %v6271_v31 = vld [vmem:[%s7833_s12 + $0x38] sm:$0xff]  ;;  %v6270_v32 = vld [vmem:[%s7833_s12 + $0x30] sm:$0xff]  ;;  %v1508_v33 = vld [vmem:[#allocation2] sm:$0x3]  ;;  %s7842_s11 = sld [smem:[#allocation10_spill]] }
 0x149   : > { %1579 = vmatpush.bf16.msra.mxu0 %v6271_v31  ;;  %1509 = vst [vmem:[%s7080_s24] sm:$0x3] %v1508_v33  ;;  %v6279_v34 = vld [vmem:[%s7834_s1 + $0x38] sm:$0xff]  ;;  %v6269_v35 = vld [vmem:[%s7833_s12 + $0x28] sm:$0xff]  ;;  %v6278_v36 = vld [vmem:[%s7834_s1 + $0x30] sm:$0xff]  ;;  %s7835_s24 = sld [smem:[#allocation18_spill]]  ;;  %v1527_v47 = vpack.c.bf16 %v1508_v33, %v1508_v33  ;;  %v6656_v3 = vpop.eup %6655 }
 0x14a   : > { %1661 = vmatpush.bf16.msra.mxu1 %v6279_v34  ;;  %v6277_v37 = vld [vmem:[%s7834_s1 + $0x28] sm:$0xff]  ;;  %v6268_v38 = vld [vmem:[%s7833_s12 + $0x20] sm:$0xff]  ;;  %v6267_v40 = vld [vmem:[%s7833_s12 + $0x18] sm:$0xff]  ;;  %s7839_s22 = scalar_lea.vmem %s7836_s0, %s7022_s9  ;;  %v1682_v5 = vmul.f32 128.0, %v6656_v3  ;;  %vm1686_vm1 = vweird.f32 %v6656_v3 }
 0x14b   : > { %v6276_v39 = vld [vmem:[%s7834_s1 + $0x20] sm:$0xff]  ;;  %v6275_v41 = vld [vmem:[%s7834_s1 + $0x18] sm:$0xff]  ;;  %v6266_v42 = vld [vmem:[%s7833_s12 + $0x10] sm:$0xff] }
 0x14c   : > { %v6274_v43 = vld [vmem:[%s7834_s1 + $0x10] sm:$0xff]  ;;  %v6265_v44 = vld [vmem:[%s7833_s12 + $0x8] sm:$0xff]  ;;  %v6264_v46 = vld [vmem:[%s7833_s12] sm:$0xff]  ;;  %v1683_v6 = vsub.f32 1.0, %v1682_v5 }
 0x14d   : > { %1580 = vmatpush.bf16.msra.mxu0 %v6270_v32  ;;  %v6273_v45 = vld [vmem:[%s7834_s1 + $0x8] sm:$0xff]  ;;  %v6272_v48 = vld [vmem:[%s7834_s1] sm:$0xff]  ;;  %v5174_v61 = vld [vmem:[%s7838_s16 + $0x70] sm:$0xf] }
 0x14e   : > { %1662 = vmatpush.bf16.msra.mxu1 %v6278_v36  ;;  %v6645_v54 = vld [vmem:[%s7839_s22] ss:$0 sm:$0xff]  ;;  %v6303_v62 = vld [vmem:[%s7838_s16 + $0x74] sm:$0xf0]  ;;  %v6301_v1 = vld [vmem:[%s7838_s16 + $0x64] sm:$0xf0]  ;;  %v1684_v7 = vmul.f32 %v6656_v3, %v1683_v6 }
 0x14f   : > { %s7837_s2 = scalar_lea.vmem %s7835_s24, %s7022_s9  ;;  %v5166_v63 = vld [vmem:[%s7838_s16 + $0x60] sm:$0xf]  ;;  %v5175_v0 = vor.u32 %v6303_v62, %v5174_v61  ;;  %v6287_v2 = vld [vmem:[%s7840_s15 + $0x38] sm:$0xff]  ;;  %v5158_v15 = vld [vmem:[%s7838_s16 + $0x50] sm:$0xf] }
 0x150   : > { %v6644_v49 = vld [vmem:[%s7837_s2] ss:$0 sm:$0xff]  ;;  %v5167_v4 = vor.u32 %v6301_v1, %v5166_v63  ;;  %1785 = vmatpush.bf16.msra.mxu2 %v6287_v2  ;;  %v1685_v8 = vadd.f32 %v6656_v3, %v1684_v7  ;;  %v6299_v16 = vld [vmem:[%s7838_s16 + $0x54] sm:$0xf0]  ;;  %v6286_v18 = vld [vmem:[%s7840_s15 + $0x30] sm:$0xff] }
 0x151   : > { %1581 = vmatpush.bf16.msra.mxu0 %v6269_v35  ;;  %1901 = vmatpush.bf16.msra.mxu3 %v5175_v0  ;;  %v5159_v17 = vor.u32 %v6299_v16, %v5158_v15  ;;  %v5150_v19 = vld [vmem:[%s7838_s16 + $0x40] sm:$0xf]  ;;  %v6297_v20 = vld [vmem:[%s7838_s16 + $0x44] sm:$0xf0]  ;;  %v5142_v23 = vld [vmem:[%s7838_s16 + $0x30] sm:$0xf] }
 0x152   : > { %1663 = vmatpush.bf16.msra.mxu1 %v6277_v37  ;;  %v7131_v9 = vsel %vm1686_vm1, %v6656_v3, %v1685_v8  ;;  %v5151_v21 = vor.u32 %v6297_v20, %v5150_v19  ;;  %v6285_v22 = vld [vmem:[%s7840_s15 + $0x28] sm:$0xff]  ;;  %v6295_v24 = vld [vmem:[%s7838_s16 + $0x34] sm:$0xf0]  ;;  %v6284_v26 = vld [vmem:[%s7840_s15 + $0x20] sm:$0xff] }
 0x153   : > { %v5143_v25 = vor.u32 %v6295_v24, %v5142_v23  ;;  %v5134_v27 = vld [vmem:[%s7838_s16 + $0x20] sm:$0xf]  ;;  %v6293_v28 = vld [vmem:[%s7838_s16 + $0x24] sm:$0xf0]  ;;  %v6283_v30 = vld [vmem:[%s7840_s15 + $0x18] sm:$0xff] }
 0x154   : > { %1786 = vmatpush.bf16.msra.mxu2 %v6286_v18  ;;  %v5135_v29 = vor.u32 %v6293_v28, %v5134_v27  ;;  %v5126_v31 = vld [vmem:[%s7838_s16 + $0x10] sm:$0xf]  ;;  %v6291_v32 = vld [vmem:[%s7838_s16 + $0x14] sm:$0xf0]  ;;  %v5118_v35 = vld [vmem:[%s7838_s16] sm:$0xf] }
 0x155   : > { %1582 = vmatpush.bf16.msra.mxu0 %v6268_v38  ;;  %1902 = vmatpush.bf16.msra.mxu3 %v5167_v4  ;;  %v6282_v34 = vld [vmem:[%s7840_s15 + $0x10] sm:$0xff]  ;;  %v6289_v36 = vld [vmem:[%s7838_s16 + $0x4] sm:$0xf0]  ;;  %v1952_v61 = vld [vmem:[%s7842_s11 + $0x60] sm:$0xff] }
 0x156   : > { %1664 = vmatpush.bf16.msra.mxu1 %v6276_v39  ;;  %v5119_v37 = vor.u32 %v6289_v36, %v5118_v35  ;;  %v6281_v38 = vld [vmem:[%s7840_s15 + $0x8] sm:$0xff]  ;;  %v1715_v39 = vld [vmem:[%s7841_s10] sm:$0xff]  ;;  %v1951_v62 = vld [vmem:[%s7842_s11 + $0x58] sm:$0xff] }
 0x157   : > { %v1950_v63 = vld [vmem:[%s7842_s11 + $0x50] sm:$0xff]  ;;  %v1949_v1 = vld [vmem:[%s7842_s11 + $0x48] sm:$0xff]  ;;  %v1948_v2 = vld [vmem:[%s7842_s11 + $0x40] sm:$0xff] }
 0x158   : > { %1787 = vmatpush.bf16.msra.mxu2 %v6285_v22  ;;  %v1947_v4 = vld [vmem:[%s7842_s11 + $0x38] sm:$0xff]  ;;  %v1946_v5 = vld [vmem:[%s7842_s11 + $0x30] sm:$0xff]  ;;  %v1945_v6 = vld [vmem:[%s7842_s11 + $0x28] sm:$0xff] }
 0x159   : > { %1583 = vmatpush.bf16.msra.mxu0 %v6267_v40  ;;  %1903 = vmatpush.bf16.msra.mxu3 %v5159_v17  ;;  %v7158_v40 = vpack.c.bf16 %v1715_v39, %v1715_v39  ;;  %v1944_v7 = vld [vmem:[%s7842_s11 + $0x20] sm:$0xff]  ;;  %v1943_v8 = vld [vmem:[%s7842_s11 + $0x18] sm:$0xff]  ;;  %v6298_v35 = vld [vmem:[%s7838_s16 + $0x54] sm:$0xf] }
 0x15a   : > { %1665 = vmatpush.bf16.msra.mxu1 %v6275_v41  ;;  %v6280_v41 = vld [vmem:[%s7840_s15] sm:$0xff]  ;;  %v5160_v36 = vld [vmem:[%s7838_s16 + $0x58] sm:$0xf0]  ;;  %v5152_v39 = vld [vmem:[%s7838_s16 + $0x48] sm:$0xf0] }
 0x15c   : > { %1788 = vmatpush.bf16.msra.mxu2 %v6284_v26 }
 0x15d   : > { %1584 = vmatpush.bf16.msra.mxu0 %v6266_v42  ;;  %1904 = vmatpush.bf16.msra.mxu3 %v5151_v21  ;;  %v1955_v42 = vld [vmem:[%s7842_s11 + $0x78] sm:$0xff] }
 0x15e   : > { %1666 = vmatpush.bf16.msra.mxu1 %v6274_v43  ;;  %v1954_v43 = vld [vmem:[%s7842_s11 + $0x70] sm:$0xff] }
 0x160   : > { %1789 = vmatpush.bf16.msra.mxu2 %v6283_v30  ;;  %v5176_v30 = vld [vmem:[%s7838_s16 + $0x78] sm:$0xf0] }
 0x161   : > { %1585 = vmatpush.bf16.msra.mxu0 %v6265_v44  ;;  %1905 = vmatpush.bf16.msra.mxu3 %v5143_v25 }
 0x162   : > { %1667 = vmatpush.bf16.msra.mxu1 %v6273_v45 }
 0x164   : > { %1790 = vmatpush.bf16.msra.mxu2 %v6282_v34 }
 0x165   : > { %1586 = vmatpush.bf16.msra.mxu0 %v6264_v46  ;;  %1906 = vmatpush.bf16.msra.mxu3 %v5135_v29  ;;  %v1953_v46 = vld [vmem:[%s7842_s11 + $0x68] sm:$0xff]  ;;  %v6302_v29 = vld [vmem:[%s7838_s16 + $0x74] sm:$0xf] }
 0x166   : > { %1668 = vmatpush.bf16.msra.mxu1 %v6272_v48 }
 0x168   : > { %1587 = vmatmul.bf16.vlgmr.msra.gmra.mxu0 %v1527_v47  ;;  %1791 = vmatpush.bf16.msra.mxu2 %v6281_v38  ;;  %v6296_v38 = vld [vmem:[%s7838_s16 + $0x44] sm:$0xf] }
 0x16a   : > { %1963 = vmatpush.msrb.mxu1 %v1955_v42  ;;  %v5155_v42 = vor.u32 %v6296_v38, %v5152_v39  ;;  %v6309_v38 = vld [vmem:[%s7053_s30 + $0x28] sm:$0xff]  ;;  %v6308_v39 = vld [vmem:[%s7053_s30 + $0x20] sm:$0xff] }
 0x16c   : > { %1792 = vmatpush.bf16.msra.mxu2 %v6280_v41  ;;  %1964 = vmatpush.msrb.mxu1 %v1954_v43 }
 0x16e   : > { %1965 = vmatpush.msrb.mxu1 %v1953_v46 }
 0x170   : > { %1966 = vmatpush.msrb.mxu1 %v1952_v61 }
 0x172   : > { %1967 = vmatpush.msrb.mxu1 %v1951_v62  ;;  %v6290_v62 = vld [vmem:[%s7838_s16 + $0x14] sm:$0xf] }
 0x174   : > { %1968 = vmatpush.msrb.mxu1 %v1950_v63  ;;  %v5128_v63 = vld [vmem:[%s7838_s16 + $0x18] sm:$0xf0] }
 0x176   : > { %1969 = vmatpush.msrb.mxu1 %v1949_v1 }
 0x178   : > { %1970 = vmatpush.msrb.mxu1 %v1948_v2  ;;  %v5131_v2 = vor.u32 %v6290_v62, %v5128_v63 }
 0x17a   : > { %1971 = vmatpush.msrb.mxu1 %v1947_v4 }
 0x17c   : > { %1972 = vmatpush.msrb.mxu1 %v1946_v5  ;;  %v6288_v5 = vld [vmem:[%s7838_s16 + $0x4] sm:$0xf] }
 0x17e   : > { %1973 = vmatpush.msrb.mxu1 %v1945_v6  ;;  %v5120_v6 = vld [vmem:[%s7838_s16 + $0x8] sm:$0xf0] }
 0x180   : > { %1974 = vmatpush.msrb.mxu1 %v1944_v7 }
 0x182   : > { %1975 = vmatpush.msrb.mxu1 %v1943_v8 }
 0x1e5   : > { %v1588_v50 = vpop.f32.mrf.mxu0 }
 0x1e6   : > { %v1589_v51 = vadd.f32 %v6644_v49, %v1588_v50 }
 0x1e8   : > { %v1609_v52 = vpack.c.bf16 %v1589_v51, %v1589_v51 }
 0x1ea   : > { %1669 = vmatmul.bf16.vlgmr.msra.gmra.mxu1 %v1609_v52 }
 0x1ed   : > { %v1590_v53 = vpop.f32.mrf.mxu0 }
 0x267   : > { %v1670_v55 = vpop.f32.mrf.mxu1 }
 0x268   : > { %v1671_v56 = vadd.f32 %v6645_v54, %v1670_v55  ;;  %v6646_v54 = vld [vmem:[%s1298_s18] ss:$0 sm:$0xff]  ;;  %s7843_s18 = sld [smem:[#allocation22_spill]] }
 0x26a   : > { %v1674_v57 = vadd.f32 %v1671_v56, %v1508_v33  ;;  %v5127_v33 = vor.u32 %v6291_v32, %v5126_v31  ;;  %v5179_v31 = vor.u32 %v6302_v29, %v5176_v30  ;;  %v6300_v32 = vld [vmem:[%s7838_s16 + $0x64] sm:$0xf] }
 0x26c   : > { %v1678_v58 = vsel %vm1677_vm0, %v1674_v57, 0.0  ;;  %1907 = vmatpush.bf16.msra.mxu3 %v5127_v33  ;;  %1914 = vmatpush.bf16.msrb.mxu0 %v5179_v31  ;;  %v5168_v33 = vld [vmem:[%s7838_s16 + $0x68] sm:$0xf0] }
 0x26d   : > { %1679 = vadd.xlane.f32.xlu0 %v1678_v58  ;;  %v5171_v34 = vor.u32 %v6300_v32, %v5168_v33 }
 0x26f   : > { %v1672_v59 = vpop.f32.mrf.mxu1 }
 0x270   : > { %1908 = vmatpush.bf16.msra.mxu3 %v5119_v37  ;;  %1915 = vmatpush.bf16.msrb.mxu0 %v5171_v34  ;;  %v5163_v37 = vor.u32 %v6298_v35, %v5160_v36  ;;  %v6311_v34 = vld [vmem:[%s7053_s30 + $0x38] sm:$0xff]  ;;  %v6310_v35 = vld [vmem:[%s7053_s30 + $0x30] sm:$0xff] }
 0x273   : > { %1909 = vmatmul.bf16.vlgmr.msra.gmra.mxu3 %v7158_v40 }
 0x274   : > { %1916 = vmatpush.bf16.msrb.mxu0 %v5163_v37  ;;  %2155 = vmatpush.bf16.msrb.mxu3 %v6311_v34  ;;  %v5610_v34 = vld [vmem:[%s7071_s27 + $0x348] sm:$0xf0] }
 0x278   : > { %1917 = vmatpush.bf16.msrb.mxu0 %v5155_v42  ;;  %2156 = vmatpush.bf16.msrb.mxu3 %v6310_v35  ;;  %v6306_v42 = vld [vmem:[%s7053_s30 + $0x10] sm:$0xff]  ;;  %v5536_v35 = vld [vmem:[%s7071_s27 + $0x280] sm:$0xf] }
 0x27c   : > { %2157 = vmatpush.bf16.msrb.mxu3 %v6309_v38  ;;  %v6392_v38 = vld [vmem:[%s7071_s27 + $0x284] sm:$0xf] }
 0x280   : > { %2158 = vmatpush.bf16.msrb.mxu3 %v6308_v39  ;;  %v5538_v39 = vld [vmem:[%s7071_s27 + $0x2c0] sm:$0xf0] }
 0x2e0   : > { %v1680_v10 = vpop.xlane.xlu0 %1679 }
 0x2e1   : > { %v1688_v11 = vmul.f32 %v7131_v9, %v1680_v10  ;;  %v1942_v10 = vld [vmem:[%s7842_s11 + $0x10] sm:$0xff] }
 0x2e2   : > { %1976 = vmatpush.msrb.mxu1 %v1942_v10  ;;  %v5123_v10 = vor.u32 %v6288_v5, %v5120_v6  ;;  %v6649_v6 = vld [vmem:[%s1295_s6] ss:$0 sm:$0xff]  ;;  %s7847_s6 = scalar_lea.vmem %s6903_s21, %s7022_s9 }
 0x2e3   : > { %v7134_v12 = vsub.f32 %v1674_v57, %v1688_v11  ;;  %v6647_v57 = vld [vmem:[%s1301_s23] ss:$0 sm:$0xff]  ;;  %v1941_v11 = vld [vmem:[%s7842_s11 + $0x8] sm:$0xff]  ;;  %s7844_s23 = scalar_lea.vmem %s7843_s18, %s7022_s9 }
 0x2e4   : > { %1977 = vmatpush.msrb.mxu1 %v1941_v11  ;;  %v6648_v15 = vld [vmem:[%s7844_s23] ss:$0 sm:$0xff] }
 0x2e5   : > { %v1690_v13 = vmul.f32 %v7134_v12, %v7134_v12 }
 0x2e7   : > { %v1691_v14 = vsel %vm1677_vm0, %v1690_v13, 0.0  ;;  %v7191_v13 = vld [vmem:[%s7050_s26] sm:$0x3]  ;;  %s7845_s26 = sld [smem:[#allocation11_spill]] }
 0x2e8   : > { %1692 = vadd.xlane.f32.xlu0 %v1691_v14  ;;  %v1817_v14 = vperm.slane %v7191_v13, 0 }
 0x2ed   : > { %v2025_v11 = vld [vmem:[%s7845_s26] sm:$0xf] }
 0x2ee   : > { %5180 = vmatpush.msk.msrb.mxu2 %vm2035_vm6, %v2025_v11 }
 0x2f6   : > { %v1910_v0 = vpop.f32.mrf.mxu3 }
 0x2f7   : > { %v1911_v16 = vadd.f32 %v1910_v0, %v1817_v14 }
 0x2f9   : > { %v1934_v19 = vrot.slane %v1911_v16, 4 }
 0x2fe   : > { %v1912_v3 = vpop.f32.mrf.mxu3 }
 0x35b   : > { %v1693_v44 = vpop.xlane.xlu0 %1692 }
 0x35c   : > { %v1694_v45 = vmul.f32 %v1693_v44, %v7131_v9 }
 0x35e   : > { %v1695_v47 = vadd.f32 1e-05, %v1694_v45 }
 0x360   : > { %6657 = vrsqrt.f32 %v1695_v47  ;;  %vm1702_vm3 = vweird.f32 %v1695_v47 }
 0x366   : > { %v6658_v48 = vpop.eup %6657 }
 0x367   : > { %v1697_v49 = vmul.f32 %v6658_v48, %v1695_v47  ;;  %vm1703_vm2 = vweird.f32 %v6658_v48  ;;  %v6294_v47 = vld [vmem:[%s7838_s16 + $0x34] sm:$0xf] }
 0x368   : > { %vm1704_vm4 = vmor %vm1702_vm3, %vm1703_vm2 }
 0x369   : > { %v1698_v50 = vmul.f32 %v6658_v48, %v1697_v49 }
 0x36b   : > { %v1699_v51 = vmul.f32 0.5, %v1698_v50 }
 0x36d   : > { %v1700_v52 = vsub.f32 1.5, %v1699_v51 }
 0x36f   : > { %v1701_v53 = vmul.f32 %v6658_v48, %v1700_v52 }
 0x371   : > { %v1705_v55 = vsel %vm1704_vm4, %v6658_v48, %v1701_v53  ;;  %v5144_v48 = vld [vmem:[%s7838_s16 + $0x38] sm:$0xf0] }
 0x372   : > { %v1706_v56 = vmul.f32 %v1705_v55, %v7134_v12  ;;  %v1940_v12 = vld [vmem:[%s7842_s11] sm:$0xff]  ;;  %v5147_v51 = vor.u32 %v6294_v47, %v5144_v48  ;;  %v5136_v55 = vld [vmem:[%s7838_s16 + $0x28] sm:$0xf0] }
 0x373   : > { %1978 = vmatpush.msrb.mxu1 %v1940_v12 }
 0x374   : > { %v1710_v58 = vmul.f32 %v6646_v54, %v1706_v56  ;;  %1918 = vmatpush.bf16.msrb.mxu0 %v5147_v51  ;;  %v6292_v54 = vld [vmem:[%s7838_s16 + $0x24] sm:$0xf] }
 0x376   : > { %v7173_v59 = vadd.f32 %v6647_v57, %v1710_v58  ;;  %v5139_v58 = vor.u32 %v6292_v54, %v5136_v55 }
 0x378   : > { %v1733_v60 = vpack.c.bf16 %v7173_v59, %v7173_v59  ;;  %1919 = vmatpush.bf16.msrb.mxu0 %v5139_v58 }
 0x37a   : > { %1793 = vmatmul.bf16.vlgmr.msra.gmra.mxu2 %v1733_v60 }
 0x37c   : > { %1920 = vmatpush.bf16.msrb.mxu0 %v5131_v2 }
 0x380   : > { %1921 = vmatpush.bf16.msrb.mxu0 %v5123_v10 }
 0x383   : > { %1922 = vmatmul.bf16.vlgmr.msrb.gmra.mxu0 %v7158_v40 }
 0x3fd   : > { %v1794_v17 = vpop.f32.mrf.mxu2 }
 0x3fe   : > { %v1795_v18 = vadd.f32 %v6648_v15, %v1794_v17 }
 0x400   : > { %v1928_v20 = vrot.slane %v1795_v18, 1  ;;  %v1929_v21 = vperm.slane %v1795_v18, 0  ;;  %v1923_v36 = vpop.f32.mrf.mxu0 }
 0x402   : > { %v1930_v22 = vperm.slane %v1928_v20, 0  ;;  %v1936_v23 = vmul.f32 %v1929_v21, %v1911_v16 }
 0x404   : > { %v1937_v24 = vmul.f32 %v1934_v19, %v1930_v22  ;;  %v1938_v25 = vmul.f32 0.17677669, %v1936_v23 }
 0x405   : > { %v1796_v26 = vpop.f32.mrf.mxu2 }
 0x406   : > { %v1939_v27 = vmul.f32 0.17677669, %v1937_v24  ;;  %1958 = vst [vmem:[#allocation1] ss:$2 sm:$0xff] %v1938_v25 }
 0x408   : > { %1960 = vst [vmem:[#allocation1 + $0x1] ss:$2 sm:$0xff] %v1939_v27  ;;  %v1925_v37 = vpop.f32.mrf.mxu0 }
 0x40f   : > { %v1961_v28 = vld.sshfl [vmem:[#allocation1] sm:$0xff pattern:$0x75316420] }
 0x410   : > { %1979 = vmatmul.f32.vlgmr.msrb.gmra.mxu1 %v1961_v28 }
 0x48d   : > { %v1980_v41 = vpop.f32.mrf.mxu1 }
 0x48e   : > { %v1984_v43 = vrot.slane %v1980_v41, 4  ;;  %v1987_v44 = vsel %vm1986_vm5, %v1980_v41, -inf }
 0x48f   : > { %v1988_v45 = vrot.slane %v1987_v44, 4 }
 0x490   : > { %v1994_v46 = vsel %vm1986_vm5, %v1984_v43, -inf }
 0x491   : > { %v1989_v49 = vmax.f32 %v1987_v44, %v1988_v45  ;;  %v1995_v50 = vrot.slane %v1994_v46, 4  ;;  %v6304_v44 = vld [vmem:[%s7053_s30] sm:$0xff]  ;;  %v1818_v45 = vperm.slane %v7191_v13, 1 }
 0x493   : > { %v1990_v52 = vrot.slane %v1989_v49, 2  ;;  %v1996_v53 = vmax.f32 %v1994_v46, %v1995_v50  ;;  %v1924_v46 = vadd.f32 %v1923_v36, %v1818_v45  ;;  %v6400_v36 = vld [vmem:[%s7071_s27 + $0x2bc] sm:$0xf0]  ;;  %v5546_v45 = vld [vmem:[%s7071_s27 + $0x2c8] sm:$0xf0] }
 0x495   : > { %v1991_v56 = vmax.f32 %v1989_v49, %v1990_v52  ;;  %v1997_v57 = vrot.slane %v1996_v53, 2 }
 0x497   : > { %v1992_v60 = vrot.slane %v1991_v56, 1  ;;  %v1998_v61 = vmax.f32 %v1996_v53, %v1997_v57 }
 0x499   : > { %v1993_v0 = vmax.f32 %v1991_v56, %v1992_v60  ;;  %v1999_v1 = vrot.slane %v1998_v61, 1 }
 0x49b   : > { %v2000_v3 = vmax.f32 %v1998_v61, %v1999_v1  ;;  %v2001_v4 = vsub.f32 %v1980_v41, %v1993_v0  ;;  %v6307_v41 = vld [vmem:[%s7053_s30 + $0x18] sm:$0xff] }
 0x49c   : > { %2159 = vmatpush.bf16.msrb.mxu3 %v6307_v41  ;;  %v5544_v41 = vld [vmem:[%s7071_s27 + $0x288] sm:$0xf] }
 0x49d   : > { %v2002_v7 = vsub.f32 %v1984_v43, %v2000_v3  ;;  %v2003_v8 = vmul.f32 1.442695, %v2001_v4  ;;  %v6305_v43 = vld [vmem:[%s7053_s30 + $0x8] sm:$0xff] }
 0x49f   : > { %6659 = vpow2.f32 %v2003_v8  ;;  %v2005_v12 = vmul.f32 1.442695, %v2002_v7 }
 0x4a0   : > { %2160 = vmatpush.bf16.msrb.mxu3 %v6306_v42  ;;  %v5537_v42 = vor.u32 %v6400_v36, %v5536_v35 }
 0x4a1   : > { %6661 = vpow2.f32 %v2005_v12 }
 0x4a4   : > { %2161 = vmatpush.bf16.msrb.mxu3 %v6305_v43  ;;  %v6401_v43 = vld [vmem:[%s7071_s27 + $0x2c4] sm:$0xf0] }
 0x4a5   : > { %v6660_v14 = vpop.eup %6659 }
 0x4a6   : > { %v2007_v15 = vsel %vm1986_vm5, %v6660_v14, 0.0 }
 0x4a7   : > { %v6662_v16 = vpop.eup %6661  ;;  %v2008_v17 = vrot.slane %v2007_v15, 4 }
 0x4a8   : > { %v2014_v18 = vsel %vm1986_vm5, %v6662_v16, 0.0  ;;  %2162 = vmatpush.bf16.msrb.mxu3 %v6304_v44  ;;  %v6393_v44 = vld [vmem:[%s7071_s27 + $0x28c] sm:$0xf] }
 0x4a9   : > { %v2009_v19 = vadd.f32 %v2008_v17, %v2007_v15  ;;  %v2015_v20 = vrot.slane %v2014_v18, 4  ;;  %v6432_v15 = vld [vmem:[%s7071_s27 + $0x3bc] sm:$0xf0] }
 0x4ab   : > { %v2010_v21 = vrot.slane %v2009_v19, 2  ;;  %v2016_v22 = vadd.f32 %v2015_v20, %v2014_v18  ;;  %v5666_v18 = vld [vmem:[%s7071_s27 + $0x3c0] sm:$0xf0]  ;;  %v6433_v20 = vld [vmem:[%s7071_s27 + $0x3c4] sm:$0xf0] }
 0x4ad   : > { %v2011_v23 = vadd.f32 %v2010_v21, %v2009_v19  ;;  %v2017_v24 = vrot.slane %v2016_v22, 2  ;;  %v5672_v19 = vld [vmem:[%s7071_s27 + $0x388] sm:$0xf] }
 0x4af   : > { %v2012_v25 = vrot.slane %v2011_v23, 1  ;;  %v2018_v26 = vadd.f32 %v2017_v24, %v2016_v22  ;;  %v6425_v22 = vld [vmem:[%s7071_s27 + $0x38c] sm:$0xf]  ;;  %v5600_v24 = vld [vmem:[%s7071_s27 + $0x300] sm:$0xf] }
 0x4b1   : > { %v2013_v27 = vadd.f32 %v2012_v25, %v2011_v23  ;;  %v2019_v28 = vrot.slane %v2018_v26, 1  ;;  %v5674_v23 = vld [vmem:[%s7071_s27 + $0x3c8] sm:$0xf0] }
 0x4b2   : > { %v5677_v25 = vor.u32 %v6425_v22, %v5674_v23  ;;  %v5280_v22 = vld [vmem:[%s7071_s27 + $0x80] sm:$0xf] }
 0x4b3   : > { %v2020_v40 = vadd.f32 %v2019_v28, %v2018_v26  ;;  %6663 = vrcp.f32 %v2013_v27  ;;  %v6416_v26 = vld [vmem:[%s7071_s27 + $0x33c] sm:$0xf0]  ;;  %v6408_v27 = vld [vmem:[%s7071_s27 + $0x304] sm:$0xf] }
 0x4b4   : > { %v5602_v28 = vld [vmem:[%s7071_s27 + $0x340] sm:$0xf0]  ;;  %3045 = vmatpush.bf16.msra.mxu3 %v5677_v25  ;;  %v6336_v23 = vld [vmem:[%s7071_s27 + $0xbc] sm:$0xf0] }
 0x4b5   : > { %6665 = vrcp.f32 %v2020_v40  ;;  %v5601_v40 = vor.u32 %v6416_v26, %v5600_v24  ;;  %v6328_v24 = vld [vmem:[%s7071_s27 + $0x84] sm:$0xf] }
 0x4b6   : > { %v5282_v26 = vld [vmem:[%s7071_s27 + $0xc0] sm:$0xf0] }
 0x4b9   : > { %v6664_v29 = vpop.eup %6663 }
 0x4ba   : > { %v2023_v30 = vmul.f32 %v6664_v29, %v6660_v14  ;;  %v5664_v14 = vld [vmem:[%s7071_s27 + $0x380] sm:$0xf]  ;;  %v5605_v29 = vor.u32 %v6408_v27, %v5602_v28  ;;  %v5288_v27 = vld [vmem:[%s7071_s27 + $0x88] sm:$0xf] }
 0x4bb   : > { %v6666_v31 = vpop.eup %6665  ;;  %v5665_v17 = vor.u32 %v6432_v15, %v5664_v14  ;;  %v5346_v15 = vld [vmem:[%s7071_s27 + $0x140] sm:$0xf0]  ;;  %v6337_v28 = vld [vmem:[%s7071_s27 + $0xc4] sm:$0xf0] }
 0x4bc   : > { %v2024_v32 = vmul.f32 %v6666_v31, %v6662_v16  ;;  %2028 = vst [vmem:[#allocation1] ss:$2 sm:$0xff] %v2023_v30  ;;  %v6424_v16 = vld [vmem:[%s7071_s27 + $0x384] sm:$0xf]  ;;  %v5608_v30 = vld [vmem:[%s7071_s27 + $0x308] sm:$0xf] }
 0x4bd   : > { %v5669_v21 = vor.u32 %v6424_v16, %v5666_v18  ;;  %3006 = vmatpush.bf16.msra.mxu2 %v5665_v17  ;;  %v6417_v31 = vld [vmem:[%s7071_s27 + $0x344] sm:$0xf0]  ;;  %v6345_v18 = vld [vmem:[%s7071_s27 + $0x10c] sm:$0xf] }
 0x4be   : > { %2030 = vst [vmem:[#allocation1 + $0x1] ss:$2 sm:$0xff] %v2024_v32  ;;  %v6409_v32 = vld [vmem:[%s7071_s27 + $0x30c] sm:$0xf]  ;;  %v5352_v16 = vld [vmem:[%s7071_s27 + $0x108] sm:$0xf] }
 0x4bf   : > { %3019 = vmatpush.bf16.msra.mxu0 %v5669_v21  ;;  %v5613_v37 = vor.u32 %v6409_v32, %v5610_v34  ;;  %v6353_v17 = vld [vmem:[%s7071_s27 + $0x144] sm:$0xf0]  ;;  %v5285_v32 = vor.u32 %v6328_v24, %v5282_v26  ;;  %v6386_v26 = vld [vmem:[%s7071_s27 + $0x24c] sm:$0xf0] }
 0x4c1   : > { %3007 = vmatpush.bf16.msra.mxu2 %v5601_v40  ;;  %3046 = vmatpush.bf16.msra.mxu3 %v5613_v37  ;;  %v6329_v40 = vld [vmem:[%s7071_s27 + $0x8c] sm:$0xf] }
 0x4c3   : > { %3020 = vmatpush.bf16.msra.mxu0 %v5605_v29  ;;  %v5290_v29 = vld [vmem:[%s7071_s27 + $0xc8] sm:$0xf0] }
 0x4c4   : > { %v5293_v35 = vor.u32 %v6329_v40, %v5290_v29  ;;  %v5490_v40 = vld [vmem:[%s7071_s27 + $0x250] sm:$0xf0]  ;;  %v5496_v29 = vld [vmem:[%s7071_s27 + $0x218] sm:$0xf] }
 0x4c5   : > { %v2031_v33 = vld.sshfl [vmem:[#allocation1] sm:$0xff pattern:$0x75316420]  ;;  %3008 = vmatpush.bf16.msra.mxu2 %v5537_v42 }
 0x4c6   : > { %5181 = vmatmul.msk.f32.vlgmr.msrb.gmra.mxu2 %vm2032_vm7, %v2031_v33  ;;  %v5609_v33 = vor.u32 %v6417_v31, %v5608_v30  ;;  %v5281_v30 = vor.u32 %v6336_v23, %v5280_v22  ;;  %v6395_v22 = vld [vmem:[%s7071_s27 + $0x29c] sm:$0xf] }
 0x4c7   : > { %v5562_v23 = vld [vmem:[%s7071_s27 + $0x2d8] sm:$0xf0] }
 0x4c8   : > { %v5565_v24 = vor.u32 %v6395_v22, %v5562_v23 }
 0x549   : > { %v2056_v47 = vpop.f32.mrf.mxu2 }
 0x54a   : > { %v2059_v48 = vmul.f32 %v2056_v47, %v1924_v46  ;;  %v5541_v46 = vor.u32 %v6392_v38, %v5538_v39  ;;  %v5545_v47 = vor.u32 %v6401_v43, %v5544_v41  ;;  %v5216_v39 = vld [vmem:[%s7071_s27] sm:$0xf]  ;;  %v5218_v43 = vld [vmem:[%s7071_s27 + $0x40] sm:$0xf0] }
 0x54b   : > { %v6320_v41 = vld [vmem:[%s7071_s27 + $0x3c] sm:$0xf0] }
 0x54c   : > { %v2061_v49 = vrot.slane %v2059_v48, 4  ;;  %v2063_v50 = vsel %vm2035_vm6, %v2059_v48, 0.0  ;;  %v5472_v48 = vld [vmem:[%s7071_s27 + $0x200] sm:$0xf]  ;;  %3021 = vmatpush.bf16.msra.mxu0 %v5541_v46  ;;  %v5217_v42 = vor.u32 %v6320_v41, %v5216_v39  ;;  %v6362_v39 = vld [vmem:[%s7071_s27 + $0x194] sm:$0xf] }
 0x54d   : > { %v2064_v51 = vrot.slane %v2063_v50, 4 }
 0x54e   : > { %v2070_v52 = vsel %vm2035_vm6, %v2061_v49, 0.0  ;;  %v6384_v49 = vld [vmem:[%s7071_s27 + $0x23c] sm:$0xf0] }
 0x54f   : > { %v2065_v53 = vadd.f32 %v2064_v51, %v2063_v50  ;;  %v2071_v54 = vrot.slane %v2070_v52, 4  ;;  %v6376_v50 = vld [vmem:[%s7071_s27 + $0x204] sm:$0xf]  ;;  %v5549_v51 = vor.u32 %v6393_v44, %v5546_v45  ;;  %v5224_v44 = vld [vmem:[%s7071_s27 + $0x8] sm:$0xf] }
 0x550   : > { %v6321_v45 = vld [vmem:[%s7071_s27 + $0x44] sm:$0xf0] }
 0x551   : > { %v2066_v55 = vrot.slane %v2065_v53, 2  ;;  %v2072_v56 = vadd.f32 %v2071_v54, %v2070_v52  ;;  %v5474_v52 = vld [vmem:[%s7071_s27 + $0x240] sm:$0xf0]  ;;  %v6385_v54 = vld [vmem:[%s7071_s27 + $0x244] sm:$0xf0]  ;;  %3047 = vmatpush.bf16.msra.mxu3 %v5549_v51 }
 0x553   : > { %v2067_v57 = vadd.f32 %v2066_v55, %v2065_v53  ;;  %v2073_v58 = vrot.slane %v2072_v56, 2  ;;  %v5480_v53 = vld [vmem:[%s7071_s27 + $0x208] sm:$0xf]  ;;  %v6377_v55 = vld [vmem:[%s7071_s27 + $0x20c] sm:$0xf] }
 0x555   : > { %v2068_v60 = vrot.slane %v2067_v57, 1  ;;  %v2074_v61 = vadd.f32 %v2073_v58, %v2072_v56  ;;  %v5482_v56 = vld [vmem:[%s7071_s27 + $0x248] sm:$0xf0]  ;;  %v5477_v58 = vor.u32 %v6376_v50, %v5474_v52  ;;  %v5680_v50 = vld [vmem:[%s7071_s27 + $0x390] sm:$0xf] }
 0x556   : > { %v6434_v52 = vld [vmem:[%s7071_s27 + $0x3cc] sm:$0xf0] }
 0x557   : > { %v2069_v13 = vadd.f32 %v2068_v60, %v2067_v57  ;;  %v2075_v62 = vrot.slane %v2074_v61, 1  ;;  %v5473_v57 = vor.u32 %v6384_v49, %v5472_v48  ;;  %v5481_v60 = vor.u32 %v6385_v54, %v5480_v53  ;;  %3022 = vmatpush.bf16.msra.mxu0 %v5477_v58  ;;  %v6313_v48 = vld [vmem:[%s7071_s27 + $0xc] sm:$0xf]  ;;  %v6426_v53 = vld [vmem:[%s7071_s27 + $0x394] sm:$0xf] }
 0x558   : > { %v5226_v49 = vld [vmem:[%s7071_s27 + $0x48] sm:$0xf0]  ;;  %v5682_v54 = vld [vmem:[%s7071_s27 + $0x3d0] sm:$0xf0]  ;;  %v6435_v58 = vld [vmem:[%s7071_s27 + $0x3d4] sm:$0xf0] }
 0x559   : > { %v2076_v63 = vadd.f32 %v2075_v62, %v2074_v61  ;;  %v2094_v0 = vpack.c.bf16 %v2069_v13, %v2069_v13  ;;  %v5408_v61 = vld [vmem:[%s7071_s27 + $0x180] sm:$0xf]  ;;  %v6360_v62 = vld [vmem:[%s7071_s27 + $0x184] sm:$0xf]  ;;  %3009 = vmatpush.bf16.msra.mxu2 %v5473_v57  ;;  %v5229_v51 = vor.u32 %v6313_v48, %v5226_v49  ;;  %v5688_v57 = vld [vmem:[%s7071_s27 + $0x398] sm:$0xf] }
 0x55a   : > { %v6368_v13 = vld [vmem:[%s7071_s27 + $0x1bc] sm:$0xf0]  ;;  %v5360_v49 = vld [vmem:[%s7071_s27 + $0x110] sm:$0xf] }
 0x55b   : > { %v2095_v1 = vpack.c.bf16 %v2076_v63, %v2076_v63  ;;  %v2101_v2 = vunpack.c.l.b16 %v2094_v0  ;;  %v5485_v63 = vor.u32 %v6377_v55, %v5482_v56  ;;  %v5410_v0 = vld [vmem:[%s7071_s27 + $0x1c0] sm:$0xf0]  ;;  %v5681_v55 = vor.u32 %v6434_v52, %v5680_v50  ;;  %v6354_v50 = vld [vmem:[%s7071_s27 + $0x14c] sm:$0xf0] }
 0x55c   : > { %v5685_v56 = vor.u32 %v6426_v53, %v5682_v54  ;;  %v5361_v52 = vor.u32 %v6354_v50, %v5360_v49  ;;  %v5362_v53 = vld [vmem:[%s7071_s27 + $0x150] sm:$0xf0]  ;;  %v5368_v54 = vld [vmem:[%s7071_s27 + $0x118] sm:$0xf]  ;;  %v6420_v49 = vld [vmem:[%s7071_s27 + $0x35c] sm:$0xf0] }
 0x55d   : > { %v2102_v3 = vunpack.c.l.b16 %v2095_v1  ;;  %v5416_v1 = vld [vmem:[%s7071_s27 + $0x188] sm:$0xf]  ;;  %3048 = vmatpush.bf16.msra.mxu3 %v5485_v63  ;;  %v6418_v63 = vld [vmem:[%s7071_s27 + $0x34c] sm:$0xf0] }
 0x55f   : > { %v2104_v4 = vsel %vm2103_vm8, %v2102_v3, %v2101_v2  ;;  %v6369_v2 = vld [vmem:[%s7071_s27 + $0x1c4] sm:$0xf0]  ;;  %v6361_v3 = vld [vmem:[%s7071_s27 + $0x18c] sm:$0xf] }
 0x560   : > { %v2105_v5 = vpack.c.b16 %v2104_v4, %v2104_v4  ;;  %v5418_v4 = vld [vmem:[%s7071_s27 + $0x1c8] sm:$0xf0] }
 0x561   : > { %v5421_v14 = vor.u32 %v6361_v3, %v5418_v4  ;;  %v5618_v3 = vld [vmem:[%s7071_s27 + $0x350] sm:$0xf0]  ;;  %v5624_v4 = vld [vmem:[%s7071_s27 + $0x318] sm:$0xf] }
 0x562   : > { %2163 = vmatmul.bf16.vlgmr.msrb.gmra.mxu3 %v2105_v5  ;;  %v5409_v5 = vor.u32 %v6368_v13, %v5408_v61  ;;  %v5689_v61 = vor.u32 %v6435_v58, %v5688_v57  ;;  %v5690_v13 = vld [vmem:[%s7071_s27 + $0x3d8] sm:$0xf0] }
 0x563   : > { %3049 = vmatpush.bf16.msra.mxu3 %v5421_v14  ;;  %v5552_v14 = vld [vmem:[%s7071_s27 + $0x290] sm:$0xf]  ;;  %v6347_v58 = vld [vmem:[%s7071_s27 + $0x11c] sm:$0xf] }
 0x564   : > { %3010 = vmatpush.bf16.msra.mxu2 %v5409_v5 }
 0x5e5   : > { %v2164_v7 = vpop.f32.mrf.mxu3 }
 0x5e6   : > { %v2165_v8 = vadd.f32 %v6649_v6, %v2164_v7  ;;  %v5413_v6 = vor.u32 %v6360_v62, %v5410_v0  ;;  %v5417_v7 = vor.u32 %v6369_v2, %v5416_v1  ;;  %v5616_v62 = vld [vmem:[%s7071_s27 + $0x310] sm:$0xf]  ;;  %v6410_v2 = vld [vmem:[%s7071_s27 + $0x314] sm:$0xf] }
 0x5e7   : > { %v5617_v1 = vor.u32 %v6418_v63, %v5616_v62  ;;  %v5621_v5 = vor.u32 %v6410_v2, %v5618_v3  ;;  %v6338_v62 = vld [vmem:[%s7071_s27 + $0xcc] sm:$0xf0]  ;;  %v6330_v63 = vld [vmem:[%s7071_s27 + $0x94] sm:$0xf]  ;;  %v5304_v2 = vld [vmem:[%s7071_s27 + $0x98] sm:$0xf] }
 0x5e8   : > { %v7235_v10 = vadd.f32 %v2165_v8, %v7173_v59  ;;  %v5673_v59 = vor.u32 %v6433_v20, %v5672_v19  ;;  %v5344_v8 = vld [vmem:[%s7071_s27 + $0x100] sm:$0xf]  ;;  %v5354_v19 = vld [vmem:[%s7071_s27 + $0x148] sm:$0xf0]  ;;  %3023 = vmatpush.bf16.msra.mxu0 %v5413_v6  ;;  %v6419_v6 = vld [vmem:[%s7071_s27 + $0x354] sm:$0xf0] }
 0x5e9   : > { %v5357_v25 = vor.u32 %v6345_v18, %v5354_v19  ;;  %v5554_v18 = vld [vmem:[%s7071_s27 + $0x2d0] sm:$0xf0]  ;;  %v5560_v19 = vld [vmem:[%s7071_s27 + $0x298] sm:$0xf] }
 0x5ea   : > { %v2171_v11 = vsel %vm1677_vm0, %v7235_v10, 0.0  ;;  %3032 = vmatpush.bf16.msra.mxu1 %v5673_v59  ;;  %v5353_v59 = vor.u32 %v6353_v17, %v5352_v16  ;;  %v6394_v16 = vld [vmem:[%s7071_s27 + $0x294] sm:$0xf]  ;;  %v6339_v3 = vld [vmem:[%s7071_s27 + $0xd4] sm:$0xf0] }
 0x5eb   : > { %2172 = vadd.xlane.f32.xlu1 %v2171_v11  ;;  %v6352_v11 = vld [vmem:[%s7071_s27 + $0x13c] sm:$0xf0]  ;;  %3050 = vmatpush.bf16.msra.mxu3 %v5357_v25  ;;  %v5488_v25 = vld [vmem:[%s7071_s27 + $0x210] sm:$0xf] }
 0x5ec   : > { %v5345_v20 = vor.u32 %v6352_v11, %v5344_v8  ;;  %v5626_v8 = vld [vmem:[%s7071_s27 + $0x358] sm:$0xf0]  ;;  %v5625_v11 = vor.u32 %v6419_v6, %v5624_v4 }
 0x5ed   : > { %v2166_v12 = vpop.f32.mrf.mxu3  ;;  %v6331_v6 = vld [vmem:[%s7071_s27 + $0x9c] sm:$0xf] }
 0x5ee   : > { %3033 = vmatpush.bf16.msra.mxu1 %v5609_v33  ;;  %v6344_v12 = vld [vmem:[%s7071_s27 + $0x104] sm:$0xf]  ;;  %3011 = vmatpush.bf16.msra.mxu2 %v5345_v20  ;;  %v5289_v33 = vor.u32 %v6337_v28, %v5288_v27  ;;  %v6403_v20 = vld [vmem:[%s7071_s27 + $0x2d4] sm:$0xf0]  ;;  %v6378_v27 = vld [vmem:[%s7071_s27 + $0x214] sm:$0xf]  ;;  %v5489_v28 = vor.u32 %v6386_v26, %v5488_v25 }
 0x5ef   : > { %v5349_v21 = vor.u32 %v6344_v12, %v5346_v15  ;;  %3051 = vmatpush.bf16.msra.mxu3 %v5293_v35  ;;  %v6402_v15 = vld [vmem:[%s7071_s27 + $0x2cc] sm:$0xf0] }
 0x5f0   : > { %v5553_v17 = vor.u32 %v6402_v15, %v5552_v14  ;;  %v6314_v14 = vld [vmem:[%s7071_s27 + $0x14] sm:$0xf] }
 0x5f1   : > { %3024 = vmatpush.bf16.msra.mxu0 %v5349_v21  ;;  %v5557_v21 = vor.u32 %v6394_v16, %v5554_v18  ;;  %v5234_v16 = vld [vmem:[%s7071_s27 + $0x50] sm:$0xf0]  ;;  %v6323_v18 = vld [vmem:[%s7071_s27 + $0x54] sm:$0xf0] }
 0x5f2   : > { %3034 = vmatpush.bf16.msra.mxu1 %v5545_v47  ;;  %3012 = vmatpush.bf16.msra.mxu2 %v5281_v30  ;;  %v5225_v47 = vor.u32 %v6321_v45, %v5224_v44  ;;  %v6387_v30 = vld [vmem:[%s7071_s27 + $0x254] sm:$0xf0] }
 0x5f3   : > { %3052 = vmatpush.bf16.msra.mxu3 %v5229_v51  ;;  %v6346_v51 = vld [vmem:[%s7071_s27 + $0x114] sm:$0xf] }
 0x5f5   : > { %3025 = vmatpush.bf16.msra.mxu0 %v5285_v32  ;;  %v5497_v32 = vor.u32 %v6387_v30, %v5496_v29 }
 0x5f6   : > { %3035 = vmatpush.bf16.msra.mxu1 %v5481_v60  ;;  %3013 = vmatpush.bf16.msra.mxu2 %v5217_v42  ;;  %v6427_v60 = vld [vmem:[%s7071_s27 + $0x39c] sm:$0xf]  ;;  %v5432_v42 = vld [vmem:[%s7071_s27 + $0x198] sm:$0xf] }
 0x5f7   : > { %v5693_v0 = vor.u32 %v6427_v60, %v5690_v13  ;;  %v5370_v60 = vld [vmem:[%s7071_s27 + $0x158] sm:$0xf0]  ;;  %v5296_v13 = vld [vmem:[%s7071_s27 + $0x90] sm:$0xf] }
 0x5f9   : > { %3097 = vmatpush.bf16.msrb.mxu3 %v5693_v0  ;;  %v5297_v0 = vor.u32 %v6338_v62, %v5296_v13  ;;  %v6404_v13 = vld [vmem:[%s7071_s27 + $0x2dc] sm:$0xf0] }
 0x5fa   : > { %3036 = vmatpush.bf16.msra.mxu1 %v5417_v7  ;;  %3058 = vmatpush.bf16.msrb.mxu2 %v5681_v55  ;;  %v6411_v7 = vld [vmem:[%s7071_s27 + $0x31c] sm:$0xf]  ;;  %v6355_v55 = vld [vmem:[%s7071_s27 + $0x154] sm:$0xf0] }
 0x5fb   : > { %v5629_v12 = vor.u32 %v6411_v7, %v5626_v8  ;;  %v5369_v57 = vor.u32 %v6355_v55, %v5368_v54  ;;  %v5306_v7 = vld [vmem:[%s7071_s27 + $0xd8] sm:$0xf0]  ;;  %v5640_v54 = vld [vmem:[%s7071_s27 + $0x328] sm:$0xf] }
 0x5fc   : > { %v5309_v8 = vor.u32 %v6331_v6, %v5306_v7  ;;  %v6421_v55 = vld [vmem:[%s7071_s27 + $0x364] sm:$0xf0] }
 0x5fd   : > { %3098 = vmatpush.bf16.msrb.mxu3 %v5629_v12  ;;  %v6322_v12 = vld [vmem:[%s7071_s27 + $0x4c] sm:$0xf0]  ;;  %v5641_v62 = vor.u32 %v6421_v55, %v5640_v54  ;;  %v6341_v54 = vld [vmem:[%s7071_s27 + $0xe4] sm:$0xf0]  ;;  %v6333_v55 = vld [vmem:[%s7071_s27 + $0xac] sm:$0xf] }
 0x5fe   : > { %3037 = vmatpush.bf16.msra.mxu1 %v5353_v59  ;;  %3059 = vmatpush.bf16.msrb.mxu2 %v5617_v1  ;;  %v5561_v59 = vor.u32 %v6403_v20, %v5560_v19  ;;  %v5298_v1 = vld [vmem:[%s7071_s27 + $0xd0] sm:$0xf0]  ;;  %v5237_v19 = vor.u32 %v6314_v14, %v5234_v16  ;;  %v5506_v16 = vld [vmem:[%s7071_s27 + $0x260] sm:$0xf0] }
 0x5ff   : > { %v5301_v4 = vor.u32 %v6330_v63, %v5298_v1  ;;  %v5570_v1 = vld [vmem:[%s7071_s27 + $0x2e0] sm:$0xf0] }
 0x601   : > { %3099 = vmatpush.bf16.msrb.mxu3 %v5565_v24 }
 0x602   : > { %3038 = vmatpush.bf16.msra.mxu1 %v5289_v33  ;;  %3060 = vmatpush.bf16.msrb.mxu2 %v5553_v17  ;;  %v6379_v33 = vld [vmem:[%s7071_s27 + $0x21c] sm:$0xf]  ;;  %v5240_v17 = vld [vmem:[%s7071_s27 + $0x18] sm:$0xf] }
 0x603   : > { %v5241_v20 = vor.u32 %v6323_v18, %v5240_v17  ;;  %v5512_v17 = vld [vmem:[%s7071_s27 + $0x228] sm:$0xf] }
 0x604   : > { %v6389_v18 = vld [vmem:[%s7071_s27 + $0x264] sm:$0xf0] }
 0x606   : > { %3039 = vmatpush.bf16.msra.mxu1 %v5225_v47  ;;  %3061 = vmatpush.bf16.msrb.mxu2 %v5489_v28  ;;  %v5434_v47 = vld [vmem:[%s7071_s27 + $0x1d8] sm:$0xf0] }
 0x60a   : > { %3084 = vmatpush.bf16.msrb.mxu1 %v5689_v61  ;;  %v5373_v61 = vor.u32 %v6347_v58, %v5370_v60 }
 0x60e   : > { %3085 = vmatpush.bf16.msrb.mxu1 %v5625_v11  ;;  %v5232_v11 = vld [vmem:[%s7071_s27 + $0x10] sm:$0xf] }
 0x60f   : > { %v5233_v15 = vor.u32 %v6322_v12, %v5232_v11  ;;  %v6388_v11 = vld [vmem:[%s7071_s27 + $0x25c] sm:$0xf0] }
 0x612   : > { %3086 = vmatpush.bf16.msrb.mxu1 %v5561_v59  ;;  %v5242_v59 = vld [vmem:[%s7071_s27 + $0x58] sm:$0xf0] }
 0x616   : > { %3087 = vmatpush.bf16.msrb.mxu1 %v5497_v32 }
 0x65e   : > { %v2173_v31 = vpop.xlane.xlu1 %2172 }
 0x65f   : > { %v2174_v34 = vmul.f32 %v2173_v31, %v7131_v9  ;;  %v5493_v31 = vor.u32 %v6378_v27, %v5490_v40 }
 0x661   : > { %v7297_v36 = vsub.f32 %v7235_v10, %v2174_v34  ;;  %v6312_v10 = vld [vmem:[%s7071_s27 + $0x4] sm:$0xf]  ;;  %v5498_v34 = vld [vmem:[%s7071_s27 + $0x258] sm:$0xf0] }
 0x662   : > { %v5221_v46 = vor.u32 %v6312_v10, %v5218_v43  ;;  %v5501_v35 = vor.u32 %v6379_v33, %v5498_v34  ;;  %v5426_v10 = vld [vmem:[%s7071_s27 + $0x1d0] sm:$0xf0]  ;;  %v6371_v43 = vld [vmem:[%s7071_s27 + $0x1d4] sm:$0xf0]  ;;  %v6651_v33 = vld [vmem:[%s1307_s20] ss:$0 sm:$0xff] }
 0x663   : > { %v2176_v37 = vmul.f32 %v7297_v36, %v7297_v36  ;;  %v5429_v44 = vor.u32 %v6362_v39, %v5426_v10  ;;  %v5433_v45 = vor.u32 %v6371_v43, %v5432_v42  ;;  %v6428_v39 = vld [vmem:[%s7071_s27 + $0x3a4] sm:$0xf]  ;;  %v5704_v10 = vld [vmem:[%s7071_s27 + $0x3a8] sm:$0xf]  ;;  %s7848_s20 = sld [smem:[#allocation40_spill]] }
 0x664   : > { %3026 = vmatpush.bf16.msra.mxu0 %v5221_v46  ;;  %v6363_v46 = vld [vmem:[%s7071_s27 + $0x19c] sm:$0xf]  ;;  %3100 = vmatpush.bf16.msrb.mxu3 %v5501_v35  ;;  %v6437_v43 = vld [vmem:[%s7071_s27 + $0x3e4] sm:$0xf0] }
 0x665   : > { %v2177_v38 = vsel %vm1677_vm0, %v2176_v37, 0.0  ;;  %v5424_v37 = vld [vmem:[%s7071_s27 + $0x190] sm:$0xf]  ;;  %v5437_v48 = vor.u32 %v6363_v46, %v5434_v47  ;;  %3088 = vmatpush.bf16.msrb.mxu1 %v5433_v45  ;;  %v5706_v45 = vld [vmem:[%s7071_s27 + $0x3e8] sm:$0xf0]  ;;  %v5705_v50 = vor.u32 %v6437_v43, %v5704_v10 }
 0x666   : > { %2178 = vadd.xlane.f32.xlu1 %v2177_v38  ;;  %v6370_v38 = vld [vmem:[%s7071_s27 + $0x1cc] sm:$0xf0]  ;;  %v6357_v10 = vld [vmem:[%s7071_s27 + $0x164] sm:$0xf0]  ;;  %v6349_v43 = vld [vmem:[%s7071_s27 + $0x12c] sm:$0xf] }
 0x667   : > { %v5425_v41 = vor.u32 %v6370_v38, %v5424_v37  ;;  %v5696_v37 = vld [vmem:[%s7071_s27 + $0x3a0] sm:$0xf] }
 0x668   : > { %3071 = vmatpush.bf16.msrb.mxu0 %v5685_v56  ;;  %v5365_v56 = vor.u32 %v6346_v51, %v5362_v53  ;;  %3101 = vmatpush.bf16.msrb.mxu3 %v5437_v48  ;;  %v6436_v38 = vld [vmem:[%s7071_s27 + $0x3dc] sm:$0xf0]  ;;  %v5634_v53 = vld [vmem:[%s7071_s27 + $0x360] sm:$0xf0] }
 0x669   : > { %3062 = vmatpush.bf16.msrb.mxu2 %v5425_v41  ;;  %3089 = vmatpush.bf16.msrb.mxu1 %v5369_v57  ;;  %v5698_v41 = vld [vmem:[%s7071_s27 + $0x3e0] sm:$0xf0]  ;;  %v5697_v46 = vor.u32 %v6436_v38, %v5696_v37  ;;  %v5632_v48 = vld [vmem:[%s7071_s27 + $0x320] sm:$0xf]  ;;  %v5642_v57 = vld [vmem:[%s7071_s27 + $0x368] sm:$0xf0] }
 0x66a   : > { %v5701_v47 = vor.u32 %v6428_v39, %v5698_v41  ;;  %v5633_v58 = vor.u32 %v6420_v49, %v5632_v48  ;;  %v6348_v38 = vld [vmem:[%s7071_s27 + $0x124] sm:$0xf]  ;;  %v5384_v41 = vld [vmem:[%s7071_s27 + $0x128] sm:$0xf]  ;;  %v6340_v48 = vld [vmem:[%s7071_s27 + $0xdc] sm:$0xf0] }
 0x66b   : > { %v5378_v39 = vld [vmem:[%s7071_s27 + $0x160] sm:$0xf0]  ;;  %v5385_v49 = vor.u32 %v6357_v10, %v5384_v41  ;;  %v6407_v41 = vld [vmem:[%s7071_s27 + $0x2f4] sm:$0xf0]  ;;  %v6399_v10 = vld [vmem:[%s7071_s27 + $0x2bc] sm:$0xf] }
 0x66c   : > { %3072 = vmatpush.bf16.msrb.mxu0 %v5621_v5  ;;  %v5305_v5 = vor.u32 %v6339_v3, %v5304_v2  ;;  %3102 = vmatpush.bf16.msrb.mxu3 %v5373_v61  ;;  %v5568_v61 = vld [vmem:[%s7071_s27 + $0x2a0] sm:$0xf]  ;;  %v5576_v2 = vld [vmem:[%s7071_s27 + $0x2a8] sm:$0xf] }
 0x66d   : > { %3063 = vmatpush.bf16.msrb.mxu2 %v5361_v52  ;;  %v6412_v52 = vld [vmem:[%s7071_s27 + $0x324] sm:$0xf]  ;;  %v6405_v3 = vld [vmem:[%s7071_s27 + $0x2e4] sm:$0xf0]  ;;  %v5569_v6 = vor.u32 %v6404_v13, %v5568_v61  ;;  %v6324_v61 = vld [vmem:[%s7071_s27 + $0x5c] sm:$0xf0] }
 0x66e   : > { %3090 = vmatpush.bf16.msrb.mxu1 %v5305_v5  ;;  %v5637_v60 = vor.u32 %v6412_v52, %v5634_v53  ;;  %v5578_v5 = vld [vmem:[%s7071_s27 + $0x2e8] sm:$0xf0]  ;;  %v5577_v12 = vor.u32 %v6405_v3, %v5576_v2  ;;  %v5314_v52 = vld [vmem:[%s7071_s27 + $0xe0] sm:$0xf0]  ;;  %v5320_v53 = vld [vmem:[%s7071_s27 + $0xa8] sm:$0xf] }
 0x66f   : > { %v6316_v13 = vld [vmem:[%s7071_s27 + $0x24] sm:$0xf]  ;;  %v6325_v2 = vld [vmem:[%s7071_s27 + $0x64] sm:$0xf0]  ;;  %v6317_v3 = vld [vmem:[%s7071_s27 + $0x2c] sm:$0xf] }
 0x670   : > { %3073 = vmatpush.bf16.msrb.mxu0 %v5557_v21  ;;  %v6315_v21 = vld [vmem:[%s7071_s27 + $0x1c] sm:$0xf]  ;;  %3103 = vmatpush.bf16.msrb.mxu3 %v5309_v8  ;;  %v5504_v8 = vld [vmem:[%s7071_s27 + $0x220] sm:$0xf] }
 0x671   : > { %3064 = vmatpush.bf16.msrb.mxu2 %v5297_v0  ;;  %v5245_v22 = vor.u32 %v6315_v21, %v5242_v59  ;;  %v6396_v0 = vld [vmem:[%s7071_s27 + $0x2a4] sm:$0xf]  ;;  %v5505_v21 = vor.u32 %v6388_v11, %v5504_v8  ;;  %v5714_v8 = vld [vmem:[%s7071_s27 + $0x3f0] sm:$0xf0]  ;;  %v5720_v11 = vld [vmem:[%s7071_s27 + $0x3b8] sm:$0xf] }
 0x672   : > { %3091 = vmatpush.bf16.msrb.mxu1 %v5241_v20  ;;  %v5573_v7 = vor.u32 %v6396_v0, %v5570_v1  ;;  %v5514_v20 = vld [vmem:[%s7071_s27 + $0x268] sm:$0xf0]  ;;  %v5256_v1 = vld [vmem:[%s7071_s27 + $0x28] sm:$0xf] }
 0x674   : > { %3074 = vmatpush.bf16.msrb.mxu0 %v5493_v31  ;;  %3104 = vmatpush.bf16.msrb.mxu3 %v5245_v22  ;;  %v6650_v31 = vld [vmem:[%s7847_s6] ss:$0 sm:$0xff] }
 0x675   : > { %3065 = vmatpush.bf16.msrb.mxu2 %v5233_v15  ;;  %v6380_v15 = vld [vmem:[%s7071_s27 + $0x224] sm:$0xf]  ;;  %v5440_v22 = vld [vmem:[%s7071_s27 + $0x1a0] sm:$0xf] }
 0x676   : > { %v5509_v59 = vor.u32 %v6380_v15, %v5506_v16  ;;  %v6439_v15 = vld [vmem:[%s7071_s27 + $0x3f4] sm:$0xf0]  ;;  %v6431_v16 = vld [vmem:[%s7071_s27 + $0x3bc] sm:$0xf] }
 0x678   : > { %3075 = vmatpush.bf16.msrb.mxu0 %v5429_v44  ;;  %v6429_v44 = vld [vmem:[%s7071_s27 + $0x3ac] sm:$0xf] }
 0x679   : > { %v5709_v51 = vor.u32 %v6429_v44, %v5706_v45  ;;  %v5386_v44 = vld [vmem:[%s7071_s27 + $0x168] sm:$0xf0] }
 0x67c   : > { %3076 = vmatpush.bf16.msrb.mxu0 %v5365_v56  ;;  %v6413_v56 = vld [vmem:[%s7071_s27 + $0x32c] sm:$0xf] }
 0x67d   : > { %v5645_v63 = vor.u32 %v6413_v56, %v5642_v57  ;;  %v5322_v56 = vld [vmem:[%s7071_s27 + $0xe8] sm:$0xf0]  ;;  %v5248_v57 = vld [vmem:[%s7071_s27 + $0x20] sm:$0xf] }
 0x67e   : > { %v5325_v0 = vor.u32 %v6333_v55, %v5322_v56  ;;  %v5530_v55 = vld [vmem:[%s7071_s27 + $0x278] sm:$0xf0] }
 0x680   : > { %3077 = vmatpush.bf16.msrb.mxu0 %v5301_v4  ;;  %v6397_v4 = vld [vmem:[%s7071_s27 + $0x2ac] sm:$0xf] }
 0x681   : > { %v5581_v14 = vor.u32 %v6397_v4, %v5578_v5  ;;  %v5258_v4 = vld [vmem:[%s7071_s27 + $0x68] sm:$0xf0]  ;;  %v5712_v5 = vld [vmem:[%s7071_s27 + $0x3b0] sm:$0xf] }
 0x684   : > { %3078 = vmatpush.bf16.msrb.mxu0 %v5237_v19  ;;  %v6381_v19 = vld [vmem:[%s7071_s27 + $0x22c] sm:$0xf] }
 0x6d9   : > { %v2179_v23 = vpop.xlane.xlu1 %2178 }
 0x6da   : > { %v2180_v24 = vmul.f32 %v2179_v23, %v7131_v9  ;;  %v6372_v23 = vld [vmem:[%s7071_s27 + $0x1dc] sm:$0xf0] }
 0x6dc   : > { %v2181_v25 = vadd.f32 1e-05, %v2180_v24  ;;  %v5513_v24 = vor.u32 %v6389_v18, %v5512_v17  ;;  %v5722_v17 = vld [vmem:[%s7071_s27 + $0x3f8] sm:$0xf0]  ;;  %v5257_v18 = vor.u32 %v6325_v2, %v5256_v1  ;;  %v6375_v1 = vld [vmem:[%s7071_s27 + $0x1f4] sm:$0xf0] }
 0x6dd   : > { %v6367_v2 = vld [vmem:[%s7071_s27 + $0x1bc] sm:$0xf] }
 0x6de   : > { %6667 = vrsqrt.f32 %v2181_v25  ;;  %vm2188_vm10 = vweird.f32 %v2181_v25 }
 0x6e4   : > { %v6668_v26 = vpop.eup %6667 }
 0x6e5   : > { %v2183_v27 = vmul.f32 %v6668_v26, %v2181_v25  ;;  %vm2189_vm9 = vweird.f32 %v6668_v26  ;;  %v5517_v25 = vor.u32 %v6381_v19, %v5514_v20  ;;  %v5261_v19 = vor.u32 %v6317_v3, %v5258_v4  ;;  %v5466_v3 = vld [vmem:[%s7071_s27 + $0x1f8] sm:$0xf0] }
 0x6e6   : > { %vm2190_vm11 = vmor %vm2188_vm10, %vm2189_vm9 }
 0x6e7   : > { %v2184_v28 = vmul.f32 %v6668_v26, %v2183_v27  ;;  %v5442_v27 = vld [vmem:[%s7071_s27 + $0x1e0] sm:$0xf0] }
 0x6e9   : > { %v2185_v40 = vmul.f32 0.5, %v2184_v28  ;;  %v5448_v28 = vld [vmem:[%s7071_s27 + $0x1a8] sm:$0xf] }
 0x6eb   : > { %v2186_v29 = vsub.f32 1.5, %v2185_v40  ;;  %v6373_v40 = vld [vmem:[%s7071_s27 + $0x1e4] sm:$0xf0] }
 0x6ed   : > { %v2187_v30 = vmul.f32 %v6668_v26, %v2186_v29  ;;  %v6365_v29 = vld [vmem:[%s7071_s27 + $0x1ac] sm:$0xf] }
 0x6ef   : > { %v2191_v32 = vsel %vm2190_vm11, %v6668_v26, %v2187_v30  ;;  %v6364_v26 = vld [vmem:[%s7071_s27 + $0x1a4] sm:$0xf]  ;;  %v5450_v30 = vld [vmem:[%s7071_s27 + $0x1e8] sm:$0xf0] }
 0x6f0   : > { %v2192_v34 = vmul.f32 %v2191_v32, %v7297_v36  ;;  %v5445_v32 = vor.u32 %v6364_v26, %v5442_v27  ;;  %v5453_v37 = vor.u32 %v6365_v29, %v5450_v30  ;;  %v5650_v26 = vld [vmem:[%s7071_s27 + $0x370] sm:$0xf0]  ;;  %v5656_v27 = vld [vmem:[%s7071_s27 + $0x338] sm:$0xf]  ;;  %v5658_v29 = vld [vmem:[%s7071_s27 + $0x378] sm:$0xf0] }
 0x6f2   : > { %v2196_v35 = vmul.f32 %v6650_v31, %v2192_v34  ;;  %v5441_v31 = vor.u32 %v6372_v23, %v5440_v22  ;;  %v6356_v34 = vld [vmem:[%s7071_s27 + $0x15c] sm:$0xf0]  ;;  %v6422_v22 = vld [vmem:[%s7071_s27 + $0x36c] sm:$0xf0]  ;;  %v5721_v23 = vor.u32 %v6439_v15, %v5720_v11  ;;  %v5469_v11 = vor.u32 %v6367_v2, %v5466_v3  ;;  %v5400_v15 = vld [vmem:[%s7071_s27 + $0x138] sm:$0xf] }
 0x6f3   : > { %v6450_v2 = vld [vmem:[%s7848_s20 + $0x50] sm:$0xff] }
 0x6f4   : > { %v7387_v42 = vadd.f32 %v6651_v33, %v2196_v35  ;;  %v5376_v33 = vld [vmem:[%s7071_s27 + $0x120] sm:$0xf]  ;;  %v5449_v35 = vor.u32 %v6373_v40, %v5448_v28  ;;  %v6423_v28 = vld [vmem:[%s7071_s27 + $0x374] sm:$0xf0]  ;;  %v6415_v40 = vld [vmem:[%s7071_s27 + $0x33c] sm:$0xf] }
 0x6f5   : > { %v5377_v45 = vor.u32 %v6356_v34, %v5376_v33  ;;  %v6406_v33 = vld [vmem:[%s7071_s27 + $0x2ec] sm:$0xf0]  ;;  %v5657_v34 = vor.u32 %v6423_v28, %v5656_v27  ;;  %v6343_v27 = vld [vmem:[%s7071_s27 + $0xf4] sm:$0xf0]  ;;  %v6335_v28 = vld [vmem:[%s7071_s27 + $0xbc] sm:$0xf] }
 0x6f6   : > { %v7394_v36 = vpack.c.bf16 %v7387_v42, %v7387_v42  ;;  %v6458_v3 = vld [vmem:[%s7848_s20 + $0x90] sm:$0xff] }
 0x6f8   : > { %3014 = vmatmul.bf16.vlgmr.msra.gmra.mxu2 %v7394_v36  ;;  %3027 = vmatmul.bf16.vlgmr.msra.gmra.mxu0 %v7394_v36 }
 0x6f9   : > { %3040 = vmatmul.bf16.vlgmr.msra.gmra.mxu1 %v7394_v36  ;;  %3053 = vmatmul.bf16.vlgmr.msra.gmra.mxu3 %v7394_v36 }
 0x6fa   : > { %3110 = vmatpush.bf16.msra.mxu2 %v5697_v46  ;;  %3123 = vmatpush.bf16.msra.mxu0 %v5701_v47  ;;  %v5381_v46 = vor.u32 %v6348_v38, %v5378_v39  ;;  %v5312_v47 = vld [vmem:[%s7071_s27 + $0xa0] sm:$0xf]  ;;  %v5586_v38 = vld [vmem:[%s7071_s27 + $0x2f0] sm:$0xf0]  ;;  %v5592_v39 = vld [vmem:[%s7071_s27 + $0x2b8] sm:$0xf] }
 0x6fb   : > { %3136 = vmatpush.bf16.msra.mxu1 %v5705_v50  ;;  %3149 = vmatpush.bf16.msra.mxu3 %v5709_v51  ;;  %v5389_v50 = vor.u32 %v6349_v43, %v5386_v44  ;;  %v6332_v51 = vld [vmem:[%s7071_s27 + $0xa4] sm:$0xf]  ;;  %v5594_v43 = vld [vmem:[%s7071_s27 + $0x2f8] sm:$0xf0] }
 0x6fe   : > { %3111 = vmatpush.bf16.msra.mxu2 %v5633_v58  ;;  %3124 = vmatpush.bf16.msra.mxu0 %v5637_v60  ;;  %v5313_v58 = vor.u32 %v6340_v48, %v5312_v47  ;;  %v5317_v60 = vor.u32 %v6332_v51, %v5314_v52  ;;  %v6390_v47 = vld [vmem:[%s7071_s27 + $0x26c] sm:$0xf0]  ;;  %v5593_v48 = vor.u32 %v6407_v41, %v5592_v39  ;;  %v5522_v51 = vld [vmem:[%s7071_s27 + $0x270] sm:$0xf0]  ;;  %v5528_v52 = vld [vmem:[%s7071_s27 + $0x238] sm:$0xf] }
 0x6ff   : > { %3137 = vmatpush.bf16.msra.mxu1 %v5641_v62  ;;  %3150 = vmatpush.bf16.msra.mxu3 %v5645_v63  ;;  %v5250_v62 = vld [vmem:[%s7071_s27 + $0x60] sm:$0xf0]  ;;  %v5321_v63 = vor.u32 %v6341_v54, %v5320_v53  ;;  %v6391_v53 = vld [vmem:[%s7071_s27 + $0x274] sm:$0xf0]  ;;  %v6383_v54 = vld [vmem:[%s7071_s27 + $0x23c] sm:$0xf] }
 0x700   : > { %v6327_v39 = vld [vmem:[%s7071_s27 + $0x74] sm:$0xf0]  ;;  %v6319_v41 = vld [vmem:[%s7071_s27 + $0x3c] sm:$0xf] }
 0x702   : > { %3112 = vmatpush.bf16.msra.mxu2 %v5569_v6  ;;  %3125 = vmatpush.bf16.msra.mxu0 %v5573_v7  ;;  %v6438_v6 = vld [vmem:[%s7071_s27 + $0x3ec] sm:$0xf0]  ;;  %v6430_v7 = vld [vmem:[%s7071_s27 + $0x3b4] sm:$0xf] }
 0x703   : > { %3138 = vmatpush.bf16.msra.mxu1 %v5577_v12  ;;  %3151 = vmatpush.bf16.msra.mxu3 %v5581_v14  ;;  %v5249_v12 = vor.u32 %v6324_v61, %v5248_v57  ;;  %v5253_v14 = vor.u32 %v6316_v13, %v5250_v62  ;;  %v5713_v20 = vor.u32 %v6438_v6, %v5712_v5  ;;  %v6366_v62 = vld [vmem:[%s7071_s27 + $0x1b4] sm:$0xf]  ;;  %v5392_v6 = vld [vmem:[%s7071_s27 + $0x130] sm:$0xf] }
 0x704   : > { %v5529_v61 = vor.u32 %v6391_v53, %v5528_v52  ;;  %v5533_v13 = vor.u32 %v6383_v54, %v5530_v55  ;;  %v6462_v52 = vld [vmem:[%s7848_s20 + $0xb0] sm:$0xff]  ;;  %v6453_v55 = vld [vmem:[%s7848_s20 + $0x68] sm:$0xff] }
 0x705   : > { %v6446_v53 = vld [vmem:[%s7848_s20 + $0x30] sm:$0xff] }
 0x706   : > { %3113 = vmatpush.bf16.msra.mxu2 %v5505_v21  ;;  %3126 = vmatpush.bf16.msra.mxu0 %v5509_v59  ;;  %v5717_v21 = vor.u32 %v6430_v7, %v5714_v8  ;;  %v5648_v59 = vld [vmem:[%s7071_s27 + $0x330] sm:$0xf] }
 0x707   : > { %3139 = vmatpush.bf16.msra.mxu1 %v5513_v24  ;;  %3152 = vmatpush.bf16.msra.mxu3 %v5517_v25  ;;  %v5725_v24 = vor.u32 %v6431_v16, %v5722_v17  ;;  %v6414_v25 = vld [vmem:[%s7071_s27 + $0x334] sm:$0xf]  ;;  %v5649_v30 = vor.u32 %v6422_v22, %v5648_v59  ;;  %v6358_v7 = vld [vmem:[%s7071_s27 + $0x16c] sm:$0xf0]  ;;  %v6359_v16 = vld [vmem:[%s7071_s27 + $0x174] sm:$0xf0] }
 0x708   : > { %3066 = vmatmul.bf16.vlgmr.msrb.gmra.mxu2 %v7394_v36  ;;  %3079 = vmatmul.bf16.vlgmr.msrb.gmra.mxu0 %v7394_v36  ;;  %v6351_v17 = vld [vmem:[%s7071_s27 + $0x13c] sm:$0xf]  ;;  %v6342_v59 = vld [vmem:[%s7071_s27 + $0xec] sm:$0xf0]  ;;  %v5401_v22 = vor.u32 %v6359_v16, %v5400_v15 }
 0x709   : > { %3092 = vmatmul.bf16.vlgmr.msrb.gmra.mxu1 %v7394_v36  ;;  %3105 = vmatmul.bf16.vlgmr.msrb.gmra.mxu3 %v7394_v36  ;;  %v6470_v54 = vld [vmem:[%s7848_s20 + $0xf0] sm:$0xff]  ;;  %v6487_v15 = vld [vmem:[%s7848_s20 + $0x178] sm:$0xff] }
 0x70a   : > { %3114 = vmatpush.bf16.msra.mxu2 %v5441_v31  ;;  %3127 = vmatpush.bf16.msra.mxu0 %v5445_v32  ;;  %v5653_v31 = vor.u32 %v6414_v25, %v5650_v26  ;;  %v5584_v32 = vld [vmem:[%s7071_s27 + $0x2b0] sm:$0xf]  ;;  %v5330_v25 = vld [vmem:[%s7071_s27 + $0xf0] sm:$0xf0]  ;;  %v5336_v26 = vld [vmem:[%s7071_s27 + $0xb8] sm:$0xf] }
 0x70b   : > { %3140 = vmatpush.bf16.msra.mxu1 %v5449_v35  ;;  %3153 = vmatpush.bf16.msra.mxu3 %v5453_v37  ;;  %v5661_v35 = vor.u32 %v6415_v40, %v5658_v29  ;;  %v6398_v37 = vld [vmem:[%s7071_s27 + $0x2b4] sm:$0xf]  ;;  %v5585_v44 = vor.u32 %v6406_v33, %v5584_v32  ;;  %v5338_v40 = vld [vmem:[%s7071_s27 + $0xf8] sm:$0xf0]  ;;  %v6326_v32 = vld [vmem:[%s7071_s27 + $0x6c] sm:$0xf0]  ;;  %v5337_v33 = vor.u32 %v6343_v27, %v5336_v26 }
 0x70c   : > { %v6495_v16 = vld [vmem:[%s7848_s20 + $0x1b8] sm:$0xff]  ;;  %v6477_v26 = vld [vmem:[%s7848_s20 + $0x128] sm:$0xff] }
 0x70d   : > { %v6501_v27 = vld [vmem:[%s7848_s20 + $0x1e8] sm:$0xff] }
 0x70e   : > { %3115 = vmatpush.bf16.msra.mxu2 %v5377_v45  ;;  %3128 = vmatpush.bf16.msra.mxu0 %v5381_v46  ;;  %v5589_v45 = vor.u32 %v6398_v37, %v5586_v38  ;;  %v5520_v46 = vld [vmem:[%s7071_s27 + $0x230] sm:$0xf]  ;;  %v5266_v37 = vld [vmem:[%s7071_s27 + $0x70] sm:$0xf0]  ;;  %v5272_v38 = vld [vmem:[%s7071_s27 + $0x38] sm:$0xf] }
 0x70f   : > { %3141 = vmatpush.bf16.msra.mxu1 %v5385_v49  ;;  %3154 = vmatpush.bf16.msra.mxu3 %v5389_v50  ;;  %v5597_v49 = vor.u32 %v6399_v10, %v5594_v43  ;;  %v6382_v50 = vld [vmem:[%s7071_s27 + $0x234] sm:$0xf]  ;;  %v5521_v56 = vor.u32 %v6390_v47, %v5520_v46  ;;  %v5274_v10 = vld [vmem:[%s7071_s27 + $0x78] sm:$0xf0] }
 0x710   : > { %v5525_v57 = vor.u32 %v6382_v50, %v5522_v51  ;;  %v5277_v46 = vor.u32 %v6319_v41, %v5274_v10  ;;  %v6455_v47 = vld [vmem:[%s7848_s20 + $0x78] sm:$0xff]  ;;  %v6454_v51 = vld [vmem:[%s7848_s20 + $0x70] sm:$0xff]  ;;  %v6481_v41 = vld [vmem:[%s7848_s20 + $0x148] sm:$0xff] }
 0x711   : > { %v6471_v50 = vld [vmem:[%s7848_s20 + $0xf8] sm:$0xff]  ;;  %v6489_v10 = vld [vmem:[%s7848_s20 + $0x188] sm:$0xff] }
 0x712   : > { %3116 = vmatpush.bf16.msra.mxu2 %v5313_v58  ;;  %3129 = vmatpush.bf16.msra.mxu0 %v5317_v60  ;;  %v5456_v58 = vld [vmem:[%s7071_s27 + $0x1b0] sm:$0xf] }
 0x713   : > { %3142 = vmatpush.bf16.msra.mxu1 %v5321_v63  ;;  %3155 = vmatpush.bf16.msra.mxu3 %v5325_v0  ;;  %v6374_v60 = vld [vmem:[%s7071_s27 + $0x1ec] sm:$0xf0]  ;;  %v5458_v63 = vld [vmem:[%s7071_s27 + $0x1f0] sm:$0xf0]  ;;  %v5464_v0 = vld [vmem:[%s7071_s27 + $0x1b8] sm:$0xf] }
 0x714   : > { %v5457_v4 = vor.u32 %v6374_v60, %v5456_v58  ;;  %v5461_v5 = vor.u32 %v6366_v62, %v5458_v63  ;;  %v5465_v8 = vor.u32 %v6375_v1, %v5464_v0  ;;  %v6469_v58 = vld [vmem:[%s7848_s20 + $0xe8] sm:$0xff]  ;;  %v6460_v60 = vld [vmem:[%s7848_s20 + $0xa0] sm:$0xff]  ;;  %v6451_v62 = vld [vmem:[%s7848_s20 + $0x58] sm:$0xff] }
 0x715   : > { %v6459_v63 = vld [vmem:[%s7848_s20 + $0x98] sm:$0xff] }
 0x716   : > { %3117 = vmatpush.bf16.msra.mxu2 %v5249_v12  ;;  %3130 = vmatpush.bf16.msra.mxu0 %v5253_v14  ;;  %v6350_v12 = vld [vmem:[%s7071_s27 + $0x134] sm:$0xf]  ;;  %v6443_v0 = vld [vmem:[%s7848_s20 + $0x18] sm:$0xff] }
 0x717   : > { %3143 = vmatpush.bf16.msra.mxu1 %v5257_v18  ;;  %3156 = vmatpush.bf16.msra.mxu3 %v5261_v19  ;;  %v5394_v14 = vld [vmem:[%s7071_s27 + $0x170] sm:$0xf0]  ;;  %v5402_v18 = vld [vmem:[%s7071_s27 + $0x178] sm:$0xf0]  ;;  %v5393_v19 = vor.u32 %v6358_v7, %v5392_v6  ;;  %v6449_v6 = vld [vmem:[%s7848_s20 + $0x48] sm:$0xff] }
 0x718   : > { %v6467_v1 = vld [vmem:[%s7848_s20 + $0xd8] sm:$0xff]  ;;  %v6457_v7 = vld [vmem:[%s7848_s20 + $0x88] sm:$0xff] }
 0x719   : > { %3118 = vmatmul.bf16.vlgmr.msra.gmra.mxu2 %v7394_v36  ;;  %3131 = vmatmul.bf16.vlgmr.msra.gmra.mxu0 %v7394_v36 }
 0x71a   : > { %3162 = vmatpush.bf16.msrb.mxu2 %v5713_v20  ;;  %3175 = vmatpush.bf16.msrb.mxu0 %v5717_v21  ;;  %v5397_v20 = vor.u32 %v6350_v12, %v5394_v14  ;;  %v5328_v21 = vld [vmem:[%s7071_s27 + $0xb0] sm:$0xf]  ;;  %v6448_v12 = vld [vmem:[%s7848_s20 + $0x40] sm:$0xff] }
 0x71b   : > { %3188 = vmatpush.bf16.msrb.mxu1 %v5721_v23  ;;  %3201 = vmatpush.bf16.msrb.mxu3 %v5725_v24  ;;  %v5405_v23 = vor.u32 %v6351_v17, %v5402_v18  ;;  %v6334_v24 = vld [vmem:[%s7071_s27 + $0xb4] sm:$0xf]  ;;  %v5329_v29 = vor.u32 %v6342_v59, %v5328_v21  ;;  %v6456_v14 = vld [vmem:[%s7848_s20 + $0x80] sm:$0xff] }
 0x71c   : > { %3144 = vmatmul.bf16.vlgmr.msra.gmra.mxu1 %v7394_v36  ;;  %3157 = vmatmul.bf16.vlgmr.msra.gmra.mxu3 %v7394_v36  ;;  %v6440_v17 = vld [vmem:[%s7848_s20] sm:$0xff]  ;;  %v6486_v21 = vld [vmem:[%s7848_s20 + $0x170] sm:$0xff] }
 0x71d   : > { %v6464_v18 = vld [vmem:[%s7848_s20 + $0xc0] sm:$0xff]  ;;  %v6494_v59 = vld [vmem:[%s7848_s20 + $0x1b0] sm:$0xff] }
 0x71e   : > { %3163 = vmatpush.bf16.msrb.mxu2 %v5649_v30  ;;  %3176 = vmatpush.bf16.msrb.mxu0 %v5653_v31  ;;  %v5333_v30 = vor.u32 %v6334_v24, %v5330_v25  ;;  %v5264_v31 = vld [vmem:[%s7071_s27 + $0x30] sm:$0xf]  ;;  %v6485_v24 = vld [vmem:[%s7848_s20 + $0x168] sm:$0xff] }
 0x71f   : > { %3189 = vmatpush.bf16.msrb.mxu1 %v5657_v34  ;;  %3202 = vmatpush.bf16.msrb.mxu3 %v5661_v35  ;;  %v5341_v34 = vor.u32 %v6335_v28, %v5338_v40  ;;  %v6318_v35 = vld [vmem:[%s7071_s27 + $0x34] sm:$0xf]  ;;  %v5265_v43 = vor.u32 %v6326_v32, %v5264_v31  ;;  %v6493_v25 = vld [vmem:[%s7848_s20 + $0x1a8] sm:$0xff]  ;;  %v6484_v28 = vld [vmem:[%s7848_s20 + $0x160] sm:$0xff] }
 0x720   : > { %v6492_v40 = vld [vmem:[%s7848_s20 + $0x1a0] sm:$0xff]  ;;  %v6483_v31 = vld [vmem:[%s7848_s20 + $0x158] sm:$0xff] }
 0x721   : > { %v6491_v32 = vld [vmem:[%s7848_s20 + $0x198] sm:$0xff] }
 0x722   : > { %3164 = vmatpush.bf16.msrb.mxu2 %v5585_v44  ;;  %3177 = vmatpush.bf16.msrb.mxu0 %v5589_v45  ;;  %v5269_v44 = vor.u32 %v6318_v35, %v5266_v37  ;;  %v5273_v45 = vor.u32 %v6327_v39, %v5272_v38  ;;  %v6482_v35 = vld [vmem:[%s7848_s20 + $0x150] sm:$0xff] }
 0x723   : > { %3190 = vmatpush.bf16.msrb.mxu1 %v5593_v48  ;;  %3203 = vmatpush.bf16.msrb.mxu3 %v5597_v49  ;;  %v6463_v48 = vld [vmem:[%s7848_s20 + $0xb8] sm:$0xff]  ;;  %v6490_v37 = vld [vmem:[%s7848_s20 + $0x190] sm:$0xff] }
 0x724   : > { %v6447_v49 = vld [vmem:[%s7848_s20 + $0x38] sm:$0xff]  ;;  %v6474_v38 = vld [vmem:[%s7848_s20 + $0x110] sm:$0xff] }
 0x725   : > { %v6498_v39 = vld [vmem:[%s7848_s20 + $0x1d0] sm:$0xff] }
 0x726   : > { %3165 = vmatpush.bf16.msrb.mxu2 %v5521_v56  ;;  %3178 = vmatpush.bf16.msrb.mxu0 %v5525_v57  ;;  %v6461_v56 = vld [vmem:[%s7848_s20 + $0xa8] sm:$0xff] }
 0x727   : > { %3191 = vmatpush.bf16.msrb.mxu1 %v5529_v61  ;;  %3204 = vmatpush.bf16.msrb.mxu3 %v5533_v13  ;;  %v6445_v57 = vld [vmem:[%s7848_s20 + $0x28] sm:$0xff]  ;;  %v6444_v61 = vld [vmem:[%s7848_s20 + $0x20] sm:$0xff] }
 0x728   : > { %v6468_v13 = vld [vmem:[%s7848_s20 + $0xe0] sm:$0xff] }
 0x72a   : > { %3166 = vmatpush.bf16.msrb.mxu2 %v5457_v4  ;;  %3179 = vmatpush.bf16.msrb.mxu0 %v5461_v5  ;;  %v6442_v4 = vld [vmem:[%s7848_s20 + $0x10] sm:$0xff] }
 0x72b   : > { %3192 = vmatpush.bf16.msrb.mxu1 %v5465_v8  ;;  %3205 = vmatpush.bf16.msrb.mxu3 %v5469_v11  ;;  %v6466_v5 = vld [vmem:[%s7848_s20 + $0xd0] sm:$0xff]  ;;  %v6441_v8 = vld [vmem:[%s7848_s20 + $0x8] sm:$0xff] }
 0x72c   : > { %v6465_v11 = vld [vmem:[%s7848_s20 + $0xc8] sm:$0xff] }
 0x72e   : > { %3167 = vmatpush.bf16.msrb.mxu2 %v5393_v19  ;;  %3180 = vmatpush.bf16.msrb.mxu0 %v5397_v20  ;;  %v6479_v19 = vld [vmem:[%s7848_s20 + $0x138] sm:$0xff] }
 0x72f   : > { %3193 = vmatpush.bf16.msrb.mxu1 %v5401_v22  ;;  %3206 = vmatpush.bf16.msrb.mxu3 %v5405_v23  ;;  %v6503_v20 = vld [vmem:[%s7848_s20 + $0x1f8] sm:$0xff]  ;;  %v6478_v22 = vld [vmem:[%s7848_s20 + $0x130] sm:$0xff] }
 0x730   : > { %v6502_v23 = vld [vmem:[%s7848_s20 + $0x1f0] sm:$0xff] }
 0x732   : > { %3168 = vmatpush.bf16.msrb.mxu2 %v5329_v29  ;;  %3181 = vmatpush.bf16.msrb.mxu0 %v5333_v30  ;;  %v6476_v29 = vld [vmem:[%s7848_s20 + $0x120] sm:$0xff] }
 0x733   : > { %3194 = vmatpush.bf16.msrb.mxu1 %v5337_v33  ;;  %3207 = vmatpush.bf16.msrb.mxu3 %v5341_v34  ;;  %v6500_v30 = vld [vmem:[%s7848_s20 + $0x1e0] sm:$0xff]  ;;  %v6475_v33 = vld [vmem:[%s7848_s20 + $0x118] sm:$0xff] }
 0x734   : > { %v6499_v34 = vld [vmem:[%s7848_s20 + $0x1d8] sm:$0xff] }
 0x736   : > { %3169 = vmatpush.bf16.msrb.mxu2 %v5265_v43  ;;  %3182 = vmatpush.bf16.msrb.mxu0 %v5269_v44  ;;  %v6473_v43 = vld [vmem:[%s7848_s20 + $0x108] sm:$0xff] }
 0x737   : > { %3195 = vmatpush.bf16.msrb.mxu1 %v5273_v45  ;;  %3208 = vmatpush.bf16.msrb.mxu3 %v5277_v46  ;;  %v6497_v44 = vld [vmem:[%s7848_s20 + $0x1c8] sm:$0xff]  ;;  %v6480_v45 = vld [vmem:[%s7848_s20 + $0x140] sm:$0xff] }
 0x738   : > { %v6488_v46 = vld [vmem:[%s7848_s20 + $0x180] sm:$0xff] }
 0x739   : > { %3170 = vmatmul.bf16.vlgmr.msrb.gmra.mxu2 %v7394_v36  ;;  %3183 = vmatmul.bf16.vlgmr.msrb.gmra.mxu0 %v7394_v36 }
 0x73a   : > { %4287 = vmatpush.bf16.msra.mxu0 %v6455_v47  ;;  %3196 = vmatmul.bf16.vlgmr.msrb.gmra.mxu1 %v7394_v36  ;;  %v6472_v47 = vld [vmem:[%s7848_s20 + $0x100] sm:$0xff] }
 0x73b   : > { %4300 = vmatpush.bf16.msra.mxu1 %v6463_v48  ;;  %3209 = vmatmul.bf16.vlgmr.msrb.gmra.mxu3 %v7394_v36  ;;  %v6452_v36 = vld [vmem:[%s7848_s20 + $0x60] sm:$0xff] }
 0x73c   : > { %4274 = vmatpush.bf16.msra.mxu2 %v6447_v49  ;;  %4313 = vmatpush.bf16.msra.mxu3 %v6471_v50  ;;  %v6496_v48 = vld [vmem:[%s7848_s20 + $0x1c0] sm:$0xff] }
 0x73d   : > { %v7597_v49 = vld [vmem:[%s7075_s4] sm:$0xff] }
 0x73e   : > { %4288 = vmatpush.bf16.msra.mxu0 %v6454_v51  ;;  %v2335_v50 = vperm.slane %v7597_v49, 1  ;;  %v2336_v51 = vperm.slane %v7597_v49, 2 }
 0x73f   : > { %4301 = vmatpush.bf16.msra.mxu1 %v6462_v52 }
 0x740   : > { %4275 = vmatpush.bf16.msra.mxu2 %v6446_v53  ;;  %4314 = vmatpush.bf16.msra.mxu3 %v6470_v54 }
 0x742   : > { %4289 = vmatpush.bf16.msra.mxu0 %v6453_v55 }
 0x743   : > { %4302 = vmatpush.bf16.msra.mxu1 %v6461_v56 }
 0x744   : > { %4276 = vmatpush.bf16.msra.mxu2 %v6445_v57  ;;  %4315 = vmatpush.bf16.msra.mxu3 %v6469_v58  ;;  %v2334_v57 = vperm.slane %v7597_v49, 0 }
 0x746   : > { %4290 = vmatpush.bf16.msra.mxu0 %v6452_v36  ;;  %v2337_v36 = vperm.slane %v7597_v49, 3 }
 0x747   : > { %4303 = vmatpush.bf16.msra.mxu1 %v6460_v60  ;;  %v6519_v60 = vld [vmem:[%s7848_s20 + $0x278] sm:$0xff] }
 0x748   : > { %4277 = vmatpush.bf16.msra.mxu2 %v6444_v61  ;;  %4316 = vmatpush.bf16.msra.mxu3 %v6468_v13  ;;  %v6527_v13 = vld [vmem:[%s7848_s20 + $0x2b8] sm:$0xff] }
 0x74a   : > { %4291 = vmatpush.bf16.msra.mxu0 %v6451_v62 }
 0x74b   : > { %4304 = vmatpush.bf16.msra.mxu1 %v6459_v63 }
 0x74c   : > { %4278 = vmatpush.bf16.msra.mxu2 %v6443_v0  ;;  %4317 = vmatpush.bf16.msra.mxu3 %v6467_v1 }
 0x74e   : > { %4292 = vmatpush.bf16.msra.mxu0 %v6450_v2 }
 0x74f   : > { %4305 = vmatpush.bf16.msra.mxu1 %v6458_v3 }
 0x750   : > { %4279 = vmatpush.bf16.msra.mxu2 %v6442_v4  ;;  %4318 = vmatpush.bf16.msra.mxu3 %v6466_v5  ;;  %v6518_v4 = vld [vmem:[%s7848_s20 + $0x270] sm:$0xff] }
 0x752   : > { %4293 = vmatpush.bf16.msra.mxu0 %v6449_v6 }
 0x753   : > { %4306 = vmatpush.bf16.msra.mxu1 %v6457_v7  ;;  %v6526_v7 = vld [vmem:[%s7848_s20 + $0x2b0] sm:$0xff] }
 0x754   : > { %4280 = vmatpush.bf16.msra.mxu2 %v6441_v8  ;;  %4319 = vmatpush.bf16.msra.mxu3 %v6465_v11  ;;  %v6511_v11 = vld [vmem:[%s7848_s20 + $0x238] sm:$0xff] }
 0x756   : > { %4294 = vmatpush.bf16.msra.mxu0 %v6448_v12 }
 0x757   : > { %4307 = vmatpush.bf16.msra.mxu1 %v6456_v14  ;;  %v6535_v14 = vld [vmem:[%s7848_s20 + $0x2f8] sm:$0xff] }
 0x758   : > { %4281 = vmatpush.bf16.msra.mxu2 %v6440_v17  ;;  %4320 = vmatpush.bf16.msra.mxu3 %v6464_v18  ;;  %v6525_v17 = vld [vmem:[%s7848_s20 + $0x2a8] sm:$0xff]  ;;  %v2339_v18 = vperm.slane %v7597_v49, 5 }
 0x75a   : > { %4339 = vmatpush.bf16.msrb.mxu0 %v6487_v15 }
 0x75b   : > { %4352 = vmatpush.bf16.msrb.mxu1 %v6495_v16  ;;  %v6517_v16 = vld [vmem:[%s7848_s20 + $0x268] sm:$0xff] }
 0x75c   : > { %4326 = vmatpush.bf16.msrb.mxu2 %v6479_v19  ;;  %4365 = vmatpush.bf16.msrb.mxu3 %v6503_v20  ;;  %v2340_v20 = vperm.slane %v7597_v49, 6 }
 0x75e   : > { %4340 = vmatpush.bf16.msrb.mxu0 %v6486_v21  ;;  %v6510_v21 = vld [vmem:[%s7848_s20 + $0x230] sm:$0xff] }
 0x75f   : > { %4353 = vmatpush.bf16.msrb.mxu1 %v6494_v59 }
 0x760   : > { %4327 = vmatpush.bf16.msrb.mxu2 %v6478_v22  ;;  %4366 = vmatpush.bf16.msrb.mxu3 %v6502_v23  ;;  %v6534_v22 = vld [vmem:[%s7848_s20 + $0x2f0] sm:$0xff] }
 0x762   : > { %4341 = vmatpush.bf16.msrb.mxu0 %v6485_v24  ;;  %v6516_v24 = vld [vmem:[%s7848_s20 + $0x260] sm:$0xff] }
 0x763   : > { %4354 = vmatpush.bf16.msrb.mxu1 %v6493_v25 }
 0x764   : > { %4328 = vmatpush.bf16.msrb.mxu2 %v6477_v26  ;;  %4367 = vmatpush.bf16.msrb.mxu3 %v6501_v27  ;;  %v6524_v27 = vld [vmem:[%s7848_s20 + $0x2a0] sm:$0xff] }
 0x766   : > { %4342 = vmatpush.bf16.msrb.mxu0 %v6484_v28 }
 0x767   : > { %4355 = vmatpush.bf16.msrb.mxu1 %v6492_v40  ;;  %v6509_v40 = vld [vmem:[%s7848_s20 + $0x228] sm:$0xff] }
 0x768   : > { %4329 = vmatpush.bf16.msrb.mxu2 %v6476_v29  ;;  %4368 = vmatpush.bf16.msrb.mxu3 %v6500_v30  ;;  %v6533_v30 = vld [vmem:[%s7848_s20 + $0x2e8] sm:$0xff] }
 0x76a   : > { %4343 = vmatpush.bf16.msrb.mxu0 %v6483_v31  ;;  %v2338_v31 = vperm.slane %v7597_v49, 4 }
 0x76b   : > { %4356 = vmatpush.bf16.msrb.mxu1 %v6491_v32 }
 0x76c   : > { %4330 = vmatpush.bf16.msrb.mxu2 %v6475_v33  ;;  %4369 = vmatpush.bf16.msrb.mxu3 %v6499_v34  ;;  %v2341_v33 = vperm.slane %v7597_v49, 7  ;;  %v6515_v34 = vld [vmem:[%s7848_s20 + $0x258] sm:$0xff] }
 0x76e   : > { %4344 = vmatpush.bf16.msrb.mxu0 %v6482_v35 }
 0x76f   : > { %4357 = vmatpush.bf16.msrb.mxu1 %v6490_v37  ;;  %v6523_v37 = vld [vmem:[%s7848_s20 + $0x298] sm:$0xff] }
 0x770   : > { %4331 = vmatpush.bf16.msrb.mxu2 %v6474_v38  ;;  %4370 = vmatpush.bf16.msrb.mxu3 %v6498_v39 }
 0x772   : > { %4345 = vmatpush.bf16.msrb.mxu0 %v6481_v41  ;;  %v6508_v41 = vld [vmem:[%s7848_s20 + $0x220] sm:$0xff] }
 0x773   : > { %4358 = vmatpush.bf16.msrb.mxu1 %v6489_v10 }
 0x774   : > { %4332 = vmatpush.bf16.msrb.mxu2 %v6473_v43  ;;  %4371 = vmatpush.bf16.msrb.mxu3 %v6497_v44  ;;  %v6532_v44 = vld [vmem:[%s7848_s20 + $0x2e0] sm:$0xff] }
 0x775   : > { %v3028_v52 = vpop.f32.mrf.mxu0 }
 0x776   : > { %4346 = vmatpush.bf16.msrb.mxu0 %v6480_v45  ;;  %v3029_v53 = vadd.f32 %v3028_v52, %v2335_v50  ;;  %v3041_v54 = vpop.f32.mrf.mxu1  ;;  %v6522_v50 = vld [vmem:[%s7848_s20 + $0x290] sm:$0xff]  ;;  %v6507_v52 = vld [vmem:[%s7848_s20 + $0x218] sm:$0xff] }
 0x777   : > { %4359 = vmatpush.bf16.msrb.mxu1 %v6488_v46  ;;  %v3042_v55 = vadd.f32 %v3041_v54, %v2336_v51  ;;  %v6531_v54 = vld [vmem:[%s7848_s20 + $0x2d8] sm:$0xff] }
 0x778   : > { %4333 = vmatpush.bf16.msrb.mxu2 %v6472_v47  ;;  %4372 = vmatpush.bf16.msrb.mxu3 %v6496_v48  ;;  %v3215_v56 = vmax.f32 %v3029_v53, 0.0  ;;  %v6514_v47 = vld [vmem:[%s7848_s20 + $0x250] sm:$0xff] }
 0x779   : > { %v3216_v58 = vmax.f32 %v3042_v55, 0.0 }
 0x77a   : > { %v3488_v61 = vpack.c.bf16 %v3215_v56, %v3215_v56  ;;  %v6513_v56 = vld [vmem:[%s7848_s20 + $0x248] sm:$0xff] }
 0x77b   : > { %v3489_v62 = vpack.c.bf16 %v3216_v58, %v3216_v58  ;;  %v3015_v63 = vpop.f32.mrf.mxu2  ;;  %v6521_v58 = vld [vmem:[%s7848_s20 + $0x288] sm:$0xff] }
 0x77c   : > { %v3016_v0 = vadd.f32 %v3015_v63, %v2334_v57  ;;  %v3054_v1 = vpop.f32.mrf.mxu3  ;;  %4295 = vmatmul.bf16.vlgmr.msra.gmra.mxu0 %v3488_v61  ;;  %v7631_v57 = vld [vmem:[%s7075_s4 + $0x8] sm:$0xff] }
 0x77d   : > { %v3055_v2 = vadd.f32 %v3054_v1, %v2337_v36  ;;  %4308 = vmatmul.bf16.vlgmr.msra.gmra.mxu1 %v3489_v62  ;;  %4391 = vmatpush.bf16.msra.mxu0 %v6519_v60  ;;  %v3030_v3 = vpop.f32.mrf.mxu0  ;;  %v6506_v60 = vld [vmem:[%s7848_s20 + $0x210] sm:$0xff]  ;;  %v2344_v63 = vperm.slane %v7631_v57, 2  ;;  %v6520_v1 = vld [vmem:[%s7848_s20 + $0x280] sm:$0xff] }
 0x77e   : > { %v3214_v5 = vmax.f32 %v3016_v0, 0.0  ;;  %4404 = vmatpush.bf16.msra.mxu1 %v6527_v13  ;;  %v3043_v6 = vpop.f32.mrf.mxu1  ;;  %v2343_v13 = vperm.slane %v7631_v57, 1  ;;  %v6530_v62 = vld [vmem:[%s7848_s20 + $0x2d0] sm:$0xff]  ;;  %v6512_v0 = vld [vmem:[%s7848_s20 + $0x240] sm:$0xff] }
 0x77f   : > { %v3217_v8 = vmax.f32 %v3055_v2, 0.0  ;;  %v6551_v2 = vld [vmem:[%s7848_s20 + $0x378] sm:$0xff] }
 0x780   : > { %v3487_v12 = vpack.c.bf16 %v3214_v5, %v3214_v5  ;;  %v6505_v5 = vld [vmem:[%s7848_s20 + $0x208] sm:$0xff] }
 0x781   : > { %v3490_v15 = vpack.c.bf16 %v3217_v8, %v3217_v8  ;;  %4392 = vmatpush.bf16.msra.mxu0 %v6518_v4  ;;  %v6559_v4 = vld [vmem:[%s7848_s20 + $0x3b8] sm:$0xff]  ;;  %v6529_v8 = vld [vmem:[%s7848_s20 + $0x2c8] sm:$0xff] }
 0x782   : > { %4405 = vmatpush.bf16.msra.mxu1 %v6526_v7  ;;  %4282 = vmatmul.bf16.vlgmr.msra.gmra.mxu2 %v3487_v12 }
 0x783   : > { %4321 = vmatmul.bf16.vlgmr.msra.gmra.mxu3 %v3490_v15  ;;  %4378 = vmatpush.bf16.msra.mxu2 %v6511_v11  ;;  %v3017_v19 = vpop.f32.mrf.mxu2 }
 0x784   : > { %4417 = vmatpush.bf16.msra.mxu3 %v6535_v14  ;;  %v3056_v59 = vpop.f32.mrf.mxu3  ;;  %v2342_v14 = vperm.slane %v7631_v57, 0  ;;  %v6558_v19 = vld [vmem:[%s7848_s20 + $0x3b0] sm:$0xff] }
 0x785   : > { %4393 = vmatpush.bf16.msra.mxu0 %v6517_v16  ;;  %v3080_v23 = vpop.f32.mrf.mxu0  ;;  %v2345_v16 = vperm.slane %v7631_v57, 3 }
 0x786   : > { %4406 = vmatpush.bf16.msra.mxu1 %v6525_v17  ;;  %v3081_v25 = vadd.f32 %v3080_v23, %v2339_v18  ;;  %v3093_v26 = vpop.f32.mrf.mxu1  ;;  %v6550_v17 = vld [vmem:[%s7848_s20 + $0x370] sm:$0xff]  ;;  %v6543_v23 = vld [vmem:[%s7848_s20 + $0x338] sm:$0xff] }
 0x787   : > { %v3094_v28 = vadd.f32 %v3093_v26, %v2340_v20  ;;  %4379 = vmatpush.bf16.msra.mxu2 %v6510_v21  ;;  %v6504_v20 = vld [vmem:[%s7848_s20 + $0x200] sm:$0xff]  ;;  %v6567_v26 = vld [vmem:[%s7848_s20 + $0x3f8] sm:$0xff] }
 0x788   : > { %v3219_v29 = vmax.f32 %v3081_v25, 0.0  ;;  %4418 = vmatpush.bf16.msra.mxu3 %v6534_v22  ;;  %v6528_v22 = vld [vmem:[%s7848_s20 + $0x2c0] sm:$0xff] }
 0x789   : > { %v3220_v32 = vmax.f32 %v3094_v28, 0.0  ;;  %4394 = vmatpush.bf16.msra.mxu0 %v6516_v24 }
 0x78a   : > { %v3492_v35 = vpack.c.bf16 %v3219_v29, %v3219_v29  ;;  %4407 = vmatpush.bf16.msra.mxu1 %v6524_v27 }
 0x78b   : > { %v3493_v38 = vpack.c.bf16 %v3220_v32, %v3220_v32  ;;  %4380 = vmatpush.bf16.msra.mxu2 %v6509_v40  ;;  %v3067_v39 = vpop.f32.mrf.mxu2  ;;  %v6549_v40 = vld [vmem:[%s7848_s20 + $0x368] sm:$0xff] }
 0x78c   : > { %4419 = vmatpush.bf16.msra.mxu3 %v6533_v30  ;;  %v3068_v10 = vadd.f32 %v3067_v39, %v2338_v31  ;;  %v3106_v43 = vpop.f32.mrf.mxu3  ;;  %4347 = vmatmul.bf16.vlgmr.msrb.gmra.mxu0 %v3492_v35  ;;  %v6557_v31 = vld [vmem:[%s7848_s20 + $0x3a8] sm:$0xff]  ;;  %v6566_v35 = vld [vmem:[%s7848_s20 + $0x3f0] sm:$0xff]  ;;  %v6556_v39 = vld [vmem:[%s7848_s20 + $0x3a0] sm:$0xff] }
 0x78d   : > { %v3107_v45 = vadd.f32 %v3106_v43, %v2341_v33  ;;  %4360 = vmatmul.bf16.vlgmr.msrb.gmra.mxu1 %v3493_v38  ;;  %4395 = vmatpush.bf16.msra.mxu0 %v6515_v34  ;;  %v3082_v46 = vpop.f32.mrf.mxu0  ;;  %v6542_v33 = vld [vmem:[%s7848_s20 + $0x330] sm:$0xff]  ;;  %v6548_v38 = vld [vmem:[%s7848_s20 + $0x360] sm:$0xff] }
 0x78e   : > { %v3218_v48 = vmax.f32 %v3068_v10, 0.0  ;;  %4408 = vmatpush.bf16.msra.mxu1 %v6523_v37  ;;  %v3095_v49 = vpop.f32.mrf.mxu1  ;;  %v6541_v10 = vld [vmem:[%s7848_s20 + $0x328] sm:$0xff]  ;;  %v6555_v46 = vld [vmem:[%s7848_s20 + $0x398] sm:$0xff] }
 0x78f   : > { %v3221_v51 = vmax.f32 %v3107_v45, 0.0  ;;  %4381 = vmatpush.bf16.msra.mxu2 %v6508_v41  ;;  %v6547_v45 = vld [vmem:[%s7848_s20 + $0x358] sm:$0xff]  ;;  %v6546_v49 = vld [vmem:[%s7848_s20 + $0x350] sm:$0xff] }
 0x790   : > { %v3491_v53 = vpack.c.bf16 %v3218_v48, %v3218_v48  ;;  %4420 = vmatpush.bf16.msra.mxu3 %v6532_v44  ;;  %v6565_v44 = vld [vmem:[%s7848_s20 + $0x3e8] sm:$0xff]  ;;  %v6564_v48 = vld [vmem:[%s7848_s20 + $0x3e0] sm:$0xff] }
 0x791   : > { %v3494_v55 = vpack.c.bf16 %v3221_v51, %v3221_v51  ;;  %4396 = vmatpush.bf16.msra.mxu0 %v6514_v47  ;;  %v6540_v47 = vld [vmem:[%s7848_s20 + $0x320] sm:$0xff]  ;;  %v6539_v51 = vld [vmem:[%s7848_s20 + $0x318] sm:$0xff] }
 0x792   : > { %4409 = vmatpush.bf16.msra.mxu1 %v6522_v50  ;;  %4334 = vmatmul.bf16.vlgmr.msrb.gmra.mxu2 %v3491_v53  ;;  %v6554_v50 = vld [vmem:[%s7848_s20 + $0x390] sm:$0xff]  ;;  %v6545_v53 = vld [vmem:[%s7848_s20 + $0x348] sm:$0xff] }
 0x793   : > { %4373 = vmatmul.bf16.vlgmr.msrb.gmra.mxu3 %v3494_v55  ;;  %4382 = vmatpush.bf16.msra.mxu2 %v6507_v52  ;;  %v3069_v36 = vpop.f32.mrf.mxu2  ;;  %v6563_v52 = vld [vmem:[%s7848_s20 + $0x3d8] sm:$0xff]  ;;  %v2347_v55 = vperm.slane %v7631_v57, 5 }
 0x794   : > { %4421 = vmatpush.bf16.msra.mxu3 %v6531_v54  ;;  %v3108_v61 = vpop.f32.mrf.mxu3  ;;  %v6553_v54 = vld [vmem:[%s7848_s20 + $0x388] sm:$0xff]  ;;  %v6562_v36 = vld [vmem:[%s7848_s20 + $0x3d0] sm:$0xff] }
 0x795   : > { %4397 = vmatpush.bf16.msra.mxu0 %v6513_v56  ;;  %v6538_v56 = vld [vmem:[%s7848_s20 + $0x310] sm:$0xff] }
 0x796   : > { %4410 = vmatpush.bf16.msra.mxu1 %v6521_v58  ;;  %v3132_v3 = vpop.f32.mrf.mxu0  ;;  %v2348_v58 = vperm.slane %v7631_v57, 6 }
 0x797   : > { %4383 = vmatpush.bf16.msra.mxu2 %v6506_v60  ;;  %v3133_v6 = vadd.f32 %v3132_v3, %v2343_v13  ;;  %v6544_v60 = vld [vmem:[%s7848_s20 + $0x340] sm:$0xff] }
 0x798   : > { %4422 = vmatpush.bf16.msra.mxu3 %v6530_v62  ;;  %v6552_v13 = vld [vmem:[%s7848_s20 + $0x380] sm:$0xff] }
 0x799   : > { %v3145_v7 = vpop.f32.mrf.mxu1  ;;  %4398 = vmatpush.bf16.msra.mxu0 %v6512_v0  ;;  %v3223_v12 = vmax.f32 %v3133_v6, 0.0  ;;  %v6537_v0 = vld [vmem:[%s7848_s20 + $0x308] sm:$0xff]  ;;  %v2349_v6 = vperm.slane %v7631_v57, 7 }
 0x79a   : > { %v3146_v11 = vadd.f32 %v3145_v7, %v2344_v63  ;;  %4411 = vmatpush.bf16.msra.mxu1 %v6520_v1 }
 0x79b   : > { %4384 = vmatpush.bf16.msra.mxu2 %v6505_v5  ;;  %v3496_v18 = vpack.c.bf16 %v3223_v12, %v3223_v12 }
 0x79c   : > { %v3224_v15 = vmax.f32 %v3146_v11, 0.0  ;;  %4423 = vmatpush.bf16.msra.mxu3 %v6529_v8  ;;  %v3119_v59 = vpop.f32.mrf.mxu2  ;;  %v6536_v8 = vld [vmem:[%s7848_s20 + $0x300] sm:$0xff] }
 0x79d   : > { %4443 = vmatpush.bf16.msrb.mxu0 %v6551_v2  ;;  %v3120_v24 = vadd.f32 %v3119_v59, %v2342_v14  ;;  %v6561_v2 = vld [vmem:[%s7848_s20 + $0x3c8] sm:$0xff]  ;;  %v6560_v14 = vld [vmem:[%s7848_s20 + $0x3c0] sm:$0xff] }
 0x79e   : > { %4456 = vmatpush.bf16.msrb.mxu1 %v6559_v4  ;;  %v3497_v21 = vpack.c.bf16 %v3224_v15, %v3224_v15  ;;  %4399 = vmatmul.bf16.vlgmr.msra.gmra.mxu0 %v3496_v18  ;;  %v3134_v28 = vpop.f32.mrf.mxu0  ;;  %v2346_v4 = vperm.slane %v7631_v57, 4 }
 0x79f   : > { %v3158_v25 = vpop.f32.mrf.mxu3  ;;  %v3222_v29 = vmax.f32 %v3120_v24, 0.0  ;;  %4385 = vmatpush.bf16.msra.mxu2 %v6504_v20 }
 0x7a0   : > { %v3159_v27 = vadd.f32 %v3158_v25, %v2345_v16  ;;  %4412 = vmatmul.bf16.vlgmr.msra.gmra.mxu1 %v3497_v21  ;;  %4424 = vmatpush.bf16.msra.mxu3 %v6528_v22 }
 0x7a1   : > { %4444 = vmatpush.bf16.msrb.mxu0 %v6550_v17  ;;  %v3147_v30 = vpop.f32.mrf.mxu1  ;;  %v3495_v34 = vpack.c.bf16 %v3222_v29, %v3222_v29 }
 0x7a2   : > { %4457 = vmatpush.bf16.msrb.mxu1 %v6558_v19  ;;  %v3225_v32 = vmax.f32 %v3159_v27, 0.0 }
 0x7a3   : > { %4430 = vmatpush.bf16.msrb.mxu2 %v6543_v23 }
 0x7a4   : > { %4469 = vmatpush.bf16.msrb.mxu3 %v6567_v26  ;;  %v3498_v37 = vpack.c.bf16 %v3225_v32, %v3225_v32  ;;  %4386 = vmatmul.bf16.vlgmr.msra.gmra.mxu2 %v3495_v34  ;;  %v3121_v41 = vpop.f32.mrf.mxu2 }
 0x7a5   : > { %4445 = vmatpush.bf16.msrb.mxu0 %v6549_v40 }
 0x7a6   : > { %4458 = vmatpush.bf16.msrb.mxu1 %v6557_v31  ;;  %4425 = vmatmul.bf16.vlgmr.msra.gmra.mxu3 %v3498_v37 }
 0x7a7   : > { %4431 = vmatpush.bf16.msrb.mxu2 %v6542_v33  ;;  %v3160_v43 = vpop.f32.mrf.mxu3 }
 0x7a8   : > { %4470 = vmatpush.bf16.msrb.mxu3 %v6566_v35 }
 0x7a9   : > { %4446 = vmatpush.bf16.msrb.mxu0 %v6548_v38  ;;  %v6652_v38 = vld [vmem:[%s1325_s19] ss:$0 sm:$0xff]  ;;  %s7852_s19 = sld [smem:[#allocation37_spill]] }
 0x7aa   : > { %4459 = vmatpush.bf16.msrb.mxu1 %v6556_v39 }
 0x7ab   : > { %4432 = vmatpush.bf16.msrb.mxu2 %v6541_v10 }
 0x7ac   : > { %4471 = vmatpush.bf16.msrb.mxu3 %v6565_v44 }
 0x7ad   : > { %4447 = vmatpush.bf16.msrb.mxu0 %v6547_v45 }
 0x7ae   : > { %4460 = vmatpush.bf16.msrb.mxu1 %v6555_v46 }
 0x7af   : > { %4433 = vmatpush.bf16.msrb.mxu2 %v6540_v47  ;;  %p6238_p8 = scmp.ne.s32.totalorder %s7852_s19, 1 }
 0x7b0   : > { %4472 = vmatpush.bf16.msrb.mxu3 %v6564_v48  ;;  %s7853_s7 = sld [smem:[#allocation12_spill]] (!%p6238_p8) }
 0x7b1   : > { %4448 = vmatpush.bf16.msrb.mxu0 %v6546_v49  ;;  %s7855_s14 = sld [smem:[#allocation14_spill]] (!%p6238_p8) }
 0x7b2   : > { %4461 = vmatpush.bf16.msrb.mxu1 %v6554_v50  ;;  %s7856_s9 = sld [smem:[#allocation13_spill]] (!%p6238_p8) }
 0x7b3   : > { %4434 = vmatpush.bf16.msrb.mxu2 %v6539_v51 }
 0x7b4   : > { %4473 = vmatpush.bf16.msrb.mxu3 %v6563_v52 }
 0x7b5   : > { %4449 = vmatpush.bf16.msrb.mxu0 %v6545_v53 }
 0x7b6   : > { %v3184_v61 = vpop.f32.mrf.mxu0  ;;  %4462 = vmatpush.bf16.msrb.mxu1 %v6553_v54  ;;  %s7854_s17 = smov (!%p6238_p8), %s7853_s7 }
 0x7b7   : > { %v3185_v62 = vadd.f32 %v3184_v61, %v2347_v55  ;;  %v3197_v63 = vpop.f32.mrf.mxu1  ;;  %4435 = vmatpush.bf16.msrb.mxu2 %v6538_v56 }
 0x7b8   : > { %v3198_v1 = vadd.f32 %v3197_v63, %v2348_v58  ;;  %4474 = vmatpush.bf16.msrb.mxu3 %v6562_v36 }
 0x7b9   : > { %v3227_v3 = vmax.f32 %v3185_v62, 0.0  ;;  %4450 = vmatpush.bf16.msrb.mxu0 %v6544_v60 }
 0x7ba   : > { %v3228_v5 = vmax.f32 %v3198_v1, 0.0  ;;  %4463 = vmatpush.bf16.msrb.mxu1 %v6552_v13 }
 0x7bb   : > { %v3500_v7 = vpack.c.bf16 %v3227_v3, %v3227_v3  ;;  %4436 = vmatpush.bf16.msrb.mxu2 %v6537_v0 }
 0x7bc   : > { %v3501_v11 = vpack.c.bf16 %v3228_v5, %v3228_v5  ;;  %v3171_v12 = vpop.f32.mrf.mxu2  ;;  %4475 = vmatpush.bf16.msrb.mxu3 %v6561_v2 }
 0x7bd   : > { %v3172_v15 = vadd.f32 %v3171_v12, %v2346_v4  ;;  %4451 = vmatmul.bf16.vlgmr.msrb.gmra.mxu0 %v3500_v7 }
 0x7be   : > { %v3210_v16 = vpop.f32.mrf.mxu3  ;;  %4464 = vmatmul.bf16.vlgmr.msrb.gmra.mxu1 %v3501_v11  ;;  %v3186_v18 = vpop.f32.mrf.mxu0 }
 0x7bf   : > { %v3211_v17 = vadd.f32 %v3210_v16, %v2349_v6  ;;  %v3226_v19 = vmax.f32 %v3172_v15, 0.0  ;;  %v3199_v20 = vpop.f32.mrf.mxu1  ;;  %4437 = vmatpush.bf16.msrb.mxu2 %v6536_v8 }
 0x7c0   : > { %4476 = vmatpush.bf16.msrb.mxu3 %v6560_v14 }
 0x7c1   : > { %v3229_v21 = vmax.f32 %v3211_v17, 0.0  ;;  %v3499_v59 = vpack.c.bf16 %v3226_v19, %v3226_v19 }
 0x7c3   : > { %v3502_v57 = vpack.c.bf16 %v3229_v21, %v3229_v21  ;;  %4438 = vmatmul.bf16.vlgmr.msrb.gmra.mxu2 %v3499_v59 }
 0x7c4   : > { %v3173_v22 = vpop.f32.mrf.mxu2 }
 0x7c5   : > { %4477 = vmatmul.bf16.vlgmr.msrb.gmra.mxu3 %v3502_v57 }
 0x7c6   : > { %v3212_v23 = vpop.f32.mrf.mxu3 }
 0x7f9   : > { %v4296_v24 = vpop.f32.mrf.mxu0 }
 0x7fa   : > { %v4309_v25 = vpop.f32.mrf.mxu1 }
 0x801   : > { %v4298_v26 = vpop.f32.mrf.mxu0 }
 0x802   : > { %v4311_v27 = vpop.f32.mrf.mxu1  ;;  %v6653_v26 = vld [vmem:[%s1310_s5] ss:$0 sm:$0xff]  ;;  %s7858_s5 = sld [smem:[#allocation33_spill]] (!%p6238_p8) }
 0x805   : > { %v4283_v28 = vpop.f32.mrf.mxu2 }
 0x806   : > { %v4322_v40 = vpop.f32.mrf.mxu3  ;;  %v4284_v39 = vadd.f32 %v6652_v38, %v4283_v28  ;;  %v6654_v28 = vld [vmem:[%s1313_s28] ss:$0 sm:$0xff]  ;;  %s7857_s28 = sld [smem:[#allocation15_spill]] (!%p6238_p8) }
 0x808   : > { %v4297_v45 = vadd.f32 %v4296_v24, %v4284_v39 }
 0x809   : > { %v4348_v29 = vpop.f32.mrf.mxu0 }
 0x80a   : > { %v4361_v30 = vpop.f32.mrf.mxu1  ;;  %v4310_v46 = vadd.f32 %v4309_v25, %v4297_v45 }
 0x80c   : > { %v4323_v49 = vadd.f32 %v4322_v40, %v4310_v46 }
 0x80d   : > { %v4285_v31 = vpop.f32.mrf.mxu2 }
 0x80e   : > { %v4324_v32 = vpop.f32.mrf.mxu3 }
 0x811   : > { %v4350_v33 = vpop.f32.mrf.mxu0 }
 0x812   : > { %v4363_v34 = vpop.f32.mrf.mxu1 }
 0x815   : > { %v4335_v35 = vpop.f32.mrf.mxu2 }
 0x816   : > { %v4374_v37 = vpop.f32.mrf.mxu3  ;;  %v4336_v52 = vadd.f32 %v4335_v35, %v4323_v49 }
 0x818   : > { %v4349_v53 = vadd.f32 %v4348_v29, %v4336_v52 }
 0x81a   : > { %v4362_v56 = vadd.f32 %v4361_v30, %v4349_v53 }
 0x81b   : > { %v4400_v41 = vpop.f32.mrf.mxu0 }
 0x81c   : > { %v4375_v58 = vadd.f32 %v4374_v37, %v4362_v56 }
 0x81d   : > { %v4413_v10 = vpop.f32.mrf.mxu1  ;;  %v4337_v43 = vpop.f32.mrf.mxu2 }
 0x81e   : > { %v4376_v44 = vpop.f32.mrf.mxu3 }
 0x823   : > { %v4402_v47 = vpop.f32.mrf.mxu0 }
 0x825   : > { %v4415_v48 = vpop.f32.mrf.mxu1 }
 0x827   : > { %v4387_v50 = vpop.f32.mrf.mxu2 }
 0x828   : > { %v4388_v36 = vadd.f32 %v4387_v50, %v4375_v58 }
 0x829   : > { %v4426_v51 = vpop.f32.mrf.mxu3 }
 0x82a   : > { %v4401_v13 = vadd.f32 %v4400_v41, %v4388_v36 }
 0x82c   : > { %v4414_v62 = vadd.f32 %v4413_v10, %v4401_v13 }
 0x82e   : > { %v4427_v1 = vadd.f32 %v4426_v51, %v4414_v62 }
 0x82f   : > { %v4389_v54 = vpop.f32.mrf.mxu2 }
 0x831   : > { %v4428_v55 = vpop.f32.mrf.mxu3 }
 0x83a   : > { %v4452_v60 = vpop.f32.mrf.mxu0 }
 0x83b   : > { %v4465_v61 = vpop.f32.mrf.mxu1 }
 0x842   : > { %v4454_v63 = vpop.f32.mrf.mxu0 }
 0x843   : > { %v4467_v0 = vpop.f32.mrf.mxu1 }
 0x846   : > { %v4439_v2 = vpop.f32.mrf.mxu2 }
 0x847   : > { %v4440_v3 = vadd.f32 %v4439_v2, %v4427_v1 }
 0x848   : > { %v4478_v4 = vpop.f32.mrf.mxu3 }
 0x849   : > { %v4453_v5 = vadd.f32 %v4452_v60, %v4440_v3 }
 0x84b   : > { %v4466_v6 = vadd.f32 %v4465_v61, %v4453_v5 }
 0x84d   : > { %v4479_v7 = vadd.f32 %v4478_v4, %v4466_v6 }
 0x84e   : > { %v4441_v8 = vpop.f32.mrf.mxu2 }
 0x84f   : > { %v4482_v12 = vadd.f32 %v4479_v7, %v7387_v42 }
 0x850   : > { %v4480_v11 = vpop.f32.mrf.mxu3 }
 0x851   : > { %v4485_v14 = vsel %vm1677_vm0, %v4482_v12, 0.0 }
 0x852   : > { %4486 = vadd.xlane.f32.xlu2 %v4485_v14 }
 0x8c5   : > { %v4487_v15 = vpop.xlane.xlu2 %4486 }
 0x8c6   : > { %v4488_v16 = vmul.f32 %v4487_v15, %v7131_v9 }
 0x8c8   : > { %v4489_v17 = vsub.f32 %v4482_v12, %v4488_v16 }
 0x8ca   : > { %v4490_v18 = vmul.f32 %v4489_v17, %v4489_v17 }
 0x8cc   : > { %v4491_v19 = vsel %vm1677_vm0, %v4490_v18, 0.0 }
 0x8cd   : > { %4492 = vadd.xlane.f32.xlu2 %v4491_v19 }
 0x940   : > { %v4493_v20 = vpop.xlane.xlu2 %4492 }
 0x941   : > { %v4494_v21 = vmul.f32 %v4493_v20, %v7131_v9 }
 0x943   : > { %v4495_v59 = vadd.f32 1e-05, %v4494_v21 }
 0x945   : > { %6669 = vrsqrt.f32 %v4495_v59  ;;  %vm4502_vm13 = vweird.f32 %v4495_v59 }
 0x94b   : > { %v6670_v42 = vpop.eup %6669 }
 0x94c   : > { %v4497_v57 = vmul.f32 %v6670_v42, %v4495_v59  ;;  %vm4503_vm12 = vweird.f32 %v6670_v42 }
 0x94d   : > { %vm4504_vm14 = vmor %vm4502_vm13, %vm4503_vm12 }
 0x94e   : > { %v4498_v22 = vmul.f32 %v6670_v42, %v4497_v57 }
 0x950   : > { %v4499_v23 = vmul.f32 0.5, %v4498_v22 }
 0x952   : > { %v4500_v24 = vsub.f32 1.5, %v4499_v23 }
 0x954   : > { %v4501_v25 = vmul.f32 %v6670_v42, %v4500_v24 }
 0x956   : > { %v4505_v27 = vsel %vm4504_vm14, %v6670_v42, %v4501_v25 }
 0x957   : > { %v4506_v40 = vmul.f32 %v4505_v27, %v4489_v17 }
 0x959   : > { %v4510_v29 = vmul.f32 %v6653_v26, %v4506_v40  ;;  %4519 = sbr.rel (%p6238_p8) target bundleno = 2955 (0xb8b), region = 156 }
 0x95b   : > { %v4514_v30 = vadd.f32 %v6654_v28, %v4510_v29 }
 0x95d   : > { %4515 = vst [vmem:[#allocation2] sm:$0x3] %v4514_v30 }
 0x95e   : > { %v4535_v9 = vld [vmem:[%s7853_s7 + $0x78] sm:$0xff]  ;;  %v4534_v31 = vld [vmem:[%s7854_s17 + $0x70] sm:$0xff]  ;;  %v4533_v32 = vld [vmem:[%s7854_s17 + $0x68] sm:$0xff]  ;;  %v4601_v4 = vlaneseq }
 0x95f   : > { %4540 = vmatpush.msra.mxu0 %v4535_v9  ;;  %v4532_v33 = vld [vmem:[%s7854_s17 + $0x60] sm:$0xff]  ;;  %v4576_v34 = vld [vmem:[%s7855_s14 + $0x78] sm:$0xff]  ;;  %v4575_v35 = vld [vmem:[%s7855_s14 + $0x70] sm:$0xff] }
 0x960   : > { %v4531_v37 = vld [vmem:[%s7854_s17 + $0x58] sm:$0xff]  ;;  %4581 = vmatpush.msra.mxu1 %v4576_v34  ;;  %v4574_v38 = vld [vmem:[%s7855_s14 + $0x68] sm:$0xff]  ;;  %v4530_v39 = vld [vmem:[%s7854_s17 + $0x50] sm:$0xff]  ;;  %v4602_v5 = vand.u32 127, %v4601_v4 }
 0x961   : > { %4541 = vmatpush.msra.mxu0 %v4534_v31  ;;  %v4573_v41 = vld [vmem:[%s7855_s14 + $0x60] sm:$0xff]  ;;  %v4529_v10 = vld [vmem:[%s7854_s17 + $0x48] sm:$0xff]  ;;  %v4572_v43 = vld [vmem:[%s7855_s14 + $0x58] sm:$0xff] }
 0x962   : > { %4582 = vmatpush.msra.mxu1 %v4575_v35  ;;  %v4528_v44 = vld [vmem:[%s7854_s17 + $0x40] sm:$0xff]  ;;  %v4571_v45 = vld [vmem:[%s7855_s14 + $0x50] sm:$0xff]  ;;  %v4527_v46 = vld [vmem:[%s7854_s17 + $0x38] sm:$0xff]  ;;  %vm4603_vm15 = vcmp.lt.s32.totalorder %v4602_v5, 7 }
 0x963   : > { %4542 = vmatpush.msra.mxu0 %v4533_v32  ;;  %v4570_v47 = vld [vmem:[%s7855_s14 + $0x48] sm:$0xff]  ;;  %v4526_v48 = vld [vmem:[%s7854_s17 + $0x30] sm:$0xff]  ;;  %v4569_v49 = vld [vmem:[%s7855_s14 + $0x40] sm:$0xff] }
 0x964   : > { %4583 = vmatpush.msra.mxu1 %v4574_v38  ;;  %v4525_v50 = vld [vmem:[%s7854_s17 + $0x28] sm:$0xff]  ;;  %v4568_v51 = vld [vmem:[%s7855_s14 + $0x38] sm:$0xff]  ;;  %v4524_v52 = vld [vmem:[%s7854_s17 + $0x20] sm:$0xff] }
 0x965   : > { %4543 = vmatpush.msra.mxu0 %v4532_v33  ;;  %v4567_v53 = vld [vmem:[%s7855_s14 + $0x30] sm:$0xff]  ;;  %v4523_v54 = vld [vmem:[%s7854_s17 + $0x18] sm:$0xff]  ;;  %v4566_v55 = vld [vmem:[%s7855_s14 + $0x28] sm:$0xff] }
 0x966   : > { %4584 = vmatpush.msra.mxu1 %v4573_v41  ;;  %v4522_v56 = vld [vmem:[%s7854_s17 + $0x10] sm:$0xff]  ;;  %v4521_v58 = vld [vmem:[%s7854_s17 + $0x8] sm:$0xff]  ;;  %v4520_v36 = vld [vmem:[%s7854_s17] sm:$0xff] }
 0x967   : > { %4544 = vmatpush.msra.mxu0 %v4531_v37  ;;  %v4565_v60 = vld [vmem:[%s7855_s14 + $0x20] sm:$0xff]  ;;  %v4564_v61 = vld [vmem:[%s7855_s14 + $0x18] sm:$0xff]  ;;  %v4563_v13 = vld [vmem:[%s7855_s14 + $0x10] sm:$0xff] }
 0x968   : > { %4585 = vmatpush.msra.mxu1 %v4572_v43  ;;  %v4562_v62 = vld [vmem:[%s7855_s14 + $0x8] sm:$0xff]  ;;  %v4561_v63 = vld [vmem:[%s7855_s14] sm:$0xff] }
 0x969   : > { %4545 = vmatpush.msra.mxu0 %v4530_v39  ;;  %v6671_v0 = vld [vmem:[%s7856_s9] ss:$0 sm:$0xff] }
 0x96a   : > { %4586 = vmatpush.msra.mxu1 %v4571_v45  ;;  %v6672_v6 = vld [vmem:[%s7857_s28] ss:$0 sm:$0xff] }
 0x96b   : > { %4546 = vmatpush.msra.mxu0 %v4529_v10 }
 0x96c   : > { %4587 = vmatpush.msra.mxu1 %v4570_v47 }
 0x96d   : > { %4547 = vmatpush.msra.mxu0 %v4528_v44 }
 0x96e   : > { %4588 = vmatpush.msra.mxu1 %v4569_v49 }
 0x96f   : > { %4548 = vmatpush.msra.mxu0 %v4527_v46 }
 0x970   : > { %4589 = vmatpush.msra.mxu1 %v4568_v51 }
 0x971   : > { %4549 = vmatpush.msra.mxu0 %v4526_v48 }
 0x972   : > { %4590 = vmatpush.msra.mxu1 %v4567_v53 }
 0x973   : > { %4550 = vmatpush.msra.mxu0 %v4525_v50 }
 0x974   : > { %4591 = vmatpush.msra.mxu1 %v4566_v55 }
 0x975   : > { %4551 = vmatpush.msra.mxu0 %v4524_v52 }
 0x976   : > { %4592 = vmatpush.msra.mxu1 %v4565_v60 }
 0x977   : > { %4552 = vmatpush.msra.mxu0 %v4523_v54 }
 0x978   : > { %4593 = vmatpush.msra.mxu1 %v4564_v61 }
 0x979   : > { %4553 = vmatpush.msra.mxu0 %v4522_v56 }
 0x97a   : > { %4594 = vmatpush.msra.mxu1 %v4563_v13 }
 0x97b   : > { %4554 = vmatpush.msra.mxu0 %v4521_v58 }
 0x97c   : > { %4595 = vmatpush.msra.mxu1 %v4562_v62 }
 0x97d   : > { %4555 = vmatpush.msra.mxu0 %v4520_v36 }
 0x97e   : > { %4556 = vmatmul.f32.vlgmr.msra.gmra.mxu0 %v4514_v30  ;;  %4596 = vmatpush.msra.mxu1 %v4561_v63 }
 0x9fb   : > { %v4557_v1 = vpop.f32.mrf.mxu0 }
 0x9fc   : > { %v4558_v2 = vadd.f32 %v6671_v0, %v4557_v1 }
 0x9fe   : > { %6673 = vtanh.f32 %v4558_v2 }
 0xa04   : > { %v6674_v3 = vpop.eup %6673 }
 0xa05   : > { %4597 = vmatmul.f32.vlgmr.msra.gmra.mxu1 %v6674_v3 }
 0xa82   : > { %v4598_v7 = vpop.f32.mrf.mxu1 }
 0xa83   : > { %v4599_v8 = vadd.f32 %v6672_v6, %v4598_v7 }
 0xa85   : > { %v4604_v11 = vsel %vm4603_vm15, %v4599_v8, -inf }
 0xa86   : > { %v4605_v12 = vsel %vm1677_vm0, %v4604_v11, -inf }
 0xa87   : > { %4606 = vmax.xlane.f32.xlu0 %v4605_v12 }
 0xafa   : > { %v4607_v14 = vpop.xlane.xlu0 %4606 }
 0xafb   : > { %v4608_v15 = vsub.f32 %v4599_v8, %v4607_v14 }
 0xafd   : > { %v4609_v16 = vmul.f32 1.442695, %v4608_v15 }
 0xaff   : > { %6675 = vpow2.f32 %v4609_v16 }
 0xb05   : > { %v6676_v17 = vpop.eup %6675 }
 0xb06   : > { %v4611_v18 = vsel %vm4603_vm15, %v6676_v17, 0.0 }
 0xb07   : > { %v4612_v19 = vsel %vm1677_vm0, %v4611_v18, 0.0 }
 0xb08   : > { %4613 = vadd.xlane.f32.xlu0 %v4612_v19 }
 0xb7b   : > { %v4614_v20 = vpop.xlane.xlu0 %4613 }
 0xb7c   : > { %6677 = vlog2.f32 %v4614_v20 }
 0xb82   : > { %v6678_v21 = vpop.eup %6677 }
 0xb83   : > { %v4616_v59 = vmul.f32 0.6931472, %v6678_v21 }
 0xb85   : > { %v4617_v42 = vadd.f32 %v4616_v59, %v4607_v14 }
 0xb87   : > { %v4618_v57 = vsub.f32 %v4599_v8, %v4617_v42 }
 0xb89   : > { %v4619_v22 = vsel %vm4603_vm15, %v4618_v57, %v4599_v8 }
 0xb8a   : > { %4620 = vst [vmem:[%s7858_s5] sm:$0x3] %v4619_v22 }
 0xb8b PF: > { %s7859_s7 = sld [smem:[#allocation38_spill]] }
 0xb8c   : > { %s7860_s28 = sld [smem:[#allocation35_spill]] }
 0xb8d   : > { %s7861_s1 = sld [smem:[#allocation36_spill]] }
 0xb8e   : > { %s7862_s2 = sld [smem:[#allocation39_spill]] }
 0xb91   : > { %p76_p9 = scmp.ge.s32.totalorder %s7859_s7, 4  }
 0xb93   :  { %78 = sbr.rel (!%p76_p9) target bundleno = 75 (0x4b), region = 294 }
 0xb98   :  { %4646 = vsyncpa [#allocation4], 1 }
 0xb99   :  { %4648 = vsyncpa [#allocation4 + $0x1], 1 }

</bundles_post_ra>
